<compile_context>
chip_gen: v6e
topology: v6e:2x2x1
jax: 0.10.0
libtpu: 0.0.40
codegen_flags: <defaults>
</compile_context>

<pallas_src>
import functools

import jax
import jax.numpy as jnp
from jax.experimental import pallas as pl
from jax.experimental.pallas import tpu as pltpu


# ----------------------------------------------------------------------------
# Fused kernel: channel mean/max pooling -> zero pad -> kxk conv (2->1) -> sigmoid
# ----------------------------------------------------------------------------
def _spatial_attention_kernel(x_ref, w_ref, o_ref, avg_ref, max_ref,
                              *, C, H, W, K):
    """x_ref   : (bb, C, H, W)        un-padded input block (VMEM)
       w_ref   : (2*K*K,)             flattened conv weight, (c, i, j) order (SMEM)
       o_ref   : (bb, H, W)           output block (VMEM)
       avg_ref : (bb, H+2P, W+2P)     VMEM staging for the zero-padded avg map
       max_ref : (bb, H+2P, W+2P)     VMEM staging for the zero-padded max map
    """
    P = K // 2
    bb = x_ref.shape[0]

    # --- channel pooling: mean and max over C (values stay in vregs) -------
    x0 = x_ref[:, 0]                       # (bb, H, W)
    s = x0
    m = x0
    for c in range(1, C):
        xc = x_ref[:, c]
        s = s + xc
        m = jnp.maximum(m, xc)
    avg = s * (1.0 / C)

    # --- fused 'same' zero-padding via a tiny staging buffer ---------------
    # (2 stores + 2 loads total; every conv tap below slices vreg values).
    avg_ref[...] = jnp.zeros_like(avg_ref)
    max_ref[...] = jnp.zeros_like(max_ref)
    avg_ref[:, P:P + H, P:P + W] = avg
    max_ref[:, P:P + H, P:P + W] = m
    pooled = (avg_ref[...], max_ref[...])  # (bb, Hp, Wp) each, back in vregs

    # --- KxK conv over the 2 pooled channels: unrolled scalar-weight taps --
    # Lane (column) shift hoisted out of the row loop: 2*K lane slices total,
    # only the sublane (row) slice varies in the inner loop.
    acc = jnp.zeros((bb, H, W), jnp.float32)
    for c in range(2):
        pc = pooled[c]
        for j in range(K):
            col = pc[:, :, j:j + W]                 # (bb, Hp, W) — lane shift
            for i in range(K):
                w = w_ref[c * K * K + i * K + j]    # SMEM scalar
                acc = acc + w * col[:, i:i + H, :]  # sublane slice + VPU FMA

    # --- sigmoid: exp on the EUP slot, exact divide for f32 accuracy -------
    o_ref[...] = 1.0 / (1.0 + jnp.exp(-acc))


# ----------------------------------------------------------------------------
# Wrapper
# ----------------------------------------------------------------------------
@jax.jit
def spatial_attention_forward(x, weight):
    """x: (B, C, H, W) f32; weight: (1, 2, k, k) f32 (Conv2d(2, 1, k, bias=False))."""
    B, C, H, W = x.shape
    O, I, kh, kw = weight.shape
    assert O == 1 and I == 2 and kh == kw, "Conv2d(2, 1, k, bias=False) weight expected"
    assert kh % 2 == 1, "kernel_size must be odd for 'same' padding"
    K = kh
    P = K // 2
    Hp, Wp = H + 2 * P, W + 2 * P

    w_flat = weight.astype(jnp.float32).reshape(-1)          # (2*K*K,)

    # Collapse the per-batch grid on single-TensorCore chips; keep a
    # batch-parallel grid when the device exposes multiple cores (v7x).
    try:
        num_cores = int(getattr(jax.devices()[0], "num_cores", 1))
    except Exception:
        num_cores = 1
    num_cores = max(num_cores, 1)
    steps = num_cores if (num_cores > 1 and B % num_cores == 0) else 1
    bb = B // steps

    kernel = functools.partial(_spatial_attention_kernel, C=C, H=H, W=W, K=K)

    out = pl.pallas_call(
        kernel,
        out_shape=jax.ShapeDtypeStruct((B, H, W), jnp.float32),
        grid_spec=pltpu.PrefetchScalarGridSpec(
            num_scalar_prefetch=0,
            grid=(steps,),
            in_specs=[
                pl.BlockSpec((bb, C, H, W), lambda b: (b, 0, 0, 0)),
                pl.BlockSpec(memory_space=pltpu.MemorySpace.SMEM),
            ],
            out_specs=pl.BlockSpec((bb, H, W), lambda b: (b, 0, 0)),
            scratch_shapes=[
                pltpu.VMEM((bb, Hp, Wp), jnp.float32),
                pltpu.VMEM((bb, Hp, Wp), jnp.float32),
            ],
        ),
        compiler_params=pltpu.CompilerParams(
            dimension_semantics=("parallel",)),
    )(x.astype(jnp.float32), w_flat)

    return out.reshape(B, 1, H, W)


# ----------------------------------------------------------------------------
# Pure-JAX reference (sanity check only)
# ----------------------------------------------------------------------------
def _reference(x, weight):
    P = weight.shape[-1] // 2
    avg = jnp.mean(x, axis=1, keepdims=True)
    mx = jnp.max(x, axis=1, keepdims=True)
    xc = jnp.concatenate([avg, mx], axis=1)
    conv = jax.lax.conv_general_dilated(
        xc, weight, window_strides=(1, 1),
        padding=[(P, P), (P, P)],
        dimension_numbers=("NCHW", "OIHW", "NCHW"))
    return jax.nn.sigmoid(conv)


if __name__ == "__main__":
    B, C, H, W = 2, 4, 16, 16
    kernel_size = 7                      # SpatialAttention(kernel_size=7)

    key = jax.random.PRNGKey(0)
    kx, kw_ = jax.random.split(key)

    x = jax.random.normal(kx, (B, C, H, W), dtype=jnp.float32)
    # Deterministic Conv2d-style init: uniform in +-1/sqrt(fan_in)
    fan_in = 2 * kernel_size * kernel_size
    bound = 1.0 / (fan_in ** 0.5)
    weight = jax.random.uniform(
        kw_, (1, 2, kernel_size, kernel_size),
        minval=-bound, maxval=bound, dtype=jnp.float32)

    out = spatial_attention_forward(x, weight)
    out = jax.block_until_ready(out)

    ref = _reference(x, weight)
    assert out.shape == ref.shape, (out.shape, ref.shape)
    assert jnp.allclose(out, ref, atol=1e-5, rtol=1e-5), \
        float(jnp.max(jnp.abs(out - ref)))

    print("KERNEL_OK")
</pallas_src>

<mosaic_0001>
module attributes {stable_mosaic.version = 11 : i64} {
  func.func @_spatial_attention_kernel(%arg0: i32, %arg1: memref<2x4x16x16xf32, #tpu.memory_space<vmem>>, %arg2: memref<98xf32, #tpu.memory_space<smem>>, %arg3: memref<2x16x16xf32, #tpu.memory_space<vmem>>, %arg4: memref<2x22x22xf32, #tpu.memory_space<vmem>>, %arg5: memref<2x22x22xf32, #tpu.memory_space<vmem>>) attributes {dimension_semantics = [#tpu.dimension_semantics<parallel>], iteration_bounds = array<i64: 1>, scalar_prefetch = 0 : i64, scratch_operands = 2 : i64, tpu.core_type = #tpu.core_type<tc>, window_params = [{transform_indices = @transform_0, window_bounds = array<i64: 2, 4, 16, 16>}, {transform_indices = @transform_1, window_bounds = array<i64: 98>}, {transform_indices = @transform_2, window_bounds = array<i64: 2, 16, 16>}]} {
    %c0 = arith.constant 0 : index
    %c0_0 = arith.constant 0 : index
    %c0_1 = arith.constant 0 : index
    %c0_2 = arith.constant 0 : index
    %0 = vector.load %arg1[%c0, %c0_0, %c0_1, %c0_2] : memref<2x4x16x16xf32, #tpu.memory_space<vmem>>, vector<2x1x16x16xf32>
    %1 = vector.shape_cast %0 : vector<2x1x16x16xf32> to vector<2x16x16xf32>
    %c0_3 = arith.constant 0 : index
    %c1 = arith.constant 1 : index
    %c0_4 = arith.constant 0 : index
    %c0_5 = arith.constant 0 : index
    %2 = vector.load %arg1[%c0_3, %c1, %c0_4, %c0_5] : memref<2x4x16x16xf32, #tpu.memory_space<vmem>>, vector<2x1x16x16xf32>
    %3 = vector.shape_cast %2 : vector<2x1x16x16xf32> to vector<2x16x16xf32>
    %4 = arith.addf %1, %3 : vector<2x16x16xf32>
    %5 = arith.maximumf %1, %3 : vector<2x16x16xf32>
    %c0_6 = arith.constant 0 : index
    %c2 = arith.constant 2 : index
    %c0_7 = arith.constant 0 : index
    %c0_8 = arith.constant 0 : index
    %6 = vector.load %arg1[%c0_6, %c2, %c0_7, %c0_8] : memref<2x4x16x16xf32, #tpu.memory_space<vmem>>, vector<2x1x16x16xf32>
    %7 = vector.shape_cast %6 : vector<2x1x16x16xf32> to vector<2x16x16xf32>
    %8 = arith.addf %4, %7 : vector<2x16x16xf32>
    %9 = arith.maximumf %5, %7 : vector<2x16x16xf32>
    %c0_9 = arith.constant 0 : index
    %c3 = arith.constant 3 : index
    %c0_10 = arith.constant 0 : index
    %c0_11 = arith.constant 0 : index
    %10 = vector.load %arg1[%c0_9, %c3, %c0_10, %c0_11] : memref<2x4x16x16xf32, #tpu.memory_space<vmem>>, vector<2x1x16x16xf32>
    %11 = vector.shape_cast %10 : vector<2x1x16x16xf32> to vector<2x16x16xf32>
    %12 = arith.addf %8, %11 : vector<2x16x16xf32>
    %13 = arith.maximumf %9, %11 : vector<2x16x16xf32>
    %cst = arith.constant 2.500000e-01 : f32
    %14 = vector.broadcast %cst : f32 to vector<2x16x16xf32>
    %15 = arith.mulf %12, %14 : vector<2x16x16xf32>
    %cst_12 = arith.constant 0.000000e+00 : f32
    %16 = vector.broadcast %cst_12 : f32 to vector<2x22x22xf32>
    %c0_13 = arith.constant 0 : index
    %c0_14 = arith.constant 0 : index
    %c0_15 = arith.constant 0 : index
    %17 = vector.load %arg4[%c0_13, %c0_14, %c0_15] : memref<2x22x22xf32, #tpu.memory_space<vmem>>, vector<2x22x22xf32>
    tpu.vector_store %arg4[%c0_13, %c0_14, %c0_15], %16 {strides = array<i32>} : memref<2x22x22xf32, #tpu.memory_space<vmem>>, vector<2x22x22xf32>,
    %cst_16 = arith.constant 0.000000e+00 : f32
    %18 = vector.broadcast %cst_16 : f32 to vector<2x22x22xf32>
    %c0_17 = arith.constant 0 : index
    %c0_18 = arith.constant 0 : index
    %c0_19 = arith.constant 0 : index
    %19 = vector.load %arg5[%c0_17, %c0_18, %c0_19] : memref<2x22x22xf32, #tpu.memory_space<vmem>>, vector<2x22x22xf32>
    tpu.vector_store %arg5[%c0_17, %c0_18, %c0_19], %18 {strides = array<i32>} : memref<2x22x22xf32, #tpu.memory_space<vmem>>, vector<2x22x22xf32>,
    %c0_20 = arith.constant 0 : index
    %c3_21 = arith.constant 3 : index
    %c3_22 = arith.constant 3 : index
    %20 = vector.load %arg4[%c0_20, %c3_21, %c3_22] : memref<2x22x22xf32, #tpu.memory_space<vmem>>, vector<2x16x16xf32>
    tpu.vector_store %arg4[%c0_20, %c3_21, %c3_22], %15 {strides = array<i32>} : memref<2x22x22xf32, #tpu.memory_space<vmem>>, vector<2x16x16xf32>,
    %c0_23 = arith.constant 0 : index
    %c3_24 = arith.constant 3 : index
    %c3_25 = arith.constant 3 : index
    %21 = vector.load %arg5[%c0_23, %c3_24, %c3_25] : memref<2x22x22xf32, #tpu.memory_space<vmem>>, vector<2x16x16xf32>
    tpu.vector_store %arg5[%c0_23, %c3_24, %c3_25], %13 {strides = array<i32>} : memref<2x22x22xf32, #tpu.memory_space<vmem>>, vector<2x16x16xf32>,
    %c0_26 = arith.constant 0 : index
    %c0_27 = arith.constant 0 : index
    %c0_28 = arith.constant 0 : index
    %22 = vector.load %arg4[%c0_26, %c0_27, %c0_28] : memref<2x22x22xf32, #tpu.memory_space<vmem>>, vector<2x22x22xf32>
    %c0_29 = arith.constant 0 : index
    %c0_30 = arith.constant 0 : index
    %c0_31 = arith.constant 0 : index
    %23 = vector.load %arg5[%c0_29, %c0_30, %c0_31] : memref<2x22x22xf32, #tpu.memory_space<vmem>>, vector<2x22x22xf32>
    %cst_32 = arith.constant 0.000000e+00 : f32
    %24 = vector.broadcast %cst_32 : f32 to vector<2x16x16xf32>
    %25 = vector.extract_strided_slice %22 {offsets = [0, 0, 0], sizes = [2, 22, 16], strides = [1, 1, 1]} : vector<2x22x22xf32> to vector<2x22x16xf32>
    %c0_33 = arith.constant 0 : index
    %26 = memref.load %arg2[%c0_33] : memref<98xf32, #tpu.memory_space<smem>>
    %27 = vector.extract_strided_slice %25 {offsets = [0, 0, 0], sizes = [2, 16, 16], strides = [1, 1, 1]} : vector<2x22x16xf32> to vector<2x16x16xf32>
    %28 = vector.broadcast %26 : f32 to vector<2x16x16xf32>
    %29 = arith.mulf %28, %27 : vector<2x16x16xf32>
    %30 = arith.addf %24, %29 : vector<2x16x16xf32>
    %c7 = arith.constant 7 : index
    %31 = memref.load %arg2[%c7] : memref<98xf32, #tpu.memory_space<smem>>
    %32 = vector.extract_strided_slice %25 {offsets = [0, 1, 0], sizes = [2, 16, 16], strides = [1, 1, 1]} : vector<2x22x16xf32> to vector<2x16x16xf32>
    %33 = vector.broadcast %31 : f32 to vector<2x16x16xf32>
    %34 = arith.mulf %33, %32 : vector<2x16x16xf32>
    %35 = arith.addf %30, %34 : vector<2x16x16xf32>
    %c14 = arith.constant 14 : index
    %36 = memref.load %arg2[%c14] : memref<98xf32, #tpu.memory_space<smem>>
    %37 = vector.extract_strided_slice %25 {offsets = [0, 2, 0], sizes = [2, 16, 16], strides = [1, 1, 1]} : vector<2x22x16xf32> to vector<2x16x16xf32>
    %38 = vector.broadcast %36 : f32 to vector<2x16x16xf32>
    %39 = arith.mulf %38, %37 : vector<2x16x16xf32>
    %40 = arith.addf %35, %39 : vector<2x16x16xf32>
    %c21 = arith.constant 21 : index
    %41 = memref.load %arg2[%c21] : memref<98xf32, #tpu.memory_space<smem>>
    %42 = vector.extract_strided_slice %25 {offsets = [0, 3, 0], sizes = [2, 16, 16], strides = [1, 1, 1]} : vector<2x22x16xf32> to vector<2x16x16xf32>
    %43 = vector.broadcast %41 : f32 to vector<2x16x16xf32>
    %44 = arith.mulf %43, %42 : vector<2x16x16xf32>
    %45 = arith.addf %40, %44 : vector<2x16x16xf32>
    %c28 = arith.constant 28 : index
    %46 = memref.load %arg2[%c28] : memref<98xf32, #tpu.memory_space<smem>>
    %47 = vector.extract_strided_slice %25 {offsets = [0, 4, 0], sizes = [2, 16, 16], strides = [1, 1, 1]} : vector<2x22x16xf32> to vector<2x16x16xf32>
    %48 = vector.broadcast %46 : f32 to vector<2x16x16xf32>
    %49 = arith.mulf %48, %47 : vector<2x16x16xf32>
    %50 = arith.addf %45, %49 : vector<2x16x16xf32>
    %c35 = arith.constant 35 : index
    %51 = memref.load %arg2[%c35] : memref<98xf32, #tpu.memory_space<smem>>
    %52 = vector.extract_strided_slice %25 {offsets = [0, 5, 0], sizes = [2, 16, 16], strides = [1, 1, 1]} : vector<2x22x16xf32> to vector<2x16x16xf32>
    %53 = vector.broadcast %51 : f32 to vector<2x16x16xf32>
    %54 = arith.mulf %53, %52 : vector<2x16x16xf32>
    %55 = arith.addf %50, %54 : vector<2x16x16xf32>
    %c42 = arith.constant 42 : index
    %56 = memref.load %arg2[%c42] : memref<98xf32, #tpu.memory_space<smem>>
    %57 = vector.extract_strided_slice %25 {offsets = [0, 6, 0], sizes = [2, 16, 16], strides = [1, 1, 1]} : vector<2x22x16xf32> to vector<2x16x16xf32>
    %58 = vector.broadcast %56 : f32 to vector<2x16x16xf32>
    %59 = arith.mulf %58, %57 : vector<2x16x16xf32>
    %60 = arith.addf %55, %59 : vector<2x16x16xf32>
    %61 = vector.extract_strided_slice %22 {offsets = [0, 0, 1], sizes = [2, 22, 16], strides = [1, 1, 1]} : vector<2x22x22xf32> to vector<2x22x16xf32>
    %c1_34 = arith.constant 1 : index
    %62 = memref.load %arg2[%c1_34] : memref<98xf32, #tpu.memory_space<smem>>
    %63 = vector.extract_strided_slice %61 {offsets = [0, 0, 0], sizes = [2, 16, 16], strides = [1, 1, 1]} : vector<2x22x16xf32> to vector<2x16x16xf32>
    %64 = vector.broadcast %62 : f32 to vector<2x16x16xf32>
    %65 = arith.mulf %64, %63 : vector<2x16x16xf32>
    %66 = arith.addf %60, %65 : vector<2x16x16xf32>
    %c8 = arith.constant 8 : index
    %67 = memref.load %arg2[%c8] : memref<98xf32, #tpu.memory_space<smem>>
    %68 = vector.extract_strided_slice %61 {offsets = [0, 1, 0], sizes = [2, 16, 16], strides = [1, 1, 1]} : vector<2x22x16xf32> to vector<2x16x16xf32>
    %69 = vector.broadcast %67 : f32 to vector<2x16x16xf32>
    %70 = arith.mulf %69, %68 : vector<2x16x16xf32>
    %71 = arith.addf %66, %70 : vector<2x16x16xf32>
    %c15 = arith.constant 15 : index
    %72 = memref.load %arg2[%c15] : memref<98xf32, #tpu.memory_space<smem>>
    %73 = vector.extract_strided_slice %61 {offsets = [0, 2, 0], sizes = [2, 16, 16], strides = [1, 1, 1]} : vector<2x22x16xf32> to vector<2x16x16xf32>
    %74 = vector.broadcast %72 : f32 to vector<2x16x16xf32>
    %75 = arith.mulf %74, %73 : vector<2x16x16xf32>
    %76 = arith.addf %71, %75 : vector<2x16x16xf32>
    %c22 = arith.constant 22 : index
    %77 = memref.load %arg2[%c22] : memref<98xf32, #tpu.memory_space<smem>>
    %78 = vector.extract_strided_slice %61 {offsets = [0, 3, 0], sizes = [2, 16, 16], strides = [1, 1, 1]} : vector<2x22x16xf32> to vector<2x16x16xf32>
    %79 = vector.broadcast %77 : f32 to vector<2x16x16xf32>
    %80 = arith.mulf %79, %78 : vector<2x16x16xf32>
    %81 = arith.addf %76, %80 : vector<2x16x16xf32>
    %c29 = arith.constant 29 : index
    %82 = memref.load %arg2[%c29] : memref<98xf32, #tpu.memory_space<smem>>
    %83 = vector.extract_strided_slice %61 {offsets = [0, 4, 0], sizes = [2, 16, 16], strides = [1, 1, 1]} : vector<2x22x16xf32> to vector<2x16x16xf32>
    %84 = vector.broadcast %82 : f32 to vector<2x16x16xf32>
    %85 = arith.mulf %84, %83 : vector<2x16x16xf32>
    %86 = arith.addf %81, %85 : vector<2x16x16xf32>
    %c36 = arith.constant 36 : index
    %87 = memref.load %arg2[%c36] : memref<98xf32, #tpu.memory_space<smem>>
    %88 = vector.extract_strided_slice %61 {offsets = [0, 5, 0], sizes = [2, 16, 16], strides = [1, 1, 1]} : vector<2x22x16xf32> to vector<2x16x16xf32>
    %89 = vector.broadcast %87 : f32 to vector<2x16x16xf32>
    %90 = arith.mulf %89, %88 : vector<2x16x16xf32>
    %91 = arith.addf %86, %90 : vector<2x16x16xf32>
    %c43 = arith.constant 43 : index
    %92 = memref.load %arg2[%c43] : memref<98xf32, #tpu.memory_space<smem>>
    %93 = vector.extract_strided_slice %61 {offsets = [0, 6, 0], sizes = [2, 16, 16], strides = [1, 1, 1]} : vector<2x22x16xf32> to vector<2x16x16xf32>
    %94 = vector.broadcast %92 : f32 to vector<2x16x16xf32>
    %95 = arith.mulf %94, %93 : vector<2x16x16xf32>
    %96 = arith.addf %91, %95 : vector<2x16x16xf32>
    %97 = vector.extract_strided_slice %22 {offsets = [0, 0, 2], sizes = [2, 22, 16], strides = [1, 1, 1]} : vector<2x22x22xf32> to vector<2x22x16xf32>
    %c2_35 = arith.constant 2 : index
    %98 = memref.load %arg2[%c2_35] : memref<98xf32, #tpu.memory_space<smem>>
    %99 = vector.extract_strided_slice %97 {offsets = [0, 0, 0], sizes = [2, 16, 16], strides = [1, 1, 1]} : vector<2x22x16xf32> to vector<2x16x16xf32>
    %100 = vector.broadcast %98 : f32 to vector<2x16x16xf32>
    %101 = arith.mulf %100, %99 : vector<2x16x16xf32>
    %102 = arith.addf %96, %101 : vector<2x16x16xf32>
    %c9 = arith.constant 9 : index
    %103 = memref.load %arg2[%c9] : memref<98xf32, #tpu.memory_space<smem>>
    %104 = vector.extract_strided_slice %97 {offsets = [0, 1, 0], sizes = [2, 16, 16], strides = [1, 1, 1]} : vector<2x22x16xf32> to vector<2x16x16xf32>
    %105 = vector.broadcast %103 : f32 to vector<2x16x16xf32>
    %106 = arith.mulf %105, %104 : vector<2x16x16xf32>
    %107 = arith.addf %102, %106 : vector<2x16x16xf32>
    %c16 = arith.constant 16 : index
    %108 = memref.load %arg2[%c16] : memref<98xf32, #tpu.memory_space<smem>>
    %109 = vector.extract_strided_slice %97 {offsets = [0, 2, 0], sizes = [2, 16, 16], strides = [1, 1, 1]} : vector<2x22x16xf32> to vector<2x16x16xf32>
    %110 = vector.broadcast %108 : f32 to vector<2x16x16xf32>
    %111 = arith.mulf %110, %109 : vector<2x16x16xf32>
    %112 = arith.addf %107, %111 : vector<2x16x16xf32>
    %c23 = arith.constant 23 : index
    %113 = memref.load %arg2[%c23] : memref<98xf32, #tpu.memory_space<smem>>
    %114 = vector.extract_strided_slice %97 {offsets = [0, 3, 0], sizes = [2, 16, 16], strides = [1, 1, 1]} : vector<2x22x16xf32> to vector<2x16x16xf32>
    %115 = vector.broadcast %113 : f32 to vector<2x16x16xf32>
    %116 = arith.mulf %115, %114 : vector<2x16x16xf32>
    %117 = arith.addf %112, %116 : vector<2x16x16xf32>
    %c30 = arith.constant 30 : index
    %118 = memref.load %arg2[%c30] : memref<98xf32, #tpu.memory_space<smem>>
    %119 = vector.extract_strided_slice %97 {offsets = [0, 4, 0], sizes = [2, 16, 16], strides = [1, 1, 1]} : vector<2x22x16xf32> to vector<2x16x16xf32>
    %120 = vector.broadcast %118 : f32 to vector<2x16x16xf32>
    %121 = arith.mulf %120, %119 : vector<2x16x16xf32>
    %122 = arith.addf %117, %121 : vector<2x16x16xf32>
    %c37 = arith.constant 37 : index
    %123 = memref.load %arg2[%c37] : memref<98xf32, #tpu.memory_space<smem>>
    %124 = vector.extract_strided_slice %97 {offsets = [0, 5, 0], sizes = [2, 16, 16], strides = [1, 1, 1]} : vector<2x22x16xf32> to vector<2x16x16xf32>
    %125 = vector.broadcast %123 : f32 to vector<2x16x16xf32>
    %126 = arith.mulf %125, %124 : vector<2x16x16xf32>
    %127 = arith.addf %122, %126 : vector<2x16x16xf32>
    %c44 = arith.constant 44 : index
    %128 = memref.load %arg2[%c44] : memref<98xf32, #tpu.memory_space<smem>>
    %129 = vector.extract_strided_slice %97 {offsets = [0, 6, 0], sizes = [2, 16, 16], strides = [1, 1, 1]} : vector<2x22x16xf32> to vector<2x16x16xf32>
    %130 = vector.broadcast %128 : f32 to vector<2x16x16xf32>
    %131 = arith.mulf %130, %129 : vector<2x16x16xf32>
    %132 = arith.addf %127, %131 : vector<2x16x16xf32>
    %133 = vector.extract_strided_slice %22 {offsets = [0, 0, 3], sizes = [2, 22, 16], strides = [1, 1, 1]} : vector<2x22x22xf32> to vector<2x22x16xf32>
    %c3_36 = arith.constant 3 : index
    %134 = memref.load %arg2[%c3_36] : memref<98xf32, #tpu.memory_space<smem>>
    %135 = vector.extract_strided_slice %133 {offsets = [0, 0, 0], sizes = [2, 16, 16], strides = [1, 1, 1]} : vector<2x22x16xf32> to vector<2x16x16xf32>
    %136 = vector.broadcast %134 : f32 to vector<2x16x16xf32>
    %137 = arith.mulf %136, %135 : vector<2x16x16xf32>
    %138 = arith.addf %132, %137 : vector<2x16x16xf32>
    %c10 = arith.constant 10 : index
    %139 = memref.load %arg2[%c10] : memref<98xf32, #tpu.memory_space<smem>>
    %140 = vector.extract_strided_slice %133 {offsets = [0, 1, 0], sizes = [2, 16, 16], strides = [1, 1, 1]} : vector<2x22x16xf32> to vector<2x16x16xf32>
    %141 = vector.broadcast %139 : f32 to vector<2x16x16xf32>
    %142 = arith.mulf %141, %140 : vector<2x16x16xf32>
    %143 = arith.addf %138, %142 : vector<2x16x16xf32>
    %c17 = arith.constant 17 : index
    %144 = memref.load %arg2[%c17] : memref<98xf32, #tpu.memory_space<smem>>
    %145 = vector.extract_strided_slice %133 {offsets = [0, 2, 0], sizes = [2, 16, 16], strides = [1, 1, 1]} : vector<2x22x16xf32> to vector<2x16x16xf32>
    %146 = vector.broadcast %144 : f32 to vector<2x16x16xf32>
    %147 = arith.mulf %146, %145 : vector<2x16x16xf32>
    %148 = arith.addf %143, %147 : vector<2x16x16xf32>
    %c24 = arith.constant 24 : index
    %149 = memref.load %arg2[%c24] : memref<98xf32, #tpu.memory_space<smem>>
    %150 = vector.extract_strided_slice %133 {offsets = [0, 3, 0], sizes = [2, 16, 16], strides = [1, 1, 1]} : vector<2x22x16xf32> to vector<2x16x16xf32>
    %151 = vector.broadcast %149 : f32 to vector<2x16x16xf32>
    %152 = arith.mulf %151, %150 : vector<2x16x16xf32>
    %153 = arith.addf %148, %152 : vector<2x16x16xf32>
    %c31 = arith.constant 31 : index
    %154 = memref.load %arg2[%c31] : memref<98xf32, #tpu.memory_space<smem>>
    %155 = vector.extract_strided_slice %133 {offsets = [0, 4, 0], sizes = [2, 16, 16], strides = [1, 1, 1]} : vector<2x22x16xf32> to vector<2x16x16xf32>
    %156 = vector.broadcast %154 : f32 to vector<2x16x16xf32>
    %157 = arith.mulf %156, %155 : vector<2x16x16xf32>
    %158 = arith.addf %153, %157 : vector<2x16x16xf32>
    %c38 = arith.constant 38 : index
    %159 = memref.load %arg2[%c38] : memref<98xf32, #tpu.memory_space<smem>>
    %160 = vector.extract_strided_slice %133 {offsets = [0, 5, 0], sizes = [2, 16, 16], strides = [1, 1, 1]} : vector<2x22x16xf32> to vector<2x16x16xf32>
    %161 = vector.broadcast %159 : f32 to vector<2x16x16xf32>
    %162 = arith.mulf %161, %160 : vector<2x16x16xf32>
    %163 = arith.addf %158, %162 : vector<2x16x16xf32>
    %c45 = arith.constant 45 : index
    %164 = memref.load %arg2[%c45] : memref<98xf32, #tpu.memory_space<smem>>
    %165 = vector.extract_strided_slice %133 {offsets = [0, 6, 0], sizes = [2, 16, 16], strides = [1, 1, 1]} : vector<2x22x16xf32> to vector<2x16x16xf32>
    %166 = vector.broadcast %164 : f32 to vector<2x16x16xf32>
    %167 = arith.mulf %166, %165 : vector<2x16x16xf32>
    %168 = arith.addf %163, %167 : vector<2x16x16xf32>
    %169 = vector.extract_strided_slice %22 {offsets = [0, 0, 4], sizes = [2, 22, 16], strides = [1, 1, 1]} : vector<2x22x22xf32> to vector<2x22x16xf32>
    %c4 = arith.constant 4 : index
    %170 = memref.load %arg2[%c4] : memref<98xf32, #tpu.memory_space<smem>>
    %171 = vector.extract_strided_slice %169 {offsets = [0, 0, 0], sizes = [2, 16, 16], strides = [1, 1, 1]} : vector<2x22x16xf32> to vector<2x16x16xf32>
    %172 = vector.broadcast %170 : f32 to vector<2x16x16xf32>
    %173 = arith.mulf %172, %171 : vector<2x16x16xf32>
    %174 = arith.addf %168, %173 : vector<2x16x16xf32>
    %c11 = arith.constant 11 : index
    %175 = memref.load %arg2[%c11] : memref<98xf32, #tpu.memory_space<smem>>
    %176 = vector.extract_strided_slice %169 {offsets = [0, 1, 0], sizes = [2, 16, 16], strides = [1, 1, 1]} : vector<2x22x16xf32> to vector<2x16x16xf32>
    %177 = vector.broadcast %175 : f32 to vector<2x16x16xf32>
    %178 = arith.mulf %177, %176 : vector<2x16x16xf32>
    %179 = arith.addf %174, %178 : vector<2x16x16xf32>
    %c18 = arith.constant 18 : index
    %180 = memref.load %arg2[%c18] : memref<98xf32, #tpu.memory_space<smem>>
    %181 = vector.extract_strided_slice %169 {offsets = [0, 2, 0], sizes = [2, 16, 16], strides = [1, 1, 1]} : vector<2x22x16xf32> to vector<2x16x16xf32>
    %182 = vector.broadcast %180 : f32 to vector<2x16x16xf32>
    %183 = arith.mulf %182, %181 : vector<2x16x16xf32>
    %184 = arith.addf %179, %183 : vector<2x16x16xf32>
    %c25 = arith.constant 25 : index
    %185 = memref.load %arg2[%c25] : memref<98xf32, #tpu.memory_space<smem>>
    %186 = vector.extract_strided_slice %169 {offsets = [0, 3, 0], sizes = [2, 16, 16], strides = [1, 1, 1]} : vector<2x22x16xf32> to vector<2x16x16xf32>
    %187 = vector.broadcast %185 : f32 to vector<2x16x16xf32>
    %188 = arith.mulf %187, %186 : vector<2x16x16xf32>
    %189 = arith.addf %184, %188 : vector<2x16x16xf32>
    %c32 = arith.constant 32 : index
    %190 = memref.load %arg2[%c32] : memref<98xf32, #tpu.memory_space<smem>>
    %191 = vector.extract_strided_slice %169 {offsets = [0, 4, 0], sizes = [2, 16, 16], strides = [1, 1, 1]} : vector<2x22x16xf32> to vector<2x16x16xf32>
    %192 = vector.broadcast %190 : f32 to vector<2x16x16xf32>
    %193 = arith.mulf %192, %191 : vector<2x16x16xf32>
    %194 = arith.addf %189, %193 : vector<2x16x16xf32>
    %c39 = arith.constant 39 : index
    %195 = memref.load %arg2[%c39] : memref<98xf32, #tpu.memory_space<smem>>
    %196 = vector.extract_strided_slice %169 {offsets = [0, 5, 0], sizes = [2, 16, 16], strides = [1, 1, 1]} : vector<2x22x16xf32> to vector<2x16x16xf32>
    %197 = vector.broadcast %195 : f32 to vector<2x16x16xf32>
    %198 = arith.mulf %197, %196 : vector<2x16x16xf32>
    %199 = arith.addf %194, %198 : vector<2x16x16xf32>
    %c46 = arith.constant 46 : index
    %200 = memref.load %arg2[%c46] : memref<98xf32, #tpu.memory_space<smem>>
    %201 = vector.extract_strided_slice %169 {offsets = [0, 6, 0], sizes = [2, 16, 16], strides = [1, 1, 1]} : vector<2x22x16xf32> to vector<2x16x16xf32>
    %202 = vector.broadcast %200 : f32 to vector<2x16x16xf32>
    %203 = arith.mulf %202, %201 : vector<2x16x16xf32>
    %204 = arith.addf %199, %203 : vector<2x16x16xf32>
    %205 = vector.extract_strided_slice %22 {offsets = [0, 0, 5], sizes = [2, 22, 16], strides = [1, 1, 1]} : vector<2x22x22xf32> to vector<2x22x16xf32>
    %c5 = arith.constant 5 : index
    %206 = memref.load %arg2[%c5] : memref<98xf32, #tpu.memory_space<smem>>
    %207 = vector.extract_strided_slice %205 {offsets = [0, 0, 0], sizes = [2, 16, 16], strides = [1, 1, 1]} : vector<2x22x16xf32> to vector<2x16x16xf32>
    %208 = vector.broadcast %206 : f32 to vector<2x16x16xf32>
    %209 = arith.mulf %208, %207 : vector<2x16x16xf32>
    %210 = arith.addf %204, %209 : vector<2x16x16xf32>
    %c12 = arith.constant 12 : index
    %211 = memref.load %arg2[%c12] : memref<98xf32, #tpu.memory_space<smem>>
    %212 = vector.extract_strided_slice %205 {offsets = [0, 1, 0], sizes = [2, 16, 16], strides = [1, 1, 1]} : vector<2x22x16xf32> to vector<2x16x16xf32>
    %213 = vector.broadcast %211 : f32 to vector<2x16x16xf32>
    %214 = arith.mulf %213, %212 : vector<2x16x16xf32>
    %215 = arith.addf %210, %214 : vector<2x16x16xf32>
    %c19 = arith.constant 19 : index
    %216 = memref.load %arg2[%c19] : memref<98xf32, #tpu.memory_space<smem>>
    %217 = vector.extract_strided_slice %205 {offsets = [0, 2, 0], sizes = [2, 16, 16], strides = [1, 1, 1]} : vector<2x22x16xf32> to vector<2x16x16xf32>
    %218 = vector.broadcast %216 : f32 to vector<2x16x16xf32>
    %219 = arith.mulf %218, %217 : vector<2x16x16xf32>
    %220 = arith.addf %215, %219 : vector<2x16x16xf32>
    %c26 = arith.constant 26 : index
    %221 = memref.load %arg2[%c26] : memref<98xf32, #tpu.memory_space<smem>>
    %222 = vector.extract_strided_slice %205 {offsets = [0, 3, 0], sizes = [2, 16, 16], strides = [1, 1, 1]} : vector<2x22x16xf32> to vector<2x16x16xf32>
    %223 = vector.broadcast %221 : f32 to vector<2x16x16xf32>
    %224 = arith.mulf %223, %222 : vector<2x16x16xf32>
    %225 = arith.addf %220, %224 : vector<2x16x16xf32>
    %c33 = arith.constant 33 : index
    %226 = memref.load %arg2[%c33] : memref<98xf32, #tpu.memory_space<smem>>
    %227 = vector.extract_strided_slice %205 {offsets = [0, 4, 0], sizes = [2, 16, 16], strides = [1, 1, 1]} : vector<2x22x16xf32> to vector<2x16x16xf32>
    %228 = vector.broadcast %226 : f32 to vector<2x16x16xf32>
    %229 = arith.mulf %228, %227 : vector<2x16x16xf32>
    %230 = arith.addf %225, %229 : vector<2x16x16xf32>
    %c40 = arith.constant 40 : index
    %231 = memref.load %arg2[%c40] : memref<98xf32, #tpu.memory_space<smem>>
    %232 = vector.extract_strided_slice %205 {offsets = [0, 5, 0], sizes = [2, 16, 16], strides = [1, 1, 1]} : vector<2x22x16xf32> to vector<2x16x16xf32>
    %233 = vector.broadcast %231 : f32 to vector<2x16x16xf32>
    %234 = arith.mulf %233, %232 : vector<2x16x16xf32>
    %235 = arith.addf %230, %234 : vector<2x16x16xf32>
    %c47 = arith.constant 47 : index
    %236 = memref.load %arg2[%c47] : memref<98xf32, #tpu.memory_space<smem>>
    %237 = vector.extract_strided_slice %205 {offsets = [0, 6, 0], sizes = [2, 16, 16], strides = [1, 1, 1]} : vector<2x22x16xf32> to vector<2x16x16xf32>
    %238 = vector.broadcast %236 : f32 to vector<2x16x16xf32>
    %239 = arith.mulf %238, %237 : vector<2x16x16xf32>
    %240 = arith.addf %235, %239 : vector<2x16x16xf32>
    %241 = vector.extract_strided_slice %22 {offsets = [0, 0, 6], sizes = [2, 22, 16], strides = [1, 1, 1]} : vector<2x22x22xf32> to vector<2x22x16xf32>
    %c6 = arith.constant 6 : index
    %242 = memref.load %arg2[%c6] : memref<98xf32, #tpu.memory_space<smem>>
    %243 = vector.extract_strided_slice %241 {offsets = [0, 0, 0], sizes = [2, 16, 16], strides = [1, 1, 1]} : vector<2x22x16xf32> to vector<2x16x16xf32>
    %244 = vector.broadcast %242 : f32 to vector<2x16x16xf32>
    %245 = arith.mulf %244, %243 : vector<2x16x16xf32>
    %246 = arith.addf %240, %245 : vector<2x16x16xf32>
    %c13 = arith.constant 13 : index
    %247 = memref.load %arg2[%c13] : memref<98xf32, #tpu.memory_space<smem>>
    %248 = vector.extract_strided_slice %241 {offsets = [0, 1, 0], sizes = [2, 16, 16], strides = [1, 1, 1]} : vector<2x22x16xf32> to vector<2x16x16xf32>
    %249 = vector.broadcast %247 : f32 to vector<2x16x16xf32>
    %250 = arith.mulf %249, %248 : vector<2x16x16xf32>
    %251 = arith.addf %246, %250 : vector<2x16x16xf32>
    %c20 = arith.constant 20 : index
    %252 = memref.load %arg2[%c20] : memref<98xf32, #tpu.memory_space<smem>>
    %253 = vector.extract_strided_slice %241 {offsets = [0, 2, 0], sizes = [2, 16, 16], strides = [1, 1, 1]} : vector<2x22x16xf32> to vector<2x16x16xf32>
    %254 = vector.broadcast %252 : f32 to vector<2x16x16xf32>
    %255 = arith.mulf %254, %253 : vector<2x16x16xf32>
    %256 = arith.addf %251, %255 : vector<2x16x16xf32>
    %c27 = arith.constant 27 : index
    %257 = memref.load %arg2[%c27] : memref<98xf32, #tpu.memory_space<smem>>
    %258 = vector.extract_strided_slice %241 {offsets = [0, 3, 0], sizes = [2, 16, 16], strides = [1, 1, 1]} : vector<2x22x16xf32> to vector<2x16x16xf32>
    %259 = vector.broadcast %257 : f32 to vector<2x16x16xf32>
    %260 = arith.mulf %259, %258 : vector<2x16x16xf32>
    %261 = arith.addf %256, %260 : vector<2x16x16xf32>
    %c34 = arith.constant 34 : index
    %262 = memref.load %arg2[%c34] : memref<98xf32, #tpu.memory_space<smem>>
    %263 = vector.extract_strided_slice %241 {offsets = [0, 4, 0], sizes = [2, 16, 16], strides = [1, 1, 1]} : vector<2x22x16xf32> to vector<2x16x16xf32>
    %264 = vector.broadcast %262 : f32 to vector<2x16x16xf32>
    %265 = arith.mulf %264, %263 : vector<2x16x16xf32>
    %266 = arith.addf %261, %265 : vector<2x16x16xf32>
    %c41 = arith.constant 41 : index
    %267 = memref.load %arg2[%c41] : memref<98xf32, #tpu.memory_space<smem>>
    %268 = vector.extract_strided_slice %241 {offsets = [0, 5, 0], sizes = [2, 16, 16], strides = [1, 1, 1]} : vector<2x22x16xf32> to vector<2x16x16xf32>
    %269 = vector.broadcast %267 : f32 to vector<2x16x16xf32>
    %270 = arith.mulf %269, %268 : vector<2x16x16xf32>
    %271 = arith.addf %266, %270 : vector<2x16x16xf32>
    %c48 = arith.constant 48 : index
    %272 = memref.load %arg2[%c48] : memref<98xf32, #tpu.memory_space<smem>>
    %273 = vector.extract_strided_slice %241 {offsets = [0, 6, 0], sizes = [2, 16, 16], strides = [1, 1, 1]} : vector<2x22x16xf32> to vector<2x16x16xf32>
    %274 = vector.broadcast %272 : f32 to vector<2x16x16xf32>
    %275 = arith.mulf %274, %273 : vector<2x16x16xf32>
    %276 = arith.addf %271, %275 : vector<2x16x16xf32>
    %277 = vector.extract_strided_slice %23 {offsets = [0, 0, 0], sizes = [2, 22, 16], strides = [1, 1, 1]} : vector<2x22x22xf32> to vector<2x22x16xf32>
    %c49 = arith.constant 49 : index
    %278 = memref.load %arg2[%c49] : memref<98xf32, #tpu.memory_space<smem>>
    %279 = vector.extract_strided_slice %277 {offsets = [0, 0, 0], sizes = [2, 16, 16], strides = [1, 1, 1]} : vector<2x22x16xf32> to vector<2x16x16xf32>
    %280 = vector.broadcast %278 : f32 to vector<2x16x16xf32>
    %281 = arith.mulf %280, %279 : vector<2x16x16xf32>
    %282 = arith.addf %276, %281 : vector<2x16x16xf32>
    %c56 = arith.constant 56 : index
    %283 = memref.load %arg2[%c56] : memref<98xf32, #tpu.memory_space<smem>>
    %284 = vector.extract_strided_slice %277 {offsets = [0, 1, 0], sizes = [2, 16, 16], strides = [1, 1, 1]} : vector<2x22x16xf32> to vector<2x16x16xf32>
    %285 = vector.broadcast %283 : f32 to vector<2x16x16xf32>
    %286 = arith.mulf %285, %284 : vector<2x16x16xf32>
    %287 = arith.addf %282, %286 : vector<2x16x16xf32>
    %c63 = arith.constant 63 : index
    %288 = memref.load %arg2[%c63] : memref<98xf32, #tpu.memory_space<smem>>
    %289 = vector.extract_strided_slice %277 {offsets = [0, 2, 0], sizes = [2, 16, 16], strides = [1, 1, 1]} : vector<2x22x16xf32> to vector<2x16x16xf32>
    %290 = vector.broadcast %288 : f32 to vector<2x16x16xf32>
    %291 = arith.mulf %290, %289 : vector<2x16x16xf32>
    %292 = arith.addf %287, %291 : vector<2x16x16xf32>
    %c70 = arith.constant 70 : index
    %293 = memref.load %arg2[%c70] : memref<98xf32, #tpu.memory_space<smem>>
    %294 = vector.extract_strided_slice %277 {offsets = [0, 3, 0], sizes = [2, 16, 16], strides = [1, 1, 1]} : vector<2x22x16xf32> to vector<2x16x16xf32>
    %295 = vector.broadcast %293 : f32 to vector<2x16x16xf32>
    %296 = arith.mulf %295, %294 : vector<2x16x16xf32>
    %297 = arith.addf %292, %296 : vector<2x16x16xf32>
    %c77 = arith.constant 77 : index
    %298 = memref.load %arg2[%c77] : memref<98xf32, #tpu.memory_space<smem>>
    %299 = vector.extract_strided_slice %277 {offsets = [0, 4, 0], sizes = [2, 16, 16], strides = [1, 1, 1]} : vector<2x22x16xf32> to vector<2x16x16xf32>
    %300 = vector.broadcast %298 : f32 to vector<2x16x16xf32>
    %301 = arith.mulf %300, %299 : vector<2x16x16xf32>
    %302 = arith.addf %297, %301 : vector<2x16x16xf32>
    %c84 = arith.constant 84 : index
    %303 = memref.load %arg2[%c84] : memref<98xf32, #tpu.memory_space<smem>>
    %304 = vector.extract_strided_slice %277 {offsets = [0, 5, 0], sizes = [2, 16, 16], strides = [1, 1, 1]} : vector<2x22x16xf32> to vector<2x16x16xf32>
    %305 = vector.broadcast %303 : f32 to vector<2x16x16xf32>
    %306 = arith.mulf %305, %304 : vector<2x16x16xf32>
    %307 = arith.addf %302, %306 : vector<2x16x16xf32>
    %c91 = arith.constant 91 : index
    %308 = memref.load %arg2[%c91] : memref<98xf32, #tpu.memory_space<smem>>
    %309 = vector.extract_strided_slice %277 {offsets = [0, 6, 0], sizes = [2, 16, 16], strides = [1, 1, 1]} : vector<2x22x16xf32> to vector<2x16x16xf32>
    %310 = vector.broadcast %308 : f32 to vector<2x16x16xf32>
    %311 = arith.mulf %310, %309 : vector<2x16x16xf32>
    %312 = arith.addf %307, %311 : vector<2x16x16xf32>
    %313 = vector.extract_strided_slice %23 {offsets = [0, 0, 1], sizes = [2, 22, 16], strides = [1, 1, 1]} : vector<2x22x22xf32> to vector<2x22x16xf32>
    %c50 = arith.constant 50 : index
    %314 = memref.load %arg2[%c50] : memref<98xf32, #tpu.memory_space<smem>>
    %315 = vector.extract_strided_slice %313 {offsets = [0, 0, 0], sizes = [2, 16, 16], strides = [1, 1, 1]} : vector<2x22x16xf32> to vector<2x16x16xf32>
    %316 = vector.broadcast %314 : f32 to vector<2x16x16xf32>
    %317 = arith.mulf %316, %315 : vector<2x16x16xf32>
    %318 = arith.addf %312, %317 : vector<2x16x16xf32>
    %c57 = arith.constant 57 : index
    %319 = memref.load %arg2[%c57] : memref<98xf32, #tpu.memory_space<smem>>
    %320 = vector.extract_strided_slice %313 {offsets = [0, 1, 0], sizes = [2, 16, 16], strides = [1, 1, 1]} : vector<2x22x16xf32> to vector<2x16x16xf32>
    %321 = vector.broadcast %319 : f32 to vector<2x16x16xf32>
    %322 = arith.mulf %321, %320 : vector<2x16x16xf32>
    %323 = arith.addf %318, %322 : vector<2x16x16xf32>
    %c64 = arith.constant 64 : index
    %324 = memref.load %arg2[%c64] : memref<98xf32, #tpu.memory_space<smem>>
    %325 = vector.extract_strided_slice %313 {offsets = [0, 2, 0], sizes = [2, 16, 16], strides = [1, 1, 1]} : vector<2x22x16xf32> to vector<2x16x16xf32>
    %326 = vector.broadcast %324 : f32 to vector<2x16x16xf32>
    %327 = arith.mulf %326, %325 : vector<2x16x16xf32>
    %328 = arith.addf %323, %327 : vector<2x16x16xf32>
    %c71 = arith.constant 71 : index
    %329 = memref.load %arg2[%c71] : memref<98xf32, #tpu.memory_space<smem>>
    %330 = vector.extract_strided_slice %313 {offsets = [0, 3, 0], sizes = [2, 16, 16], strides = [1, 1, 1]} : vector<2x22x16xf32> to vector<2x16x16xf32>
    %331 = vector.broadcast %329 : f32 to vector<2x16x16xf32>
    %332 = arith.mulf %331, %330 : vector<2x16x16xf32>
    %333 = arith.addf %328, %332 : vector<2x16x16xf32>
    %c78 = arith.constant 78 : index
    %334 = memref.load %arg2[%c78] : memref<98xf32, #tpu.memory_space<smem>>
    %335 = vector.extract_strided_slice %313 {offsets = [0, 4, 0], sizes = [2, 16, 16], strides = [1, 1, 1]} : vector<2x22x16xf32> to vector<2x16x16xf32>
    %336 = vector.broadcast %334 : f32 to vector<2x16x16xf32>
    %337 = arith.mulf %336, %335 : vector<2x16x16xf32>
    %338 = arith.addf %333, %337 : vector<2x16x16xf32>
    %c85 = arith.constant 85 : index
    %339 = memref.load %arg2[%c85] : memref<98xf32, #tpu.memory_space<smem>>
    %340 = vector.extract_strided_slice %313 {offsets = [0, 5, 0], sizes = [2, 16, 16], strides = [1, 1, 1]} : vector<2x22x16xf32> to vector<2x16x16xf32>
    %341 = vector.broadcast %339 : f32 to vector<2x16x16xf32>
    %342 = arith.mulf %341, %340 : vector<2x16x16xf32>
    %343 = arith.addf %338, %342 : vector<2x16x16xf32>
    %c92 = arith.constant 92 : index
    %344 = memref.load %arg2[%c92] : memref<98xf32, #tpu.memory_space<smem>>
    %345 = vector.extract_strided_slice %313 {offsets = [0, 6, 0], sizes = [2, 16, 16], strides = [1, 1, 1]} : vector<2x22x16xf32> to vector<2x16x16xf32>
    %346 = vector.broadcast %344 : f32 to vector<2x16x16xf32>
    %347 = arith.mulf %346, %345 : vector<2x16x16xf32>
    %348 = arith.addf %343, %347 : vector<2x16x16xf32>
    %349 = vector.extract_strided_slice %23 {offsets = [0, 0, 2], sizes = [2, 22, 16], strides = [1, 1, 1]} : vector<2x22x22xf32> to vector<2x22x16xf32>
    %c51 = arith.constant 51 : index
    %350 = memref.load %arg2[%c51] : memref<98xf32, #tpu.memory_space<smem>>
    %351 = vector.extract_strided_slice %349 {offsets = [0, 0, 0], sizes = [2, 16, 16], strides = [1, 1, 1]} : vector<2x22x16xf32> to vector<2x16x16xf32>
    %352 = vector.broadcast %350 : f32 to vector<2x16x16xf32>
    %353 = arith.mulf %352, %351 : vector<2x16x16xf32>
    %354 = arith.addf %348, %353 : vector<2x16x16xf32>
    %c58 = arith.constant 58 : index
    %355 = memref.load %arg2[%c58] : memref<98xf32, #tpu.memory_space<smem>>
    %356 = vector.extract_strided_slice %349 {offsets = [0, 1, 0], sizes = [2, 16, 16], strides = [1, 1, 1]} : vector<2x22x16xf32> to vector<2x16x16xf32>
    %357 = vector.broadcast %355 : f32 to vector<2x16x16xf32>
    %358 = arith.mulf %357, %356 : vector<2x16x16xf32>
    %359 = arith.addf %354, %358 : vector<2x16x16xf32>
    %c65 = arith.constant 65 : index
    %360 = memref.load %arg2[%c65] : memref<98xf32, #tpu.memory_space<smem>>
    %361 = vector.extract_strided_slice %349 {offsets = [0, 2, 0], sizes = [2, 16, 16], strides = [1, 1, 1]} : vector<2x22x16xf32> to vector<2x16x16xf32>
    %362 = vector.broadcast %360 : f32 to vector<2x16x16xf32>
    %363 = arith.mulf %362, %361 : vector<2x16x16xf32>
    %364 = arith.addf %359, %363 : vector<2x16x16xf32>
    %c72 = arith.constant 72 : index
    %365 = memref.load %arg2[%c72] : memref<98xf32, #tpu.memory_space<smem>>
    %366 = vector.extract_strided_slice %349 {offsets = [0, 3, 0], sizes = [2, 16, 16], strides = [1, 1, 1]} : vector<2x22x16xf32> to vector<2x16x16xf32>
    %367 = vector.broadcast %365 : f32 to vector<2x16x16xf32>
    %368 = arith.mulf %367, %366 : vector<2x16x16xf32>
    %369 = arith.addf %364, %368 : vector<2x16x16xf32>
    %c79 = arith.constant 79 : index
    %370 = memref.load %arg2[%c79] : memref<98xf32, #tpu.memory_space<smem>>
    %371 = vector.extract_strided_slice %349 {offsets = [0, 4, 0], sizes = [2, 16, 16], strides = [1, 1, 1]} : vector<2x22x16xf32> to vector<2x16x16xf32>
    %372 = vector.broadcast %370 : f32 to vector<2x16x16xf32>
    %373 = arith.mulf %372, %371 : vector<2x16x16xf32>
    %374 = arith.addf %369, %373 : vector<2x16x16xf32>
    %c86 = arith.constant 86 : index
    %375 = memref.load %arg2[%c86] : memref<98xf32, #tpu.memory_space<smem>>
    %376 = vector.extract_strided_slice %349 {offsets = [0, 5, 0], sizes = [2, 16, 16], strides = [1, 1, 1]} : vector<2x22x16xf32> to vector<2x16x16xf32>
    %377 = vector.broadcast %375 : f32 to vector<2x16x16xf32>
    %378 = arith.mulf %377, %376 : vector<2x16x16xf32>
    %379 = arith.addf %374, %378 : vector<2x16x16xf32>
    %c93 = arith.constant 93 : index
    %380 = memref.load %arg2[%c93] : memref<98xf32, #tpu.memory_space<smem>>
    %381 = vector.extract_strided_slice %349 {offsets = [0, 6, 0], sizes = [2, 16, 16], strides = [1, 1, 1]} : vector<2x22x16xf32> to vector<2x16x16xf32>
    %382 = vector.broadcast %380 : f32 to vector<2x16x16xf32>
    %383 = arith.mulf %382, %381 : vector<2x16x16xf32>
    %384 = arith.addf %379, %383 : vector<2x16x16xf32>
    %385 = vector.extract_strided_slice %23 {offsets = [0, 0, 3], sizes = [2, 22, 16], strides = [1, 1, 1]} : vector<2x22x22xf32> to vector<2x22x16xf32>
    %c52 = arith.constant 52 : index
    %386 = memref.load %arg2[%c52] : memref<98xf32, #tpu.memory_space<smem>>
    %387 = vector.extract_strided_slice %385 {offsets = [0, 0, 0], sizes = [2, 16, 16], strides = [1, 1, 1]} : vector<2x22x16xf32> to vector<2x16x16xf32>
    %388 = vector.broadcast %386 : f32 to vector<2x16x16xf32>
    %389 = arith.mulf %388, %387 : vector<2x16x16xf32>
    %390 = arith.addf %384, %389 : vector<2x16x16xf32>
    %c59 = arith.constant 59 : index
    %391 = memref.load %arg2[%c59] : memref<98xf32, #tpu.memory_space<smem>>
    %392 = vector.extract_strided_slice %385 {offsets = [0, 1, 0], sizes = [2, 16, 16], strides = [1, 1, 1]} : vector<2x22x16xf32> to vector<2x16x16xf32>
    %393 = vector.broadcast %391 : f32 to vector<2x16x16xf32>
    %394 = arith.mulf %393, %392 : vector<2x16x16xf32>
    %395 = arith.addf %390, %394 : vector<2x16x16xf32>
    %c66 = arith.constant 66 : index
    %396 = memref.load %arg2[%c66] : memref<98xf32, #tpu.memory_space<smem>>
    %397 = vector.extract_strided_slice %385 {offsets = [0, 2, 0], sizes = [2, 16, 16], strides = [1, 1, 1]} : vector<2x22x16xf32> to vector<2x16x16xf32>
    %398 = vector.broadcast %396 : f32 to vector<2x16x16xf32>
    %399 = arith.mulf %398, %397 : vector<2x16x16xf32>
    %400 = arith.addf %395, %399 : vector<2x16x16xf32>
    %c73 = arith.constant 73 : index
    %401 = memref.load %arg2[%c73] : memref<98xf32, #tpu.memory_space<smem>>
    %402 = vector.extract_strided_slice %385 {offsets = [0, 3, 0], sizes = [2, 16, 16], strides = [1, 1, 1]} : vector<2x22x16xf32> to vector<2x16x16xf32>
    %403 = vector.broadcast %401 : f32 to vector<2x16x16xf32>
    %404 = arith.mulf %403, %402 : vector<2x16x16xf32>
    %405 = arith.addf %400, %404 : vector<2x16x16xf32>
    %c80 = arith.constant 80 : index
    %406 = memref.load %arg2[%c80] : memref<98xf32, #tpu.memory_space<smem>>
    %407 = vector.extract_strided_slice %385 {offsets = [0, 4, 0], sizes = [2, 16, 16], strides = [1, 1, 1]} : vector<2x22x16xf32> to vector<2x16x16xf32>
    %408 = vector.broadcast %406 : f32 to vector<2x16x16xf32>
    %409 = arith.mulf %408, %407 : vector<2x16x16xf32>
    %410 = arith.addf %405, %409 : vector<2x16x16xf32>
    %c87 = arith.constant 87 : index
    %411 = memref.load %arg2[%c87] : memref<98xf32, #tpu.memory_space<smem>>
    %412 = vector.extract_strided_slice %385 {offsets = [0, 5, 0], sizes = [2, 16, 16], strides = [1, 1, 1]} : vector<2x22x16xf32> to vector<2x16x16xf32>
    %413 = vector.broadcast %411 : f32 to vector<2x16x16xf32>
    %414 = arith.mulf %413, %412 : vector<2x16x16xf32>
    %415 = arith.addf %410, %414 : vector<2x16x16xf32>
    %c94 = arith.constant 94 : index
    %416 = memref.load %arg2[%c94] : memref<98xf32, #tpu.memory_space<smem>>
    %417 = vector.extract_strided_slice %385 {offsets = [0, 6, 0], sizes = [2, 16, 16], strides = [1, 1, 1]} : vector<2x22x16xf32> to vector<2x16x16xf32>
    %418 = vector.broadcast %416 : f32 to vector<2x16x16xf32>
    %419 = arith.mulf %418, %417 : vector<2x16x16xf32>
    %420 = arith.addf %415, %419 : vector<2x16x16xf32>
    %421 = vector.extract_strided_slice %23 {offsets = [0, 0, 4], sizes = [2, 22, 16], strides = [1, 1, 1]} : vector<2x22x22xf32> to vector<2x22x16xf32>
    %c53 = arith.constant 53 : index
    %422 = memref.load %arg2[%c53] : memref<98xf32, #tpu.memory_space<smem>>
    %423 = vector.extract_strided_slice %421 {offsets = [0, 0, 0], sizes = [2, 16, 16], strides = [1, 1, 1]} : vector<2x22x16xf32> to vector<2x16x16xf32>
    %424 = vector.broadcast %422 : f32 to vector<2x16x16xf32>
    %425 = arith.mulf %424, %423 : vector<2x16x16xf32>
    %426 = arith.addf %420, %425 : vector<2x16x16xf32>
    %c60 = arith.constant 60 : index
    %427 = memref.load %arg2[%c60] : memref<98xf32, #tpu.memory_space<smem>>
    %428 = vector.extract_strided_slice %421 {offsets = [0, 1, 0], sizes = [2, 16, 16], strides = [1, 1, 1]} : vector<2x22x16xf32> to vector<2x16x16xf32>
    %429 = vector.broadcast %427 : f32 to vector<2x16x16xf32>
    %430 = arith.mulf %429, %428 : vector<2x16x16xf32>
    %431 = arith.addf %426, %430 : vector<2x16x16xf32>
    %c67 = arith.constant 67 : index
    %432 = memref.load %arg2[%c67] : memref<98xf32, #tpu.memory_space<smem>>
    %433 = vector.extract_strided_slice %421 {offsets = [0, 2, 0], sizes = [2, 16, 16], strides = [1, 1, 1]} : vector<2x22x16xf32> to vector<2x16x16xf32>
    %434 = vector.broadcast %432 : f32 to vector<2x16x16xf32>
    %435 = arith.mulf %434, %433 : vector<2x16x16xf32>
    %436 = arith.addf %431, %435 : vector<2x16x16xf32>
    %c74 = arith.constant 74 : index
    %437 = memref.load %arg2[%c74] : memref<98xf32, #tpu.memory_space<smem>>
    %438 = vector.extract_strided_slice %421 {offsets = [0, 3, 0], sizes = [2, 16, 16], strides = [1, 1, 1]} : vector<2x22x16xf32> to vector<2x16x16xf32>
    %439 = vector.broadcast %437 : f32 to vector<2x16x16xf32>
    %440 = arith.mulf %439, %438 : vector<2x16x16xf32>
    %441 = arith.addf %436, %440 : vector<2x16x16xf32>
    %c81 = arith.constant 81 : index
    %442 = memref.load %arg2[%c81] : memref<98xf32, #tpu.memory_space<smem>>
    %443 = vector.extract_strided_slice %421 {offsets = [0, 4, 0], sizes = [2, 16, 16], strides = [1, 1, 1]} : vector<2x22x16xf32> to vector<2x16x16xf32>
    %444 = vector.broadcast %442 : f32 to vector<2x16x16xf32>
    %445 = arith.mulf %444, %443 : vector<2x16x16xf32>
    %446 = arith.addf %441, %445 : vector<2x16x16xf32>
    %c88 = arith.constant 88 : index
    %447 = memref.load %arg2[%c88] : memref<98xf32, #tpu.memory_space<smem>>
    %448 = vector.extract_strided_slice %421 {offsets = [0, 5, 0], sizes = [2, 16, 16], strides = [1, 1, 1]} : vector<2x22x16xf32> to vector<2x16x16xf32>
    %449 = vector.broadcast %447 : f32 to vector<2x16x16xf32>
    %450 = arith.mulf %449, %448 : vector<2x16x16xf32>
    %451 = arith.addf %446, %450 : vector<2x16x16xf32>
    %c95 = arith.constant 95 : index
    %452 = memref.load %arg2[%c95] : memref<98xf32, #tpu.memory_space<smem>>
    %453 = vector.extract_strided_slice %421 {offsets = [0, 6, 0], sizes = [2, 16, 16], strides = [1, 1, 1]} : vector<2x22x16xf32> to vector<2x16x16xf32>
    %454 = vector.broadcast %452 : f32 to vector<2x16x16xf32>
    %455 = arith.mulf %454, %453 : vector<2x16x16xf32>
    %456 = arith.addf %451, %455 : vector<2x16x16xf32>
    %457 = vector.extract_strided_slice %23 {offsets = [0, 0, 5], sizes = [2, 22, 16], strides = [1, 1, 1]} : vector<2x22x22xf32> to vector<2x22x16xf32>
    %c54 = arith.constant 54 : index
    %458 = memref.load %arg2[%c54] : memref<98xf32, #tpu.memory_space<smem>>
    %459 = vector.extract_strided_slice %457 {offsets = [0, 0, 0], sizes = [2, 16, 16], strides = [1, 1, 1]} : vector<2x22x16xf32> to vector<2x16x16xf32>
    %460 = vector.broadcast %458 : f32 to vector<2x16x16xf32>
    %461 = arith.mulf %460, %459 : vector<2x16x16xf32>
    %462 = arith.addf %456, %461 : vector<2x16x16xf32>
    %c61 = arith.constant 61 : index
    %463 = memref.load %arg2[%c61] : memref<98xf32, #tpu.memory_space<smem>>
    %464 = vector.extract_strided_slice %457 {offsets = [0, 1, 0], sizes = [2, 16, 16], strides = [1, 1, 1]} : vector<2x22x16xf32> to vector<2x16x16xf32>
    %465 = vector.broadcast %463 : f32 to vector<2x16x16xf32>
    %466 = arith.mulf %465, %464 : vector<2x16x16xf32>
    %467 = arith.addf %462, %466 : vector<2x16x16xf32>
    %c68 = arith.constant 68 : index
    %468 = memref.load %arg2[%c68] : memref<98xf32, #tpu.memory_space<smem>>
    %469 = vector.extract_strided_slice %457 {offsets = [0, 2, 0], sizes = [2, 16, 16], strides = [1, 1, 1]} : vector<2x22x16xf32> to vector<2x16x16xf32>
    %470 = vector.broadcast %468 : f32 to vector<2x16x16xf32>
    %471 = arith.mulf %470, %469 : vector<2x16x16xf32>
    %472 = arith.addf %467, %471 : vector<2x16x16xf32>
    %c75 = arith.constant 75 : index
    %473 = memref.load %arg2[%c75] : memref<98xf32, #tpu.memory_space<smem>>
    %474 = vector.extract_strided_slice %457 {offsets = [0, 3, 0], sizes = [2, 16, 16], strides = [1, 1, 1]} : vector<2x22x16xf32> to vector<2x16x16xf32>
    %475 = vector.broadcast %473 : f32 to vector<2x16x16xf32>
    %476 = arith.mulf %475, %474 : vector<2x16x16xf32>
    %477 = arith.addf %472, %476 : vector<2x16x16xf32>
    %c82 = arith.constant 82 : index
    %478 = memref.load %arg2[%c82] : memref<98xf32, #tpu.memory_space<smem>>
    %479 = vector.extract_strided_slice %457 {offsets = [0, 4, 0], sizes = [2, 16, 16], strides = [1, 1, 1]} : vector<2x22x16xf32> to vector<2x16x16xf32>
    %480 = vector.broadcast %478 : f32 to vector<2x16x16xf32>
    %481 = arith.mulf %480, %479 : vector<2x16x16xf32>
    %482 = arith.addf %477, %481 : vector<2x16x16xf32>
    %c89 = arith.constant 89 : index
    %483 = memref.load %arg2[%c89] : memref<98xf32, #tpu.memory_space<smem>>
    %484 = vector.extract_strided_slice %457 {offsets = [0, 5, 0], sizes = [2, 16, 16], strides = [1, 1, 1]} : vector<2x22x16xf32> to vector<2x16x16xf32>
    %485 = vector.broadcast %483 : f32 to vector<2x16x16xf32>
    %486 = arith.mulf %485, %484 : vector<2x16x16xf32>
    %487 = arith.addf %482, %486 : vector<2x16x16xf32>
    %c96 = arith.constant 96 : index
    %488 = memref.load %arg2[%c96] : memref<98xf32, #tpu.memory_space<smem>>
    %489 = vector.extract_strided_slice %457 {offsets = [0, 6, 0], sizes = [2, 16, 16], strides = [1, 1, 1]} : vector<2x22x16xf32> to vector<2x16x16xf32>
    %490 = vector.broadcast %488 : f32 to vector<2x16x16xf32>
    %491 = arith.mulf %490, %489 : vector<2x16x16xf32>
    %492 = arith.addf %487, %491 : vector<2x16x16xf32>
    %493 = vector.extract_strided_slice %23 {offsets = [0, 0, 6], sizes = [2, 22, 16], strides = [1, 1, 1]} : vector<2x22x22xf32> to vector<2x22x16xf32>
    %c55 = arith.constant 55 : index
    %494 = memref.load %arg2[%c55] : memref<98xf32, #tpu.memory_space<smem>>
    %495 = vector.extract_strided_slice %493 {offsets = [0, 0, 0], sizes = [2, 16, 16], strides = [1, 1, 1]} : vector<2x22x16xf32> to vector<2x16x16xf32>
    %496 = vector.broadcast %494 : f32 to vector<2x16x16xf32>
    %497 = arith.mulf %496, %495 : vector<2x16x16xf32>
    %498 = arith.addf %492, %497 : vector<2x16x16xf32>
    %c62 = arith.constant 62 : index
    %499 = memref.load %arg2[%c62] : memref<98xf32, #tpu.memory_space<smem>>
    %500 = vector.extract_strided_slice %493 {offsets = [0, 1, 0], sizes = [2, 16, 16], strides = [1, 1, 1]} : vector<2x22x16xf32> to vector<2x16x16xf32>
    %501 = vector.broadcast %499 : f32 to vector<2x16x16xf32>
    %502 = arith.mulf %501, %500 : vector<2x16x16xf32>
    %503 = arith.addf %498, %502 : vector<2x16x16xf32>
    %c69 = arith.constant 69 : index
    %504 = memref.load %arg2[%c69] : memref<98xf32, #tpu.memory_space<smem>>
    %505 = vector.extract_strided_slice %493 {offsets = [0, 2, 0], sizes = [2, 16, 16], strides = [1, 1, 1]} : vector<2x22x16xf32> to vector<2x16x16xf32>
    %506 = vector.broadcast %504 : f32 to vector<2x16x16xf32>
    %507 = arith.mulf %506, %505 : vector<2x16x16xf32>
    %508 = arith.addf %503, %507 : vector<2x16x16xf32>
    %c76 = arith.constant 76 : index
    %509 = memref.load %arg2[%c76] : memref<98xf32, #tpu.memory_space<smem>>
    %510 = vector.extract_strided_slice %493 {offsets = [0, 3, 0], sizes = [2, 16, 16], strides = [1, 1, 1]} : vector<2x22x16xf32> to vector<2x16x16xf32>
    %511 = vector.broadcast %509 : f32 to vector<2x16x16xf32>
    %512 = arith.mulf %511, %510 : vector<2x16x16xf32>
    %513 = arith.addf %508, %512 : vector<2x16x16xf32>
    %c83 = arith.constant 83 : index
    %514 = memref.load %arg2[%c83] : memref<98xf32, #tpu.memory_space<smem>>
    %515 = vector.extract_strided_slice %493 {offsets = [0, 4, 0], sizes = [2, 16, 16], strides = [1, 1, 1]} : vector<2x22x16xf32> to vector<2x16x16xf32>
    %516 = vector.broadcast %514 : f32 to vector<2x16x16xf32>
    %517 = arith.mulf %516, %515 : vector<2x16x16xf32>
    %518 = arith.addf %513, %517 : vector<2x16x16xf32>
    %c90 = arith.constant 90 : index
    %519 = memref.load %arg2[%c90] : memref<98xf32, #tpu.memory_space<smem>>
    %520 = vector.extract_strided_slice %493 {offsets = [0, 5, 0], sizes = [2, 16, 16], strides = [1, 1, 1]} : vector<2x22x16xf32> to vector<2x16x16xf32>
    %521 = vector.broadcast %519 : f32 to vector<2x16x16xf32>
    %522 = arith.mulf %521, %520 : vector<2x16x16xf32>
    %523 = arith.addf %518, %522 : vector<2x16x16xf32>
    %c97 = arith.constant 97 : index
    %524 = memref.load %arg2[%c97] : memref<98xf32, #tpu.memory_space<smem>>
    %525 = vector.extract_strided_slice %493 {offsets = [0, 6, 0], sizes = [2, 16, 16], strides = [1, 1, 1]} : vector<2x22x16xf32> to vector<2x16x16xf32>
    %526 = vector.broadcast %524 : f32 to vector<2x16x16xf32>
    %527 = arith.mulf %526, %525 : vector<2x16x16xf32>
    %528 = arith.addf %523, %527 : vector<2x16x16xf32>
    %cst_37 = arith.constant 0.000000e+00 : f32
    %529 = vector.broadcast %cst_37 : f32 to vector<2x16x16xf32>
    %530 = arith.subf %529, %528 : vector<2x16x16xf32>
    %531 = math.exp %530 : vector<2x16x16xf32>
    %cst_38 = arith.constant 1.000000e+00 : f32
    %532 = vector.broadcast %cst_38 : f32 to vector<2x16x16xf32>
    %533 = arith.addf %532, %531 : vector<2x16x16xf32>
    %cst_39 = arith.constant 1.000000e+00 : f32
    %534 = vector.broadcast %cst_39 : f32 to vector<2x16x16xf32>
    %535 = arith.divf %534, %533 : vector<2x16x16xf32>
    %c0_40 = arith.constant 0 : index
    %c0_41 = arith.constant 0 : index
    %c0_42 = arith.constant 0 : index
    %536 = vector.load %arg3[%c0_40, %c0_41, %c0_42] : memref<2x16x16xf32, #tpu.memory_space<vmem>>, vector<2x16x16xf32>
    tpu.vector_store %arg3[%c0_40, %c0_41, %c0_42], %535 {strides = array<i32>} : memref<2x16x16xf32, #tpu.memory_space<vmem>>, vector<2x16x16xf32>,
    return
  }
  func.func @transform_0(%arg0: i32) -> (i32, i32, i32, i32) {
    %c0_i32 = arith.constant 0 : i32
    %c0_i32_0 = arith.constant 0 : i32
    %c0_i32_1 = arith.constant 0 : i32
    %c0_i32_2 = arith.constant 0 : i32
    return %arg0, %c0_i32, %c0_i32_0, %c0_i32_1 : i32, i32, i32, i32
  }
  func.func @transform_1(%arg0: i32) -> i32 {
    %c0_i32 = arith.constant 0 : i32
    %c0_i32_0 = arith.constant 0 : i32
    return %c0_i32 : i32
  }
  func.func @transform_2(%arg0: i32) -> (i32, i32, i32) {
    %c0_i32 = arith.constant 0 : i32
    %c0_i32_0 = arith.constant 0 : i32
    %c0_i32_1 = arith.constant 0 : i32
    return %arg0, %c0_i32, %c0_i32_0 : i32, i32, i32
  }
}

</mosaic_0001>

<bundles_post_ra>
// kernel: spatial_attention_forward.1
= control target key start
LH: loop header
LB: loop body
LE: loop exit
PB: predicated region body
PF: predicated region fallthrough
CT: control target
= control target key end

     0   :  { %7 = vsyncpa [#allocation5], 0  ;;  %s6674_s0 = inlined_call_operand.hbm [shape: f32[2,4,16,16], index: 0, kind: input, shape index: {}]   ;;  %s6675_s1 = inlined_call_operand.vmem [shape: f32[98], index: 1, kind: input, shape index: {}]   ;;  %s6676_s2 = inlined_call_operand.hbm [shape: f32[2,16,16], index: 2, kind: output, shape index: {}]  }
   0x1   :  { %8 = vsyncpa [#allocation7], 0 }
   0x2   :  { %9 = vsyncpa [#allocation6], 0  ;;  %s4009_s9 = smov [#allocation4]   ;;  %s28_s13 = sshll.u32 %s6675_s1, 4  ;;  %s29_s13 = int_to_ptr.vmem [resolvable:$true] %s28_s13 }
   0x3   :  { %s15_s10 = sshll.u32 %s4009_s9, 4  ;;  %s16_s10 = int_to_ptr.vmem [resolvable:$true] %s15_s10 }
   0x4   :  { %s3959_s14 = scalar_lea.vmem %s16_s10, 2048  ;;  %p3964_p1 = scmp.lt.s32.totalorder %s16_s10, %s16_s10 }
   0x5   :  { %p3960_p0 = scmp.ne.s32.totalorder %s16_s10, %s3959_s14  ;;  %p3965_p2 = scmp.lt.s32.totalorder %s3959_s14, %s3959_s14 }
   0x7   :  { %p3966_p3 = por %p3965_p2, %p3964_p1 }
   0x9   :  { %p3967_p4 = pnand %p3966_p3, %p3960_p0 }
   0xb   :  { %3970 = shalt.err (!%p3967_p4)
}
   0xc   :  { %s4010_s15 = smov 128   ;;  %s4011_s16 = smov 8  }
   0xd   :  { %21 = dma.hbm_to_vmem [thread:$0]  %s6674_s0, 2048, %s16_s10, [#allocation5], %s4010_s15, %s4010_s15, %s4011_s16  }
   0xe   :  { %s3971_s19 = scalar_lea.vmem %s29_s13, 16  ;;  %p3976_p6 = scmp.lt.s32.totalorder %s29_s13, %s29_s13 }
   0xf   :  { %p3972_p5 = scmp.ne.s32.totalorder %s29_s13, %s3971_s19  ;;  %p3977_p7 = scmp.lt.s32.totalorder %s3971_s19, %s3971_s19 }
  0x11   :  { %p3978_p8 = por %p3977_p7, %p3976_p6 }
  0x13   :  { %p3979_p9 = pnand %p3978_p8, %p3972_p5 }
  0x15   :  { %3982 = shalt.err (!%p3979_p9)
}
  0x16   :  { %s4012_s1 = smov [#allocation8]  }
  0x17   :  { %31 = dma.vmem_to_smem %s29_s13, 16, %s4012_s1, [#allocation7]  }
  0x18   :  { %4003 = dma.done.wait [#allocation5], 2048  }
  0x19   :  { %4004 = vsyncadd [#allocation5], 4294965248 }
  0x1a   :  { %4005 = dma.done.wait [#allocation7], 16  }
  0x1b   :  { %4006 = vsyncadd [#allocation7], 4294967280 }
  0x1c   :  { %38 = sfence }
  0x1d   :  { %v40_v0 = vld [vmem:[#allocation4 + $0x8] sm:$0xff]  ;;  %v45_v1 = vld [vmem:[#allocation4 + $0x18] sm:$0xff]  ;;  %vm86_vm0 = vcmask 179200   ;;  %v39_v5 = vld [vmem:[#allocation4] sm:$0xff]  ;;  %vm89_vm1 = vcmask 177152   ;;  %v4013_v7 = vmov 0.0  }
  0x1e   :  { %v58_v2 = vld [vmem:[#allocation4 + $0x28] sm:$0xff]  ;;  %v53_v3 = vmax.f32 %v40_v0, %v45_v1  ;;  %v49_v4 = vadd.f32 %v45_v1, %v40_v0  ;;  %v44_v6 = vld [vmem:[#allocation4 + $0x10] sm:$0xff]  ;;  %95 = vst.msk [vmem:[#allocation3 + $0x8] sm:$0xff] %vm86_vm0, %v4013_v7  ;;  %87 = vst.msk [vmem:[#allocation2] sm:$0xff] %vm86_vm0, %v4013_v7  ;;  %s4014_s0 = smov 3   ;;  %vm116_vm2 = vcmask 154648  }
  0x1f   :  { %88 = vst.msk [vmem:[#allocation2 + $0x8] sm:$0xff] %vm86_vm0, %v4013_v7  ;;  %91 = vst.msk [vmem:[#allocation2 + $0x18] sm:$0xff] %vm86_vm0, %v4013_v7  ;;  %v71_v8 = vld [vmem:[#allocation4 + $0x38] sm:$0xff]  ;;  %v52_v9 = vmax.f32 %v39_v5, %v44_v6  ;;  %v57_v10 = vld [vmem:[#allocation4 + $0x20] sm:$0xff]  ;;  %v48_v11 = vadd.f32 %v44_v6, %v39_v5  ;;  %s3808_s20 = sld [smem:[#allocation8 + $0x1]]  ;;  %s4015_s22 = smov 127  }
  0x20   :  { %92 = vst.msk [vmem:[#allocation2 + $0x20] sm:$0xff] %vm86_vm0, %v4013_v7  ;;  %94 = vst.msk [vmem:[#allocation3] sm:$0xff] %vm86_vm0, %v4013_v7  ;;  %v41_v12 = vld [vmem:[#allocation4 + $0x40] sm:$0xff]  ;;  %v66_v13 = vmax.f32 %v53_v3, %v58_v2  ;;  %v70_v14 = vld [vmem:[#allocation4 + $0x30] sm:$0xff]  ;;  %v62_v17 = vadd.f32 %v58_v2, %v49_v4  ;;  %s3815_s21 = sld [smem:[#allocation8 + $0x2]]  ;;  %s4016_s25 = smov 126  }
  0x21   :  { %97 = vst.msk [vmem:[#allocation3 + $0x18] sm:$0xff] %vm86_vm0, %v4013_v7  ;;  %98 = vst.msk [vmem:[#allocation3 + $0x20] sm:$0xff] %vm86_vm0, %v4013_v7  ;;  %v46_v15 = vld [vmem:[#allocation4 + $0x50] sm:$0xff]  ;;  %v59_v16 = vld [vmem:[#allocation4 + $0x60] sm:$0xff]  ;;  %v65_v18 = vmax.f32 %v52_v9, %v57_v10  ;;  %v61_v19 = vadd.f32 %v57_v10, %v48_v11  ;;  %s3822_s23 = sld [smem:[#allocation8 + $0x3]]  ;;  %s4017_s27 = smov 125  }
  0x22   :  { %96 = vst.msk [vmem:[#allocation3 + $0x10] sm:$0x3f] %vm89_vm1, %v4013_v7  ;;  %90 = vst.msk [vmem:[#allocation2 + $0x10] sm:$0x3f] %vm89_vm1, %v4013_v7  ;;  %v50_v20 = vadd.f32 %v46_v15, %v41_v12  ;;  %v42_v21 = vld [vmem:[#allocation4 + $0x48] sm:$0xff]  ;;  %v47_v22 = vld [vmem:[#allocation4 + $0x58] sm:$0xff]  ;;  %v79_v24 = vmax.f32 %v66_v13, %v71_v8  ;;  %v54_v32 = vmax.f32 %v41_v12, %v46_v15 }
  0x23   :  { %93 = vst.msk [vmem:[#allocation2 + $0x28] sm:$0x3f] %vm89_vm1, %v4013_v7  ;;  %99 = vst.msk [vmem:[#allocation3 + $0x28] sm:$0x3f] %vm89_vm1, %v4013_v7  ;;  %v60_v23 = vld [vmem:[#allocation4 + $0x68] sm:$0xff]  ;;  %v72_v25 = vld [vmem:[#allocation4 + $0x70] sm:$0xff]  ;;  %v51_v26 = vadd.f32 %v47_v22, %v42_v21  ;;  %v78_v27 = vmax.f32 %v65_v18, %v70_v14  ;;  %v74_v28 = vadd.f32 %v70_v14, %v61_v19 }
  0x24   :  { %v63_v29 = vadd.f32 %v59_v16, %v50_v20  ;;  %v73_v30 = vld [vmem:[#allocation4 + $0x78] sm:$0xff]  ;;  %127 = vrot.lane.b32.xlu1 %v79_v24, %s4014_s0  ;;  %v75_v33 = vadd.f32 %v71_v8, %v62_v17  ;;  %v55_v36 = vmax.f32 %v42_v21, %v47_v22  ;;  %v67_v41 = vmax.f32 %v54_v32, %v59_v16  ;;  %s3809_s24 = sld [smem:[#allocation8 + $0x8]] }
  0x25   :  { %v64_v31 = vadd.f32 %v60_v23, %v51_v26  ;;  %125 = vrot.lane.b32.xlu0 %v78_v27, %s4014_s0  ;;  %v82_v35 = vmul.f32 0.25, %v74_v28  ;;  %v362_v51 = vstv %s3808_s20  ;;  %s3810_s26 = sld [smem:[#allocation8 + $0xf]]  ;;  %vm177_vm3 = vcmask 1046528  }
  0x26   :  { %v76_v34 = vadd.f32 %v72_v25, %v63_v29  ;;  %v83_v40 = vmul.f32 0.25, %v75_v33  ;;  %v68_v42 = vmax.f32 %v55_v36, %v60_v23  ;;  %v80_v43 = vmax.f32 %v67_v41, %v72_v25  ;;  %s3811_s28 = sld [smem:[#allocation8 + $0x16]] }
  0x27   :  { %v77_v37 = vadd.f32 %v73_v30, %v64_v31  ;;  %v628_v61 = vstv %s3815_s21  ;;  %v894_v2 = vstv %s3822_s23  ;;  %s3812_s29 = sld [smem:[#allocation8 + $0x1d]]  ;;  %vm210_vm4 = vcmask 1045504  }
  0x28   :  { %v84_v38 = vmul.f32 0.25, %v76_v34  ;;  %v81_v44 = vmax.f32 %v68_v42, %v73_v30  ;;  %vm243_vm5 = vcmask 1044480   ;;  %s3813_s30 = sld [smem:[#allocation8 + $0x24]]  ;;  %vm276_vm6 = vcmask 1043456  }
  0x29   :  { %104 = vrot.lane.b32.xlu0 %v82_v35, %s4014_s0  ;;  %v85_v39 = vmul.f32 0.25, %v77_v37  ;;  %s3814_s3 = sld [smem:[#allocation8 + $0x2b]]  ;;  %vm309_vm7 = vcmask 1042432   ;;  %vm342_vm8 = vcmask 1041408   ;;  %vm3779_vm9 = vcmask 130048  }
  0x2a   :  { %108 = vrot.lane.b32.xlu1 %v84_v38, %s4014_s0  ;;  %v388_v5 = vstv %s3809_s24  ;;  %s3816_s4 = sld [smem:[#allocation8 + $0x9]] }
  0x2b   :  { %v428_v17 = vstv %s3810_s26  ;;  %s3817_s5 = sld [smem:[#allocation8 + $0x10]] }
  0x2c   :  { %v468_v34 = vstv %s3811_s28  ;;  %s3818_s6 = sld [smem:[#allocation8 + $0x17]] }
  0x2d   :  { %106 = vrot.lane.b32.xlu0 %v83_v40, %s4014_s0  ;;  %s3819_s7 = sld [smem:[#allocation8 + $0x1e]] }
  0x2e   :  { %110 = vrot.lane.b32.xlu1 %v85_v39, %s4014_s0  ;;  %s3820_s8 = sld [smem:[#allocation8 + $0x25]] }
  0x2f   :  { %s3821_s9 = sld [smem:[#allocation8 + $0x2c]] }
  0x30   :  { %s3823_s10 = sld [smem:[#allocation8 + $0xa]] }
  0x31   :  { %129 = vrot.lane.b32.xlu0 %v80_v43, %s4014_s0  ;;  %s3824_s11 = sld [smem:[#allocation8 + $0x11]] }
  0x32   :  { %131 = vrot.lane.b32.xlu1 %v81_v44, %s4014_s0  ;;  %s3825_s12 = sld [smem:[#allocation8 + $0x18]]  ;;  %s4018_s0 = smov 124  }
  0x33   :  { %s3826_s13 = sld [smem:[#allocation8 + $0x1f]] }
  0x34   :  { %s3827_s14 = sld [smem:[#allocation8 + $0x26]] }
  0x35   :  { %s3828_s17 = sld [smem:[#allocation8 + $0x2d]] }
  0x36   :  { %s3829_s18 = sld [smem:[#allocation8 + $0x4]] }
  0x37   :  { %s3830_s19 = sld [smem:[#allocation8 + $0xb]] }
  0x38   :  { %s3831_s1 = sld [smem:[#allocation8 + $0x12]] }
  0x39   :  { %s3832_s20 = sld [smem:[#allocation8 + $0x19]] }
  0x3a   :  { %s3833_s21 = sld [smem:[#allocation8 + $0x20]] }
  0x3b   :  { %s3834_s23 = sld [smem:[#allocation8 + $0x27]] }
  0x3c   :  { %s3835_s24 = sld [smem:[#allocation8 + $0x2e]] }
  0x3d   :  { %s3836_s26 = sld [smem:[#allocation8 + $0x5]] }
  0x3e   :  { %s3837_s28 = sld [smem:[#allocation8 + $0xc]] }
  0x96   :  { %v128_v45 = vpop.permute.xlu1 %127 }
  0x97   :  { %138 = vst.msk [vmem:[#allocation3 + $0xb] sm:$0xff] %vm116_vm2, %v128_v45  ;;  %v126_v46 = vpop.permute.xlu0 %125 }
  0x98   :  { %137 = vst.msk [vmem:[#allocation3 + $0x3] sm:$0xff] %vm116_vm2, %v126_v46 }
  0x9b   :  { %v105_v48 = vpop.permute.xlu0 %104 }
  0x9c   :  { %v109_v47 = vpop.permute.xlu1 %108  ;;  %117 = vst.msk [vmem:[#allocation2 + $0x3] sm:$0xff] %vm116_vm2, %v105_v48 }
  0x9d   :  { %119 = vst.msk [vmem:[#allocation2 + $0x1b] sm:$0xff] %vm116_vm2, %v109_v47 }
  0x9f   :  { %v107_v50 = vpop.permute.xlu0 %106 }
  0xa0   :  { %v111_v49 = vpop.permute.xlu1 %110  ;;  %118 = vst.msk [vmem:[#allocation2 + $0xb] sm:$0xff] %vm116_vm2, %v107_v50 }
  0xa1   :  { %120 = vst.msk [vmem:[#allocation2 + $0x23] sm:$0xff] %vm116_vm2, %v111_v49 }
  0xa3   :  { %v4058_v53 = vld [vmem:[#allocation2] sm:$0xff]  ;;  %v130_v54 = vpop.permute.xlu0 %129 }
  0xa4   :  { %v4056_v52 = vld [vmem:[#allocation2 + $0x18] sm:$0xff]  ;;  %v132_v55 = vpop.permute.xlu1 %131  ;;  %v363_v56 = vmul.f32 %v362_v51, %v4058_v53  ;;  %139 = vst.msk [vmem:[#allocation3 + $0x1b] sm:$0xff] %vm116_vm2, %v130_v54  ;;  %v629_v62 = vmul.f32 %v628_v61, %v4058_v53  ;;  %v895_v3 = vmul.f32 %v894_v2, %v4058_v53  ;;  %v389_v8 = vmul.f32 %v388_v5, %v4058_v53 }
  0xa5   :  { %140 = vst.msk [vmem:[#allocation3 + $0x23] sm:$0xff] %vm116_vm2, %v132_v55  ;;  %v365_v57 = vmul.f32 %v362_v51, %v4056_v52  ;;  %v631_v0 = vmul.f32 %v628_v61, %v4056_v52  ;;  %v897_v9 = vmul.f32 %v894_v2, %v4056_v52  ;;  %v392_v11 = vmul.f32 %v388_v5, %v4056_v52 }
  0xa6   :  { %371 = vrot.lane.b32.xlu0 %v363_v56, %s4015_s22  ;;  %v401_v16 = vrot.slane %v389_v8, 1  ;;  %v429_v25 = vmul.f32 %v428_v17, %v4058_v53  ;;  %v432_v27 = vmul.f32 %v428_v17, %v4056_v52  ;;  %v469_v42 = vmul.f32 %v468_v34, %v4058_v53 }
  0xa7   :  { %v4065_v58 = vld [vmem:[#allocation2 + $0x8] sm:$0xff]  ;;  %v4083_v7 = vld [vmem:[#allocation2 + $0x10] sm:$0x3f]  ;;  %v406_v19 = vrot.slane %v392_v11, 1  ;;  %v472_v45 = vmul.f32 %v468_v34, %v4056_v52 }
  0xa8   :  { %v364_v59 = vmul.f32 %v362_v51, %v4065_v58  ;;  %v4068_v60 = vld [vmem:[#allocation2 + $0x20] sm:$0xff]  ;;  %v630_v1 = vmul.f32 %v628_v61, %v4065_v58  ;;  %v390_v6 = vmul.f32 %v388_v5, %v4065_v58  ;;  %v896_v10 = vmul.f32 %v894_v2, %v4065_v58  ;;  %v4093_v15 = vld [vmem:[#allocation2 + $0x28] sm:$0x3f] }
  0xa9   :  { %v366_v63 = vmul.f32 %v362_v51, %v4068_v60  ;;  %v632_v4 = vmul.f32 %v628_v61, %v4068_v60  ;;  %v393_v13 = vmul.f32 %v388_v5, %v4068_v60  ;;  %v391_v14 = vmul.f32 %v388_v5, %v4083_v7 }
  0xaa   :  { %375 = vrot.lane.b32.xlu0 %v365_v57, %s4015_s22  ;;  %373 = vrot.lane.b32.xlu1 %v364_v59, %s4015_s22  ;;  %v402_v12 = vrot.slane %v390_v6, 1  ;;  %v898_v18 = vmul.f32 %v894_v2, %v4068_v60  ;;  %v430_v20 = vmul.f32 %v428_v17, %v4065_v58  ;;  %v394_v24 = vmul.f32 %v388_v5, %v4093_v15 }
  0xab   :  { %v407_v22 = vrot.slane %v393_v13, 1  ;;  %v404_v23 = vrot.slane %v391_v14, 1  ;;  %v433_v28 = vmul.f32 %v428_v17, %v4068_v60  ;;  %v431_v32 = vmul.f32 %v428_v17, %v4083_v7 }
  0xac   :  { %v403_v21 = vsel %vm177_vm3, %v401_v16, %v402_v12  ;;  %v442_v26 = vrot.slane %v430_v20, 2  ;;  %v409_v31 = vrot.slane %v394_v24, 1  ;;  %v441_v33 = vrot.slane %v429_v25, 2 }
  0xad   :  { %v408_v29 = vsel %vm177_vm3, %v406_v19, %v407_v22  ;;  %v405_v30 = vsel %vm177_vm3, %v402_v12, %v404_v23  ;;  %v446_v35 = vrot.slane %v432_v27, 2  ;;  %v447_v36 = vrot.slane %v433_v28, 2 }
  0xae   :  { %637 = vrot.lane.b32.xlu0 %v629_v62, %s4016_s25  ;;  %377 = vrot.lane.b32.xlu1 %v366_v63, %s4015_s22  ;;  %v470_v37 = vmul.f32 %v468_v34, %v4065_v58  ;;  %v443_v38 = vsel %vm210_vm4, %v441_v33, %v442_v26  ;;  %v410_v39 = vsel %vm177_vm3, %v407_v22, %v409_v31  ;;  %v444_v40 = vrot.slane %v431_v32, 2 }
  0xaf   :  { %v434_v41 = vmul.f32 %v428_v17, %v4093_v15  ;;  %v448_v43 = vsel %vm210_vm4, %v446_v35, %v447_v36  ;;  %v473_v48 = vmul.f32 %v468_v34, %v4068_v60  ;;  %v471_v49 = vmul.f32 %v468_v34, %v4083_v7 }
  0xb0   :  { %v482_v44 = vrot.slane %v470_v37, 3  ;;  %v445_v46 = vsel %vm210_vm4, %v442_v26, %v444_v40  ;;  %v481_v50 = vrot.slane %v469_v42, 3  ;;  %v508_v51 = vstv %s3812_s29  ;;  %s3838_s29 = sld [smem:[#allocation8 + $0x13]] }
  0xb1   :  { %v449_v47 = vrot.slane %v434_v41, 2  ;;  %v486_v55 = vrot.slane %v472_v45, 3  ;;  %v510_v56 = vmul.f32 %v508_v51, %v4065_v58  ;;  %v487_v59 = vrot.slane %v473_v48, 3 }
  0xb2   :  { %641 = vrot.lane.b32.xlu0 %v631_v0, %s4016_s25  ;;  %639 = vrot.lane.b32.xlu1 %v630_v1, %s4016_s25  ;;  %v483_v54 = vsel %vm243_vm5, %v481_v50, %v482_v44  ;;  %v484_v61 = vrot.slane %v471_v49, 3  ;;  %v474_v62 = vmul.f32 %v468_v34, %v4093_v15  ;;  %v509_v63 = vmul.f32 %v508_v51, %v4058_v53 }
  0xb3   :  { %v450_v57 = vsel %vm210_vm4, %v447_v36, %v449_v47  ;;  %v522_v0 = vrot.slane %v510_v56, 4  ;;  %v512_v1 = vmul.f32 %v508_v51, %v4056_v52  ;;  %v513_v2 = vmul.f32 %v508_v51, %v4068_v60 }
  0xb4   :  { %v489_v5 = vrot.slane %v474_v62, 3  ;;  %v511_v6 = vmul.f32 %v508_v51, %v4083_v7  ;;  %v521_v8 = vrot.slane %v509_v63, 4  ;;  %v514_v17 = vmul.f32 %v508_v51, %v4093_v15 }
  0xb5   :  { %v527_v11 = vrot.slane %v513_v2, 4  ;;  %v588_v27 = vstv %s3814_s3  ;;  %v654_v47 = vstv %s3816_s4  ;;  %s3839_s3 = sld [smem:[#allocation8 + $0x1a]] }
  0xb6   :  { %903 = vrot.lane.b32.xlu0 %v895_v3, %s4017_s27  ;;  %643 = vrot.lane.b32.xlu1 %v632_v4, %s4016_s25  ;;  %v488_v3 = vsel %vm243_vm5, %v486_v55, %v487_v59  ;;  %v485_v4 = vsel %vm243_vm5, %v482_v44, %v484_v61  ;;  %v523_v13 = vsel %vm276_vm6, %v521_v8, %v522_v0  ;;  %v524_v16 = vrot.slane %v511_v6, 4  ;;  %s3840_s4 = sld [smem:[#allocation8 + $0x21]] }
  0xb7   :  { %v490_v14 = vsel %vm243_vm5, %v487_v59, %v489_v5  ;;  %v529_v23 = vrot.slane %v514_v17, 4  ;;  %v589_v35 = vmul.f32 %v588_v27, %v4058_v53  ;;  %v592_v37 = vmul.f32 %v588_v27, %v4056_v52 }
  0xb8   :  { %v525_v22 = vsel %vm276_vm6, %v522_v0, %v524_v16  ;;  %v591_v42 = vmul.f32 %v588_v27, %v4083_v7  ;;  %v656_v50 = vmul.f32 %v654_v47, %v4065_v58  ;;  %v594_v51 = vmul.f32 %v588_v27, %v4093_v15 }
  0xb9   :  { %v530_v31 = vsel %vm276_vm6, %v527_v11, %v529_v23  ;;  %v606_v45 = vrot.slane %v592_v37, 6  ;;  %v658_v56 = vmul.f32 %v654_v47, %v4056_v52  ;;  %v657_v63 = vmul.f32 %v654_v47, %v4083_v7 }
  0xba   :  { %907 = vrot.lane.b32.xlu0 %v897_v9, %s4017_s27  ;;  %905 = vrot.lane.b32.xlu1 %v896_v10, %s4017_s27  ;;  %v548_v9 = vstv %s3813_s30  ;;  %v526_v10 = vrot.slane %v512_v1, 4  ;;  %v604_v49 = vrot.slane %v591_v42, 6  ;;  %v668_v61 = vrot.slane %v656_v50, 1  ;;  %s4019_s30 = smov 123  }
  0xbb   :  { %v550_v12 = vmul.f32 %v548_v9, %v4065_v58  ;;  %v553_v24 = vmul.f32 %v548_v9, %v4068_v60  ;;  %v551_v25 = vmul.f32 %v548_v9, %v4083_v7  ;;  %v554_v34 = vmul.f32 %v548_v9, %v4093_v15 }
  0xbc   :  { %v528_v19 = vsel %vm276_vm6, %v526_v10, %v527_v11  ;;  %v609_v62 = vrot.slane %v594_v51, 6  ;;  %v694_v1 = vstv %s3817_s5  ;;  %v672_v2 = vrot.slane %v658_v56, 1  ;;  %s3841_s5 = sld [smem:[#allocation8 + $0x28]] }
  0xbd   :  { %v562_v20 = vrot.slane %v550_v12, 5  ;;  %v567_v32 = vrot.slane %v553_v24, 5  ;;  %v564_v33 = vrot.slane %v551_v25, 5  ;;  %v569_v41 = vrot.slane %v554_v34, 5 }
  0xbe   :  { %411 = vrot.lane.b32.xlu0 %v403_v21, %s4015_s22  ;;  %909 = vrot.lane.b32.xlu1 %v898_v18, %s4017_s27  ;;  %v549_v18 = vmul.f32 %v548_v9, %v4058_v53  ;;  %v552_v21 = vmul.f32 %v548_v9, %v4056_v52  ;;  %v670_v8 = vrot.slane %v657_v63, 1  ;;  %v660_v9 = vmul.f32 %v654_v47, %v4093_v15 }
  0xbf   :  { %v565_v40 = vsel %vm309_vm7, %v562_v20, %v564_v33  ;;  %v570_v48 = vsel %vm309_vm7, %v567_v32, %v569_v41  ;;  %v695_v10 = vmul.f32 %v694_v1, %v4058_v53  ;;  %v699_v17 = vmul.f32 %v694_v1, %v4068_v60 }
  0xc0   :  { %v561_v26 = vrot.slane %v549_v18, 5  ;;  %v675_v16 = vrot.slane %v660_v9, 1  ;;  %v697_v18 = vmul.f32 %v694_v1, %v4083_v7  ;;  %v814_v56 = vstv %s3820_s8  ;;  %s3844_s8 = sld [smem:[#allocation8 + $0xd]] }
  0xc1   :  { %v713_v25 = vrot.slane %v699_v17, 2  ;;  %v819_v9 = vmul.f32 %v814_v56, %v4068_v60 }
  0xc2   :  { %415 = vrot.lane.b32.xlu0 %v408_v29, %s4015_s22  ;;  %413 = vrot.lane.b32.xlu1 %v405_v30, %s4015_s22  ;;  %v563_v28 = vsel %vm309_vm7, %v561_v26, %v562_v20  ;;  %v566_v29 = vrot.slane %v552_v21, 5  ;;  %v590_v30 = vmul.f32 %v588_v27, %v4065_v58  ;;  %v734_v20 = vstv %s3818_s6  ;;  %s3842_s6 = sld [smem:[#allocation8 + $0x2f]] }
  0xc3   :  { %v736_v23 = vmul.f32 %v734_v20, %v4065_v58  ;;  %v710_v26 = vrot.slane %v697_v18, 2  ;;  %v833_v18 = vrot.slane %v819_v9, 5 }
  0xc4   :  { %v602_v36 = vrot.slane %v590_v30, 6  ;;  %v738_v30 = vmul.f32 %v734_v20, %v4056_v52 }
  0xc6   :  { %451 = vrot.lane.b32.xlu0 %v443_v38, %s4015_s22  ;;  %417 = vrot.lane.b32.xlu1 %v410_v39, %s4015_s22  ;;  %v593_v38 = vmul.f32 %v588_v27, %v4068_v60  ;;  %v568_v39 = vsel %vm309_vm7, %v566_v29, %v567_v32  ;;  %v605_v59 = vsel %vm342_vm8, %v602_v36, %v604_v49  ;;  %v748_v29 = vrot.slane %v736_v23, 3 }
  0xc7   :  { %v700_v27 = vmul.f32 %v694_v1, %v4093_v15 }
  0xc9   :  { %v715_v34 = vrot.slane %v700_v27, 2 }
  0xca   :  { %455 = vrot.lane.b32.xlu0 %v448_v43, %s4015_s22  ;;  %453 = vrot.lane.b32.xlu1 %v445_v46, %s4015_s22  ;;  %v601_v43 = vrot.slane %v589_v35, 6  ;;  %v607_v46 = vrot.slane %v593_v38, 6  ;;  %v737_v35 = vmul.f32 %v734_v20, %v4083_v7  ;;  %v752_v38 = vrot.slane %v738_v30, 3 }
  0xcb   :  { %v716_v41 = vsel %vm210_vm4, %v713_v25, %v715_v34 }
  0xcc   :  { %v603_v44 = vsel %vm342_vm8, %v601_v43, %v602_v36  ;;  %v608_v55 = vsel %vm342_vm8, %v606_v45, %v607_v46  ;;  %v610_v6 = vsel %vm342_vm8, %v607_v46, %v609_v62  ;;  %v750_v42 = vrot.slane %v737_v35, 3 }
  0xce   :  { %491 = vrot.lane.b32.xlu0 %v483_v54, %s4015_s22  ;;  %457 = vrot.lane.b32.xlu1 %v450_v57, %s4015_s22  ;;  %v655_v54 = vmul.f32 %v654_v47, %v4058_v53  ;;  %v659_v57 = vmul.f32 %v654_v47, %v4068_v60  ;;  %v751_v49 = vsel %vm243_vm5, %v748_v29, %v750_v42 }
  0xd0   :  { %v667_v0 = vrot.slane %v655_v54, 1 }
  0xd2   :  { %495 = vrot.lane.b32.xlu0 %v488_v3, %s4015_s22  ;;  %493 = vrot.lane.b32.xlu1 %v485_v4, %s4015_s22  ;;  %v673_v3 = vrot.slane %v659_v57, 1  ;;  %v696_v4 = vmul.f32 %v694_v1, %v4065_v58  ;;  %v669_v5 = vsel %vm177_vm3, %v667_v0, %v668_v61 }
  0xd4   :  { %v674_v11 = vsel %vm177_vm3, %v672_v2, %v673_v3  ;;  %v708_v12 = vrot.slane %v696_v4, 2  ;;  %v676_v24 = vsel %vm177_vm3, %v673_v3, %v675_v16  ;;  %v815_v2 = vmul.f32 %v814_v56, %v4058_v53 }
  0xd6   :  { %531 = vrot.lane.b32.xlu0 %v523_v13, %s4015_s22  ;;  %497 = vrot.lane.b32.xlu1 %v490_v14, %s4015_s22  ;;  %v698_v13 = vmul.f32 %v694_v1, %v4056_v52  ;;  %v671_v14 = vsel %vm177_vm3, %v668_v61, %v670_v8  ;;  %v711_v33 = vsel %vm210_vm4, %v708_v12, %v710_v26 }
  0xd7   :  { %v816_v61 = vmul.f32 %v814_v56, %v4065_v58 }
  0xd9   :  { %v828_v4 = vrot.slane %v816_v61, 5 }
  0xda   :  { %535 = vrot.lane.b32.xlu0 %v528_v19, %s4015_s22  ;;  %533 = vrot.lane.b32.xlu1 %v525_v22, %s4015_s22  ;;  %v707_v19 = vrot.slane %v695_v10, 2  ;;  %v712_v22 = vrot.slane %v698_v13, 2  ;;  %v817_v10 = vmul.f32 %v814_v56, %v4083_v7 }
  0xdc   :  { %v709_v21 = vsel %vm210_vm4, %v707_v19, %v708_v12  ;;  %v714_v32 = vsel %vm210_vm4, %v712_v22, %v713_v25  ;;  %v854_v12 = vstv %s3821_s9  ;;  %v830_v19 = vrot.slane %v817_v10, 5  ;;  %s3845_s9 = sld [smem:[#allocation8 + $0x14]] }
  0xdd   :  { %v856_v16 = vmul.f32 %v854_v12, %v4065_v58  ;;  %v858_v23 = vmul.f32 %v854_v12, %v4056_v52  ;;  %v1000_v10 = vstv %s3825_s12  ;;  %s3847_s12 = sld [smem:[#allocation8 + $0x22]] }
  0xde   :  { %571 = vrot.lane.b32.xlu0 %v563_v28, %s4015_s22  ;;  %537 = vrot.lane.b32.xlu1 %v530_v31, %s4015_s22  ;;  %v735_v28 = vmul.f32 %v734_v20, %v4058_v53  ;;  %v739_v31 = vmul.f32 %v734_v20, %v4068_v60  ;;  %v831_v26 = vsel %vm309_vm7, %v828_v4, %v830_v19 }
  0xdf   :  { %v868_v22 = vrot.slane %v856_v16, 6  ;;  %v1002_v16 = vmul.f32 %v1000_v10, %v4065_v58 }
  0xe0   :  { %v747_v36 = vrot.slane %v735_v28, 3  ;;  %v857_v28 = vmul.f32 %v854_v12, %v4083_v7 }
  0xe2   :  { %575 = vrot.lane.b32.xlu0 %v568_v39, %s4015_s22  ;;  %573 = vrot.lane.b32.xlu1 %v565_v40, %s4015_s22  ;;  %v749_v37 = vsel %vm243_vm5, %v747_v36, %v748_v29  ;;  %v753_v39 = vrot.slane %v739_v31, 3  ;;  %v774_v40 = vstv %s3819_s7  ;;  %v872_v31 = vrot.slane %v858_v23, 6  ;;  %s3843_s7 = sld [smem:[#allocation8 + $0x6]] }
  0xe3   :  { %v776_v43 = vmul.f32 %v774_v40, %v4065_v58  ;;  %v775_v45 = vmul.f32 %v774_v40, %v4058_v53  ;;  %v778_v47 = vmul.f32 %v774_v40, %v4056_v52  ;;  %v777_v54 = vmul.f32 %v774_v40, %v4083_v7 }
  0xe4   :  { %v754_v46 = vsel %vm243_vm5, %v752_v38, %v753_v39  ;;  %v780_v1 = vmul.f32 %v774_v40, %v4093_v15  ;;  %v870_v35 = vrot.slane %v857_v28, 6 }
  0xe5   :  { %v788_v50 = vrot.slane %v776_v43, 4  ;;  %v792_v57 = vrot.slane %v778_v47, 4  ;;  %v790_v0 = vrot.slane %v777_v54, 4 }
  0xe6   :  { %611 = vrot.lane.b32.xlu0 %v603_v44, %s4015_s22  ;;  %577 = vrot.lane.b32.xlu1 %v570_v48, %s4015_s22  ;;  %v740_v44 = vmul.f32 %v734_v20, %v4093_v15  ;;  %v779_v48 = vmul.f32 %v774_v40, %v4068_v60  ;;  %v795_v8 = vrot.slane %v780_v1, 4  ;;  %v820_v20 = vmul.f32 %v814_v56, %v4093_v15 }
  0xe7   :  { %v871_v43 = vsel %vm342_vm8, %v868_v22, %v870_v35 }
  0xe8   :  { %v755_v51 = vrot.slane %v740_v44, 3  ;;  %v835_v27 = vrot.slane %v820_v20, 5 }
  0xea   :  { %615 = vrot.lane.b32.xlu0 %v608_v55, %s4015_s22  ;;  %613 = vrot.lane.b32.xlu1 %v605_v59, %s4015_s22  ;;  %v787_v55 = vrot.slane %v775_v45, 4  ;;  %v793_v59 = vrot.slane %v779_v48, 4  ;;  %v756_v63 = vsel %vm243_vm5, %v753_v39, %v755_v51  ;;  %v836_v34 = vsel %vm309_vm7, %v833_v18, %v835_v27 }
  0xeb   :  { %v960_v48 = vstv %s3824_s11  ;;  %s3846_s11 = sld [smem:[#allocation8 + $0x1b]] }
  0xec   :  { %v789_v62 = vsel %vm276_vm6, %v787_v55, %v788_v50  ;;  %v794_v3 = vsel %vm276_vm6, %v792_v57, %v793_v59  ;;  %v796_v17 = vsel %vm276_vm6, %v793_v59, %v795_v8  ;;  %v962_v55 = vmul.f32 %v960_v48, %v4065_v58 }
  0xed   :  { %v963_v8 = vmul.f32 %v960_v48, %v4083_v7  ;;  %v966_v20 = vmul.f32 %v960_v48, %v4093_v15 }
  0xee   :  { %677 = vrot.lane.b32.xlu0 %v669_v5, %s4016_s25  ;;  %617 = vrot.lane.b32.xlu1 %v610_v6, %s4015_s22  ;;  %v818_v5 = vmul.f32 %v814_v56, %v4056_v52  ;;  %v791_v6 = vsel %vm276_vm6, %v788_v50, %v790_v0 }
  0xef   :  { %v976_v19 = vrot.slane %v963_v8, 2 }
  0xf2   :  { %681 = vrot.lane.b32.xlu0 %v674_v11, %s4016_s25  ;;  %679 = vrot.lane.b32.xlu1 %v671_v14, %s4016_s25  ;;  %v827_v11 = vrot.slane %v815_v2, 5  ;;  %v832_v14 = vrot.slane %v818_v5, 5  ;;  %v974_v2 = vrot.slane %v962_v55, 2 }
  0xf4   :  { %v829_v13 = vsel %vm309_vm7, %v827_v11, %v828_v4  ;;  %v834_v25 = vsel %vm309_vm7, %v832_v14, %v833_v18  ;;  %v977_v28 = vsel %vm210_vm4, %v974_v2, %v976_v19 }
  0xf6   :  { %717 = vrot.lane.b32.xlu0 %v709_v21, %s4016_s25  ;;  %683 = vrot.lane.b32.xlu1 %v676_v24, %s4016_s25  ;;  %v855_v21 = vmul.f32 %v854_v12, %v4058_v53  ;;  %v859_v24 = vmul.f32 %v854_v12, %v4068_v60 }
  0xf8   :  { %v867_v29 = vrot.slane %v855_v21, 6  ;;  %v1001_v21 = vmul.f32 %v1000_v10, %v4058_v53 }
  0xfa   :  { %721 = vrot.lane.b32.xlu0 %v714_v32, %s4016_s25  ;;  %719 = vrot.lane.b32.xlu1 %v711_v33, %s4016_s25  ;;  %v869_v30 = vsel %vm342_vm8, %v867_v29, %v868_v22  ;;  %v873_v32 = vrot.slane %v859_v24, 6  ;;  %v920_v33 = vstv %s3823_s10  ;;  %v1014_v24 = vrot.slane %v1002_v16, 3  ;;  %s4020_s10 = smov 122  }
  0xfb   :  { %v922_v36 = vmul.f32 %v920_v33, %v4065_v58  ;;  %v921_v38 = vmul.f32 %v920_v33, %v4058_v53  ;;  %v925_v42 = vmul.f32 %v920_v33, %v4068_v60  ;;  %v926_v61 = vmul.f32 %v920_v33, %v4093_v15 }
  0xfc   :  { %v874_v40 = vsel %vm342_vm8, %v872_v31, %v873_v32  ;;  %v981_v29 = vrot.slane %v966_v20, 2  ;;  %v1013_v31 = vrot.slane %v1001_v21, 3 }
  0xfd   :  { %v934_v44 = vrot.slane %v922_v36, 1  ;;  %v933_v47 = vrot.slane %v921_v38, 1  ;;  %v939_v54 = vrot.slane %v925_v42, 1  ;;  %v941_v5 = vrot.slane %v926_v61, 1 }
  0xfe   :  { %757 = vrot.lane.b32.xlu0 %v749_v37, %s4016_s25  ;;  %723 = vrot.lane.b32.xlu1 %v716_v41, %s4016_s25  ;;  %v860_v37 = vmul.f32 %v854_v12, %v4093_v15  ;;  %v924_v41 = vmul.f32 %v920_v33, %v4056_v52  ;;  %v1006_v42 = vmul.f32 %v1000_v10, %v4093_v15 }
  0xff   :  { %v935_v56 = vsel %vm177_vm3, %v933_v47, %v934_v44 }
 0x100   :  { %v875_v45 = vrot.slane %v860_v37, 6  ;;  %v938_v51 = vrot.slane %v924_v41, 1  ;;  %v1040_v37 = vstv %s3826_s13  ;;  %v1021_v55 = vrot.slane %v1006_v42, 3  ;;  %s3848_s13 = sld [smem:[#allocation8 + $0x29]] }
 0x101   :  { %v1042_v41 = vmul.f32 %v1040_v37, %v4065_v58  ;;  %v1044_v47 = vmul.f32 %v1040_v37, %v4056_v52  ;;  %v1046_v8 = vmul.f32 %v1040_v37, %v4093_v15 }
 0x102   :  { %761 = vrot.lane.b32.xlu0 %v754_v46, %s4016_s25  ;;  %759 = vrot.lane.b32.xlu1 %v751_v49, %s4016_s25  ;;  %v923_v46 = vmul.f32 %v920_v33, %v4083_v7  ;;  %v876_v57 = vsel %vm342_vm8, %v873_v32, %v875_v45  ;;  %v940_v1 = vsel %vm177_vm3, %v938_v51, %v939_v54 }
 0x103   :  { %v1061_v19 = vrot.slane %v1046_v8, 4 }
 0x104   :  { %v936_v59 = vrot.slane %v923_v46, 1 }
 0x106   :  { %797 = vrot.lane.b32.xlu0 %v789_v62, %s4016_s25  ;;  %763 = vrot.lane.b32.xlu1 %v756_v63, %s4016_s25  ;;  %v961_v62 = vmul.f32 %v960_v48, %v4058_v53  ;;  %v937_v4 = vsel %vm177_vm3, %v934_v44, %v936_v59  ;;  %v1080_v59 = vstv %s3827_s14  ;;  %s3802_s14 = sld [smem:[#allocation8 + $0x7]] }
 0x107   :  { %v1085_v20 = vmul.f32 %v1080_v59, %v4068_v60  ;;  %v1083_v21 = vmul.f32 %v1080_v59, %v4083_v7 }
 0x108   :  { %v973_v9 = vrot.slane %v961_v62, 2 }
 0x10a   :  { %801 = vrot.lane.b32.xlu0 %v794_v3, %s4016_s25  ;;  %799 = vrot.lane.b32.xlu1 %v791_v6, %s4016_s25  ;;  %v964_v3 = vmul.f32 %v960_v48, %v4056_v52  ;;  %v965_v6 = vmul.f32 %v960_v48, %v4068_v60  ;;  %v1045_v48 = vmul.f32 %v1040_v37, %v4068_v60 }
 0x10c   :  { %v978_v14 = vrot.slane %v964_v3, 2  ;;  %v979_v18 = vrot.slane %v965_v6, 2  ;;  %v1082_v3 = vmul.f32 %v1080_v59, %v4065_v58 }
 0x10e   :  { %837 = vrot.lane.b32.xlu0 %v829_v13, %s4016_s25  ;;  %803 = vrot.lane.b32.xlu1 %v796_v17, %s4016_s25  ;;  %v975_v13 = vsel %vm210_vm4, %v973_v9, %v974_v2  ;;  %v942_v17 = vsel %vm177_vm3, %v939_v54, %v941_v5  ;;  %v980_v27 = vsel %vm210_vm4, %v978_v14, %v979_v18  ;;  %v1054_v54 = vrot.slane %v1042_v41, 4 }
 0x10f   :  { %v982_v38 = vsel %vm210_vm4, %v979_v18, %v981_v29  ;;  %v1059_v2 = vrot.slane %v1045_v48, 4  ;;  %v1081_v9 = vmul.f32 %v1080_v59, %v4058_v53  ;;  %v1094_v16 = vrot.slane %v1082_v3, 5 }
 0x112   :  { %841 = vrot.lane.b32.xlu0 %v834_v25, %s4016_s25  ;;  %839 = vrot.lane.b32.xlu1 %v831_v26, %s4016_s25  ;;  %v1004_v25 = vmul.f32 %v1000_v10, %v4056_v52  ;;  %v1005_v26 = vmul.f32 %v1000_v10, %v4068_v60 }
 0x114   :  { %v1018_v35 = vrot.slane %v1004_v25, 3  ;;  %v1019_v36 = vrot.slane %v1005_v26, 3  ;;  %v1120_v25 = vstv %s3828_s17  ;;  %s4795_s17 = sld [smem:[#allocation8 + $0x30]] }
 0x115   :  { %v1124_v42 = vmul.f32 %v1120_v25, %v4056_v52 }
 0x116   :  { %877 = vrot.lane.b32.xlu0 %v869_v30, %s4016_s25  ;;  %843 = vrot.lane.b32.xlu1 %v836_v34, %s4016_s25  ;;  %v1003_v30 = vmul.f32 %v1000_v10, %v4083_v7  ;;  %v1015_v34 = vsel %vm243_vm5, %v1013_v31, %v1014_v24  ;;  %v1020_v46 = vsel %vm243_vm5, %v1018_v35, %v1019_v36  ;;  %v1096_v35 = vrot.slane %v1083_v21, 5 }
 0x117   :  { %v1022_v5 = vsel %vm243_vm5, %v1019_v36, %v1021_v55  ;;  %v1062_v31 = vsel %vm276_vm6, %v1059_v2, %v1061_v19  ;;  %v1086_v36 = vmul.f32 %v1080_v59, %v4093_v15 }
 0x118   :  { %v4258_v39 = vpop.permute.xlu0 %371 }
 0x119   :  { %v1101_v48 = vrot.slane %v1086_v36, 5 }
 0x11a   :  { %881 = vrot.lane.b32.xlu0 %v874_v40, %s4016_s25  ;;  %879 = vrot.lane.b32.xlu1 %v871_v43, %s4016_s25  ;;  %v1016_v40 = vrot.slane %v1003_v30, 3  ;;  %v1041_v43 = vmul.f32 %v1040_v37, %v4058_v53  ;;  %v1122_v30 = vmul.f32 %v1120_v25, %v4065_v58 }
 0x11c   :  { %v4267_v49 = vpop.permute.xlu1 %373  ;;  %v4269_v50 = vpop.permute.xlu0 %375  ;;  %v1017_v51 = vsel %vm243_vm5, %v1014_v24, %v1016_v40  ;;  %v1093_v24 = vrot.slane %v1081_v9, 5  ;;  %v1134_v41 = vrot.slane %v1122_v30, 6 }
 0x11e   :  { %943 = vrot.lane.b32.xlu0 %v935_v56, %s4017_s27  ;;  %883 = vrot.lane.b32.xlu1 %v876_v57, %s4016_s25  ;;  %v1043_v56 = vmul.f32 %v1040_v37, %v4083_v7  ;;  %v1053_v57 = vrot.slane %v1041_v43, 4  ;;  %v1121_v37 = vmul.f32 %v1120_v25, %v4058_v53  ;;  %v1125_v43 = vmul.f32 %v1120_v25, %v4068_v60 }
 0x120   :  { %v4278_v63 = vpop.permute.xlu1 %377  ;;  %v4280_v0 = vpop.permute.xlu0 %637  ;;  %v1056_v6 = vrot.slane %v1043_v56, 4 }
 0x121   :  { %6692 = vst [vmem:[#allocation13_spill] sm:$0xff] %v4280_v0 }
 0x122   :  { %947 = vrot.lane.b32.xlu0 %v940_v1, %s4017_s27  ;;  %945 = vrot.lane.b32.xlu1 %v937_v4, %s4017_s27  ;;  %v1058_v1 = vrot.slane %v1044_v47, 4  ;;  %v1055_v4 = vsel %vm276_vm6, %v1053_v57, %v1054_v54  ;;  %v1057_v18 = vsel %vm276_vm6, %v1054_v54, %v1056_v6  ;;  %v1097_v47 = vsel %vm309_vm7, %v1094_v16, %v1096_v35 }
 0x123   :  { %v1133_v54 = vrot.slane %v1121_v37, 6 }
 0x124   :  { %v4289_v11 = vpop.permute.xlu1 %639  ;;  %v4291_v12 = vpop.permute.xlu0 %641  ;;  %v1060_v14 = vsel %vm276_vm6, %v1058_v1, %v1059_v2  ;;  %v1139_v2 = vrot.slane %v1125_v43, 6 }
 0x125   :  { %6693 = vst [vmem:[#allocation14_spill] sm:$0xff] %v4289_v11  ;;  %6694 = vst [vmem:[#allocation15_spill] sm:$0xff] %v4291_v12  ;;  %v1135_v57 = vsel %vm342_vm8, %v1133_v54, %v1134_v41  ;;  %v4941_v12 = vld [vmem:[#allocation3 + $0x18] sm:$0xff] }
 0x126   :  { %983 = vrot.lane.b32.xlu0 %v975_v13, %s4017_s27  ;;  %949 = vrot.lane.b32.xlu1 %v942_v17, %s4017_s27  ;;  %v1084_v17 = vmul.f32 %v1080_v59, %v4056_v52  ;;  %v1138_v59 = vrot.slane %v1124_v42, 6  ;;  %v1226_v42 = vstv %s3831_s1  ;;  %s4817_s1 = sld [smem:[#allocation8 + $0x15]] }
 0x127   :  { %v1228_v54 = vmul.f32 %v1226_v42, %v4065_v58 }
 0x128   :  { %v4300_v22 = vpop.permute.xlu1 %643  ;;  %v4302_v23 = vpop.permute.xlu0 %903  ;;  %v1098_v29 = vrot.slane %v1084_v17, 5  ;;  %v1140_v8 = vsel %vm342_vm8, %v1138_v59, %v1139_v2 }
 0x129   :  { %6695 = vst [vmem:[#allocation16_spill] sm:$0xff] %v4300_v22  ;;  %6696 = vst [vmem:[#allocation17_spill] sm:$0xff] %v4302_v23 }
 0x12a   :  { %987 = vrot.lane.b32.xlu0 %v980_v27, %s4017_s27  ;;  %985 = vrot.lane.b32.xlu1 %v977_v28, %s4017_s27  ;;  %v1095_v28 = vsel %vm309_vm7, %v1093_v24, %v1094_v16 }
 0x12c   :  { %v4311_v32 = vpop.permute.xlu1 %905  ;;  %v4313_v33 = vpop.permute.xlu0 %907 }
 0x12d   :  { %6697 = vst [vmem:[#allocation18_spill] sm:$0xff] %v4311_v32  ;;  %6698 = vst [vmem:[#allocation19_spill] sm:$0xff] %v4313_v33  ;;  %v1346_v32 = vstv %s3834_s23  ;;  %s4859_s23 = sld [smem:[#allocation8 + $0x32]] }
 0x12e   :  { %1023 = vrot.lane.b32.xlu0 %v1015_v34, %s4017_s27  ;;  %989 = vrot.lane.b32.xlu1 %v982_v38, %s4017_s27  ;;  %v1099_v34 = vrot.slane %v1085_v20, 5  ;;  %v1186_v20 = vstv %s3830_s19  ;;  %s4803_s19 = sld [smem:[#allocation8 + $0xe]] }
 0x12f   :  { %v1188_v24 = vmul.f32 %v1186_v20, %v4065_v58  ;;  %v1191_v35 = vmul.f32 %v1186_v20, %v4068_v60  ;;  %v1189_v37 = vmul.f32 %v1186_v20, %v4083_v7 }
 0x130   :  { %v4322_v44 = vpop.permute.xlu1 %909  ;;  %v4324_v45 = vpop.permute.xlu0 %411  ;;  %v1102_v1 = vsel %vm309_vm7, %v1099_v34, %v1101_v48 }
 0x131   :  { %6699 = vst [vmem:[#allocation20_spill] sm:$0xff] %v4322_v44  ;;  %v1200_v36 = vrot.slane %v1188_v24, 1  ;;  %v1202_v59 = vrot.slane %v1189_v37, 1 }
 0x132   :  { %1027 = vrot.lane.b32.xlu0 %v1020_v46, %s4017_s27  ;;  %1025 = vrot.lane.b32.xlu1 %v1017_v51, %s4017_s27  ;;  %v1100_v46 = vsel %vm309_vm7, %v1098_v29, %v1099_v34  ;;  %v1123_v51 = vmul.f32 %v1120_v25, %v4083_v7  ;;  %v1190_v34 = vmul.f32 %v1186_v20, %v4056_v52 }
 0x134   :  { %v4333_v61 = vpop.permute.xlu1 %413  ;;  %v4335_v62 = vpop.permute.xlu0 %415  ;;  %v1136_v3 = vrot.slane %v1123_v51, 6  ;;  %v1204_v48 = vrot.slane %v1190_v34, 1  ;;  %v1205_v51 = vrot.slane %v1191_v35, 1 }
 0x136   :  { %1063 = vrot.lane.b32.xlu0 %v1055_v4, %s4017_s27  ;;  %1029 = vrot.lane.b32.xlu1 %v1022_v5, %s4017_s27  ;;  %v1126_v4 = vmul.f32 %v1120_v25, %v4093_v15  ;;  %v1137_v9 = vsel %vm342_vm8, %v1134_v41, %v1136_v3  ;;  %v1187_v25 = vmul.f32 %v1186_v20, %v4058_v53 }
 0x138   :  { %v4344_v10 = vpop.permute.xlu1 %417  ;;  %v4346_v13 = vpop.permute.xlu0 %451  ;;  %v1141_v16 = vrot.slane %v1126_v4, 6  ;;  %v1199_v41 = vrot.slane %v1187_v25, 1 }
 0x13a   :  { %1067 = vrot.lane.b32.xlu0 %v1060_v14, %s4017_s27  ;;  %1065 = vrot.lane.b32.xlu1 %v1057_v18, %s4017_s27  ;;  %v1160_v14 = vstv %s3829_s18  ;;  %v1142_v21 = vsel %vm342_vm8, %v1139_v2, %v1141_v16  ;;  %v1227_v2 = vmul.f32 %v1226_v42, %v4058_v53  ;;  %s4799_s18 = sld [smem:[#allocation8]] }
 0x13b   :  { %v1161_v19 = vmul.f32 %v1160_v14, %v4058_v53  ;;  %v1163_v30 = vmul.f32 %v1160_v14, %v4056_v52 }
 0x13c   :  { %v4355_v26 = vpop.permute.xlu1 %453  ;;  %v4357_v27 = vpop.permute.xlu0 %455  ;;  %v1239_v53 = vrot.slane %v1227_v2, 2 }
 0x13d   :  { %6700 = vst [vmem:[#allocation21_spill] sm:$0xff] %v4357_v27 }
 0x13e   :  { %1103 = vrot.lane.b32.xlu0 %v1095_v28, %s4017_s27  ;;  %1069 = vrot.lane.b32.xlu1 %v1062_v31, %s4017_s27  ;;  %v1162_v31 = vmul.f32 %v1160_v14, %v4065_v58  ;;  %v1230_v58 = vmul.f32 %v1226_v42, %v4056_v52  ;;  %v1232_v52 = vmul.f32 %v1226_v42, %v4093_v15 }
 0x140   :  { %v4366_v38 = vpop.permute.xlu1 %457  ;;  %v4368_v40 = vpop.permute.xlu0 %491 }
 0x141   :  { %6701 = vst [vmem:[#allocation22_spill] sm:$0xff] %v4366_v38  ;;  %6702 = vst [vmem:[#allocation23_spill] sm:$0xff] %v4368_v40 }
 0x142   :  { %1107 = vrot.lane.b32.xlu0 %v1100_v46, %s4017_s27  ;;  %1105 = vrot.lane.b32.xlu1 %v1097_v47, %s4017_s27  ;;  %v1164_v47 = vmul.f32 %v1160_v14, %v4068_v60  ;;  %v1203_v14 = vsel %vm177_vm3, %v1200_v36, %v1202_v59 }
 0x144   :  { %v4377_v55 = vpop.permute.xlu1 %493  ;;  %v4379_v56 = vpop.permute.xlu0 %495 }
 0x145   :  { %6703 = vst [vmem:[#allocation24_spill] sm:$0xff] %v4377_v55  ;;  %6704 = vst [vmem:[#allocation25_spill] sm:$0xff] %v4379_v56 }
 0x146   :  { %1143 = vrot.lane.b32.xlu0 %v1135_v57, %s4017_s27  ;;  %1109 = vrot.lane.b32.xlu1 %v1102_v1, %s4017_s27  ;;  %v1201_v57 = vsel %vm177_vm3, %v1199_v41, %v1200_v36  ;;  %v1192_v1 = vmul.f32 %v1186_v20, %v4093_v15  ;;  %v1229_v20 = vmul.f32 %v1226_v42, %v4083_v7  ;;  %v4444_v36 = vld [vmem:[#allocation2 + $0x8] sm:$0xff]  ;;  %v4449_v41 = vld [vmem:[#allocation2] sm:$0xff] }
 0x148   :  { %v4386_v5 = vpop.permute.xlu1 %497  ;;  %v4388_v6 = vpop.permute.xlu0 %531  ;;  %v1207_v16 = vrot.slane %v1192_v1, 1  ;;  %v1242_v35 = vrot.slane %v1229_v20, 2 }
 0x149   :  { %6705 = vst [vmem:[#allocation26_spill] sm:$0xff] %v4386_v5  ;;  %6706 = vst [vmem:[#allocation27_spill] sm:$0xff] %v4388_v6 }
 0x14a   :  { %1147 = vrot.lane.b32.xlu0 %v1140_v8, %s4017_s27  ;;  %1145 = vrot.lane.b32.xlu1 %v1137_v9, %s4017_s27  ;;  %v1206_v8 = vsel %vm177_vm3, %v1204_v48, %v1205_v51  ;;  %v1240_v9 = vrot.slane %v1228_v54, 2  ;;  %v1247_v54 = vrot.slane %v1232_v52, 2 }
 0x14c   :  { %v4394_v17 = vpop.permute.xlu1 %533  ;;  %v4396_v18 = vpop.permute.xlu0 %535  ;;  %v1241_v25 = vsel %vm210_vm4, %v1239_v53, %v1240_v9  ;;  %v1243_v2 = vsel %vm210_vm4, %v1240_v9, %v1242_v35  ;;  %v1306_v9 = vstv %s3833_s21  ;;  %s4848_s21 = sld [smem:[#allocation8 + $0x23]] }
 0x14d   :  { %6707 = vst [vmem:[#allocation28_spill] sm:$0xff] %v4394_v17  ;;  %6708 = vst [vmem:[#allocation29_spill] sm:$0xff] %v4396_v18  ;;  %v1308_v35 = vmul.f32 %v4444_v36, %v1306_v9 }
 0x14e   :  { %1169 = vrot.lane.b32.xlu0 %v1161_v19, %s4018_s0  ;;  %1149 = vrot.lane.b32.xlu1 %v1142_v21, %s4017_s27  ;;  %v1231_v19 = vmul.f32 %v1226_v42, %v4068_v60  ;;  %v1208_v60 = vsel %vm177_vm3, %v1205_v51, %v1207_v16 }
 0x150   :  { %v4404_v28 = vpop.permute.xlu1 %537  ;;  %v4406_v29 = vpop.permute.xlu0 %571  ;;  %v1245_v34 = vrot.slane %v1231_v19, 2 }
 0x151   :  { %6709 = vst [vmem:[#allocation30_spill] sm:$0xff] %v4404_v28  ;;  %6710 = vst [vmem:[#allocation31_spill] sm:$0xff] %v4406_v29 }
 0x152   :  { %1173 = vrot.lane.b32.xlu0 %v1163_v30, %s4018_s0  ;;  %1171 = vrot.lane.b32.xlu1 %v1162_v31, %s4018_s0  ;;  %v1244_v30 = vrot.slane %v1230_v58, 2  ;;  %v1266_v31 = vstv %s3832_s20  ;;  %v4462_v58 = vld [vmem:[#allocation2 + $0x20] sm:$0xff]  ;;  %v1248_v20 = vsel %vm210_vm4, %v1245_v34, %v1247_v54  ;;  %s4825_s20 = sld [smem:[#allocation8 + $0x1c]] }
 0x153   :  { %v1268_v37 = vmul.f32 %v4444_v36, %v1266_v31  ;;  %v1269_v51 = vmul.f32 %v1266_v31, %v4083_v7 }
 0x154   :  { %v4415_v43 = vpop.permute.xlu1 %573  ;;  %v4417_v46 = vpop.permute.xlu0 %575  ;;  %v1246_v1 = vsel %vm210_vm4, %v1244_v30, %v1245_v34 }
 0x155   :  { %6711 = vst [vmem:[#allocation32_spill] sm:$0xff] %v4415_v43  ;;  %6712 = vst [vmem:[#allocation33_spill] sm:$0xff] %v4417_v46  ;;  %v1282_v53 = vrot.slane %v1269_v51, 3 }
 0x156   :  { %1209 = vrot.lane.b32.xlu0 %v1201_v57, %s4018_s0  ;;  %1175 = vrot.lane.b32.xlu1 %v1164_v47, %s4018_s0  ;;  %v1267_v47 = vmul.f32 %v4449_v41, %v1266_v31  ;;  %v4457_v57 = vld [vmem:[#allocation2 + $0x18] sm:$0xff] }
 0x157   :  { %v1270_v59 = vmul.f32 %v4457_v57, %v1266_v31  ;;  %v1310_v51 = vmul.f32 %v4457_v57, %v1306_v9 }
 0x158   :  { %v4426_v3 = vpop.permute.xlu1 %577  ;;  %v4428_v4 = vpop.permute.xlu0 %611  ;;  %v1279_v16 = vrot.slane %v1267_v47, 3 }
 0x159   :  { %6713 = vst [vmem:[#allocation34_spill] sm:$0xff] %v4426_v3  ;;  %6714 = vst [vmem:[#allocation35_spill] sm:$0xff] %v4428_v4  ;;  %v1284_v52 = vrot.slane %v1270_v59, 3  ;;  %v1324_v33 = vrot.slane %v1310_v51, 4 }
 0x15a   :  { %1213 = vrot.lane.b32.xlu0 %v1206_v8, %s4018_s0  ;;  %1211 = vrot.lane.b32.xlu1 %v1203_v14, %s4018_s0  ;;  %v1280_v8 = vrot.slane %v1268_v37, 3  ;;  %v1271_v14 = vmul.f32 %v4462_v58, %v1266_v31  ;;  %v1307_v37 = vmul.f32 %v4449_v41, %v1306_v9 }
 0x15c   :  { %v4437_v21 = vpop.permute.xlu1 %613  ;;  %v4439_v24 = vpop.permute.xlu0 %615  ;;  %v1281_v30 = vsel %vm243_vm5, %v1279_v16, %v1280_v8  ;;  %v1283_v59 = vsel %vm243_vm5, %v1280_v8, %v1282_v53  ;;  %v1319_v16 = vrot.slane %v1307_v37, 4  ;;  %v1347_v37 = vmul.f32 %v4449_v41, %v1346_v32 }
 0x15d   :  { %6715 = vst [vmem:[#allocation36_spill] sm:$0xff] %v4437_v21  ;;  %6716 = vst [vmem:[#allocation37_spill] sm:$0xff] %v4439_v24 }
 0x15e   :  { %1249 = vrot.lane.b32.xlu0 %v1241_v25, %s4018_s0  ;;  %1215 = vrot.lane.b32.xlu1 %v1208_v60, %s4018_s0  ;;  %v1272_v25 = vmul.f32 %v1266_v31, %v4093_v15  ;;  %v1285_v60 = vrot.slane %v1271_v14, 3  ;;  %v4482_v15 = vld [vmem:[#allocation2 + $0x10] sm:$0x3f]  ;;  %v1311_v14 = vmul.f32 %v4462_v58, %v1306_v9 }
 0x15f   :  { %v1309_v31 = vmul.f32 %v4482_v15, %v1306_v9  ;;  %v1349_v51 = vmul.f32 %v4482_v15, %v1346_v32 }
 0x160   :  { %v4452_v48 = vpop.permute.xlu1 %617  ;;  %v4454_v42 = vpop.permute.xlu0 %677  ;;  %v1287_v54 = vrot.slane %v1272_v25, 3  ;;  %v1325_v53 = vrot.slane %v1311_v14, 4 }
 0x161   :  { %6717 = vst [vmem:[#allocation38_spill] sm:$0xff] %v4452_v48  ;;  %6718 = vst [vmem:[#allocation39_spill] sm:$0xff] %v4454_v42  ;;  %v1322_v44 = vrot.slane %v1309_v31, 4 }
 0x162   :  { %1253 = vrot.lane.b32.xlu0 %v1246_v1, %s4018_s0  ;;  %1251 = vrot.lane.b32.xlu1 %v1243_v2, %s4018_s0  ;;  %v1286_v1 = vsel %vm243_vm5, %v1284_v52, %v1285_v60  ;;  %v1320_v2 = vrot.slane %v1308_v35, 4  ;;  %v4497_v52 = vld [vmem:[#allocation2 + $0x28] sm:$0x3f] }
 0x163   :  { %v1312_v35 = vmul.f32 %v4497_v52, %v1306_v9  ;;  %v1326_v9 = vsel %vm276_vm6, %v1324_v33, %v1325_v53 }
 0x164   :  { %v4467_v19 = vpop.permute.xlu1 %679  ;;  %v4469_v7 = vpop.permute.xlu0 %681  ;;  %v1321_v8 = vsel %vm276_vm6, %v1319_v16, %v1320_v2  ;;  %v1323_v31 = vsel %vm276_vm6, %v1320_v2, %v1322_v44  ;;  %v1362_v44 = vrot.slane %v1349_v51, 5 }
 0x165   :  { %6719 = vst [vmem:[#allocation40_spill] sm:$0xff] %v4467_v19  ;;  %6720 = vst [vmem:[#allocation41_spill] sm:$0xff] %v4469_v7  ;;  %v1327_v14 = vrot.slane %v1312_v35, 4 }
 0x166   :  { %1255 = vrot.lane.b32.xlu1 %v1248_v20, %s4018_s0  ;;  %1289 = vrot.lane.b32.xlu0 %v1281_v30, %s4018_s0  ;;  %v1288_v30 = vsel %vm243_vm5, %v1285_v60, %v1287_v54 }
 0x167   :  { %v1328_v33 = vsel %vm276_vm6, %v1325_v53, %v1327_v14 }
 0x168   :  { %v4478_v47 = vpop.permute.xlu1 %683  ;;  %v4480_v34 = vpop.permute.xlu0 %717 }
 0x169   :  { %6721 = vst [vmem:[#allocation42_spill] sm:$0xff] %v4478_v47  ;;  %6722 = vst [vmem:[#allocation43_spill] sm:$0xff] %v4480_v34 }
 0x16a   :  { %1291 = vrot.lane.b32.xlu1 %v1283_v59, %s4018_s0  ;;  %1293 = vrot.lane.b32.xlu0 %v1286_v1, %s4018_s0  ;;  %v1348_v59 = vmul.f32 %v4444_v36, %v1346_v32  ;;  %v1350_v1 = vmul.f32 %v4457_v57, %v1346_v32 }
 0x16c   :  { %v4491_v20 = vpop.permute.xlu1 %719  ;;  %v4493_v25 = vpop.permute.xlu0 %721  ;;  %v1360_v16 = vrot.slane %v1348_v59, 5  ;;  %v1364_v2 = vrot.slane %v1350_v1, 5 }
 0x16d   :  { %6723 = vst [vmem:[#allocation44_spill] sm:$0xff] %v4491_v20  ;;  %6724 = vst [vmem:[#allocation45_spill] sm:$0xff] %v4493_v25  ;;  %v1386_v25 = vstv %s3835_s24  ;;  %s4867_s24 = sld [smem:[#allocation8 + $0x39]] }
 0x16e   :  { %1295 = vrot.lane.b32.xlu1 %v1288_v30, %s4018_s0  ;;  %1329 = vrot.lane.b32.xlu0 %v1321_v8, %s4018_s0  ;;  %v1351_v30 = vmul.f32 %v4462_v58, %v1346_v32  ;;  %v1359_v8 = vrot.slane %v1347_v37, 5  ;;  %v1388_v20 = vmul.f32 %v4444_v36, %v1386_v25  ;;  %v1387_v37 = vmul.f32 %v4449_v41, %v1386_v25 }
 0x16f   :  { %v1389_v53 = vmul.f32 %v4482_v15, %v1386_v25 }
 0x170   :  { %v4504_v60 = vpop.permute.xlu1 %723  ;;  %v4506_v54 = vpop.permute.xlu0 %757  ;;  %v1361_v35 = vsel %vm309_vm7, %v1359_v8, %v1360_v16  ;;  %v1365_v59 = vrot.slane %v1351_v30, 5  ;;  %v1400_v14 = vrot.slane %v1388_v20, 6  ;;  %v1390_v30 = vmul.f32 %v4457_v57, %v1386_v25 }
 0x171   :  { %6725 = vst [vmem:[#allocation46_spill] sm:$0xff] %v4504_v60  ;;  %6726 = vst [vmem:[#allocation47_spill] sm:$0xff] %v4506_v54  ;;  %v1352_v60 = vmul.f32 %v4497_v52, %v1346_v32  ;;  %v1363_v32 = vsel %vm309_vm7, %v1360_v16, %v1362_v44  ;;  %v1391_v8 = vmul.f32 %v4462_v58, %v1386_v25  ;;  %v1402_v16 = vrot.slane %v1389_v53, 6 }
 0x172   :  { %1331 = vrot.lane.b32.xlu1 %v1323_v31, %s4018_s0  ;;  %1333 = vrot.lane.b32.xlu0 %v1326_v9, %s4018_s0  ;;  %v1366_v9 = vsel %vm309_vm7, %v1364_v2, %v1365_v59  ;;  %v1404_v44 = vrot.slane %v1390_v30, 6  ;;  %v1426_v53 = vstv %s3836_s26  ;;  %s4882_s26 = sld [smem:[#allocation8 + $0x2a]] }
 0x173   :  { %v1367_v1 = vrot.slane %v1352_v60, 5  ;;  %v1405_v2 = vrot.slane %v1391_v8, 6  ;;  %v1427_v8 = vmul.f32 %v4449_v41, %v1426_v53 }
 0x174   :  { %v4515_v23 = vpop.permute.xlu1 %759  ;;  %v4517_v54 = vpop.permute.xlu0 %761 }
 0x175   :  { %6727 = vst [vmem:[#allocation48_spill] sm:$0xff] %v4515_v23  ;;  %6728 = vst [vmem:[#allocation49_spill] sm:$0xff] %v4517_v54  ;;  %v1368_v60 = vsel %vm309_vm7, %v1365_v59, %v1367_v1  ;;  %v1406_v59 = vsel %vm342_vm8, %v1404_v44, %v1405_v2  ;;  %v1428_v44 = vmul.f32 %v4444_v36, %v1426_v53 }
 0x176   :  { %1335 = vrot.lane.b32.xlu1 %v1328_v33, %s4018_s0  ;;  %1369 = vrot.lane.b32.xlu0 %v1361_v35, %s4018_s0  ;;  %v1399_v33 = vrot.slane %v1387_v37, 6 }
 0x178   :  { %v4526_v31 = vpop.permute.xlu1 %763  ;;  %v4528_v51 = vpop.permute.xlu0 %797  ;;  %v1401_v20 = vsel %vm342_vm8, %v1399_v33, %v1400_v14  ;;  %v1452_v33 = vstv %s3837_s28  ;;  %s4909_s28 = sld [smem:[#allocation8 + $0x40]] }
 0x179   :  { %6729 = vst [vmem:[#allocation50_spill] sm:$0xff] %v4526_v31  ;;  %6730 = vst [vmem:[#allocation51_spill] sm:$0xff] %v4528_v51  ;;  %v1392_v31 = vmul.f32 %v4497_v52, %v1386_v25 }
 0x17a   :  { %1371 = vrot.lane.b32.xlu1 %v1363_v32, %s4018_s0  ;;  %1373 = vrot.lane.b32.xlu0 %v1366_v9, %s4018_s0  ;;  %v1403_v9 = vsel %vm342_vm8, %v1400_v14, %v1402_v16  ;;  %v1454_v14 = vmul.f32 %v4444_v36, %v1452_v33 }
 0x17b   :  { %v1407_v1 = vrot.slane %v1392_v31, 6  ;;  %v1453_v31 = vmul.f32 %v4449_v41, %v1452_v33 }
 0x17c   :  { %v4537_v35 = vpop.permute.xlu1 %799  ;;  %v4539_v51 = vpop.permute.xlu0 %801 }
 0x17d   :  { %6731 = vst [vmem:[#allocation52_spill] sm:$0xff] %v4537_v35  ;;  %6732 = vst [vmem:[#allocation53_spill] sm:$0xff] %v4539_v51 }
 0x17e   :  { %1375 = vrot.lane.b32.xlu1 %v1368_v60, %s4018_s0  ;;  %1409 = vrot.lane.b32.xlu0 %v1401_v20, %s4018_s0  ;;  %v1408_v60 = vsel %vm342_vm8, %v1405_v2, %v1407_v1  ;;  %v1466_v2 = vrot.slane %v1454_v14, 1  ;;  %v1456_v1 = vmul.f32 %v4457_v57, %v1452_v33 }
 0x180   :  { %v4546_v32 = vpop.permute.xlu1 %803  ;;  %v4548_v37 = vpop.permute.xlu0 %837  ;;  %v1470_v51 = vrot.slane %v1456_v1, 1 }
 0x181   :  { %6733 = vst [vmem:[#allocation54_spill] sm:$0xff] %v4546_v32  ;;  %6734 = vst [vmem:[#allocation55_spill] sm:$0xff] %v4548_v37  ;;  %v1458_v37 = vmul.f32 %v4497_v52, %v1452_v33  ;;  %v1492_v32 = vstv %s3838_s29  ;;  %s4993_s29 = sld [smem:[#allocation8 + $0x47]] }
 0x182   :  { %1411 = vrot.lane.b32.xlu1 %v1403_v9, %s4018_s0  ;;  %1413 = vrot.lane.b32.xlu0 %v1406_v59, %s4018_s0  ;;  %v1429_v9 = vmul.f32 %v4457_v57, %v1426_v53  ;;  %v1455_v59 = vmul.f32 %v4482_v15, %v1452_v33 }
 0x184   :  { %v4554_v30 = vpop.permute.xlu1 %839  ;;  %v4556_v25 = vpop.permute.xlu0 %841 }
 0x185   :  { %6735 = vst [vmem:[#allocation56_spill] sm:$0xff] %v4554_v30  ;;  %6736 = vst [vmem:[#allocation57_spill] sm:$0xff] %v4556_v25  ;;  %v1468_v30 = vrot.slane %v1455_v59, 1  ;;  %v1473_v59 = vrot.slane %v1458_v37, 1 }
 0x186   :  { %1415 = vrot.lane.b32.xlu1 %v1408_v60, %s4018_s0  ;;  %1435 = vrot.lane.b32.xlu0 %v1427_v8, %s4019_s30  ;;  %v1457_v60 = vmul.f32 %v4462_v58, %v1452_v33  ;;  %v1465_v8 = vrot.slane %v1453_v31, 1  ;;  %v1493_v31 = vmul.f32 %v4449_v41, %v1492_v32 }
 0x187   :  { %v1469_v33 = vsel %vm177_vm3, %v1466_v2, %v1468_v30 }
 0x188   :  { %v4564_v16 = vpop.permute.xlu1 %843  ;;  %v4566_v20 = vpop.permute.xlu0 %877  ;;  %v1467_v14 = vsel %vm177_vm3, %v1465_v8, %v1466_v2  ;;  %v1471_v35 = vrot.slane %v1457_v60, 1  ;;  %v1496_v8 = vmul.f32 %v4457_v57, %v1492_v32  ;;  %v1498_v2 = vmul.f32 %v4497_v52, %v1492_v32 }
 0x189   :  { %6737 = vst [vmem:[#allocation58_spill] sm:$0xff] %v4564_v16  ;;  %6738 = vst [vmem:[#allocation59_spill] sm:$0xff] %v4566_v20  ;;  %v1430_v20 = vmul.f32 %v4462_v58, %v1426_v53 }
 0x18a   :  { %1437 = vrot.lane.b32.xlu1 %v1428_v44, %s4019_s30  ;;  %1439 = vrot.lane.b32.xlu0 %v1429_v9, %s4019_s30  ;;  %v1494_v44 = vmul.f32 %v4444_v36, %v1492_v32  ;;  %v1472_v1 = vsel %vm177_vm3, %v1470_v51, %v1471_v35  ;;  %v1474_v37 = vsel %vm177_vm3, %v1471_v35, %v1473_v59  ;;  %v1532_v51 = vstv %s3839_s3  ;;  %s5036_s3 = sld [smem:[#allocation8 + $0x4e]] }
 0x18b   :  { %v1535_v59 = vmul.f32 %v4482_v15, %v1532_v51 }
 0x18c   :  { %v4575_v25 = vpop.permute.xlu1 %879  ;;  %v4577_v16 = vpop.permute.xlu0 %881  ;;  %v1506_v60 = vrot.slane %v1494_v44, 2 }
 0x18d   :  { %6739 = vst [vmem:[#allocation60_spill] sm:$0xff] %v4575_v25  ;;  %6740 = vst [vmem:[#allocation61_spill] sm:$0xff] %v4577_v16  ;;  %v1495_v16 = vmul.f32 %v4482_v15, %v1492_v32  ;;  %v1510_v25 = vrot.slane %v1496_v8, 2 }
 0x18e   :  { %1441 = vrot.lane.b32.xlu1 %v1430_v20, %s4019_s30  ;;  %1475 = vrot.lane.b32.xlu0 %v1467_v14, %s4019_s30  ;;  %v1497_v20 = vmul.f32 %v4462_v58, %v1492_v32  ;;  %v1505_v14 = vrot.slane %v1493_v31, 2  ;;  %v1533_v31 = vmul.f32 %v4449_v41, %v1532_v51 }
 0x18f   :  { %v1508_v30 = vrot.slane %v1495_v16, 2  ;;  %v1513_v16 = vrot.slane %v1498_v2, 2  ;;  %v1538_v2 = vmul.f32 %v4497_v52, %v1532_v51 }
 0x190   :  { %v4586_v9 = vpop.permute.xlu1 %883  ;;  %v4588_v53 = vpop.permute.xlu0 %943  ;;  %v1507_v44 = vsel %vm210_vm4, %v1505_v14, %v1506_v60  ;;  %v1511_v54 = vrot.slane %v1497_v20, 2  ;;  %v1536_v14 = vmul.f32 %v4457_v57, %v1532_v51 }
 0x191   :  { %6741 = vst [vmem:[#allocation62_spill] sm:$0xff] %v4586_v9  ;;  %6742 = vst [vmem:[#allocation63_spill] sm:$0xff] %v4588_v53  ;;  %v1509_v32 = vsel %vm210_vm4, %v1506_v60, %v1508_v30  ;;  %v1548_v30 = vrot.slane %v1535_v59, 3 }
 0x192   :  { %1477 = vrot.lane.b32.xlu1 %v1469_v33, %s4019_s30  ;;  %1479 = vrot.lane.b32.xlu0 %v1472_v1, %s4019_s30  ;;  %v1534_v33 = vmul.f32 %v4444_v36, %v1532_v51  ;;  %v1512_v8 = vsel %vm210_vm4, %v1510_v25, %v1511_v54  ;;  %v1514_v60 = vsel %vm210_vm4, %v1511_v54, %v1513_v16  ;;  %v1572_v25 = vstv %s3840_s4  ;;  %s5104_s4 = sld [smem:[#allocation8 + $0x55]] }
 0x193   :  { %v1553_v16 = vrot.slane %v1538_v2, 3  ;;  %v1575_v59 = vmul.f32 %v4482_v15, %v1572_v25  ;;  %v1578_v2 = vmul.f32 %v4497_v52, %v1572_v25 }
 0x194   :  { %v4597_v9 = vpop.permute.xlu1 %945  ;;  %v4599_v53 = vpop.permute.xlu0 %947  ;;  %v1546_v20 = vrot.slane %v1534_v33, 3 }
 0x195   :  { %6743 = vst [vmem:[#allocation64_spill] sm:$0xff] %v4597_v9  ;;  %6744 = vst [vmem:[#allocation65_spill] sm:$0xff] %v4599_v53  ;;  %v1550_v53 = vrot.slane %v1536_v14, 3 }
 0x196   :  { %1481 = vrot.lane.b32.xlu1 %v1474_v37, %s4019_s30  ;;  %1515 = vrot.lane.b32.xlu0 %v1507_v44, %s4019_s30  ;;  %v1537_v37 = vmul.f32 %v4462_v58, %v1532_v51  ;;  %v1545_v44 = vrot.slane %v1533_v31, 3  ;;  %v1573_v31 = vmul.f32 %v4449_v41, %v1572_v25  ;;  %v1549_v51 = vsel %vm243_vm5, %v1546_v20, %v1548_v30 }
 0x197   :  { %v1588_v30 = vrot.slane %v1575_v59, 4 }
 0x198   :  { %v4608_v1 = vpop.permute.xlu1 %949  ;;  %v4610_v35 = vpop.permute.xlu0 %983  ;;  %v1547_v33 = vsel %vm243_vm5, %v1545_v44, %v1546_v20  ;;  %v1551_v9 = vrot.slane %v1537_v37, 3  ;;  %v1576_v44 = vmul.f32 %v4457_v57, %v1572_v25 }
 0x199   :  { %6745 = vst [vmem:[#allocation66_spill] sm:$0xff] %v4608_v1  ;;  %6746 = vst [vmem:[#allocation67_spill] sm:$0xff] %v4610_v35 }
 0x19a   :  { %1517 = vrot.lane.b32.xlu1 %v1509_v32, %s4019_s30  ;;  %1519 = vrot.lane.b32.xlu0 %v1512_v8, %s4019_s30  ;;  %v1574_v32 = vmul.f32 %v4444_v36, %v1572_v25  ;;  %v1552_v14 = vsel %vm243_vm5, %v1550_v53, %v1551_v9  ;;  %v1554_v20 = vsel %vm243_vm5, %v1551_v9, %v1553_v16  ;;  %v1612_v53 = vstv %s3841_s5  ;;  %s5160_s5 = sld [smem:[#allocation8 + $0x5c]] }
 0x19b   :  { %v1593_v16 = vrot.slane %v1578_v2, 4  ;;  %v1615_v59 = vmul.f32 %v4482_v15, %v1612_v53  ;;  %v1618_v2 = vmul.f32 %v4497_v52, %v1612_v53 }
 0x19c   :  { %v4619_v1 = vpop.permute.xlu1 %985  ;;  %v4621_v35 = vpop.permute.xlu0 %987  ;;  %v1586_v37 = vrot.slane %v1574_v32, 4 }
 0x19d   :  { %6747 = vst [vmem:[#allocation68_spill] sm:$0xff] %v4619_v1  ;;  %6748 = vst [vmem:[#allocation69_spill] sm:$0xff] %v4621_v35  ;;  %v1590_v35 = vrot.slane %v1576_v44, 4 }
 0x19e   :  { %1521 = vrot.lane.b32.xlu1 %v1514_v60, %s4019_s30  ;;  %1555 = vrot.lane.b32.xlu0 %v1547_v33, %s4019_s30  ;;  %v1577_v60 = vmul.f32 %v4462_v58, %v1572_v25  ;;  %v1585_v33 = vrot.slane %v1573_v31, 4  ;;  %v1613_v31 = vmul.f32 %v4449_v41, %v1612_v53  ;;  %v1589_v25 = vsel %vm276_vm6, %v1586_v37, %v1588_v30 }
 0x19f   :  { %v1628_v30 = vrot.slane %v1615_v59, 5 }
 0x1a0   :  { %v4630_v8 = vpop.permute.xlu1 %989  ;;  %v4632_v54 = vpop.permute.xlu0 %1023  ;;  %v1587_v32 = vsel %vm276_vm6, %v1585_v33, %v1586_v37  ;;  %v1591_v1 = vrot.slane %v1577_v60, 4  ;;  %v1616_v33 = vmul.f32 %v4457_v57, %v1612_v53 }
 0x1a1   :  { %6749 = vst [vmem:[#allocation70_spill] sm:$0xff] %v4630_v8  ;;  %6750 = vst [vmem:[#allocation71_spill] sm:$0xff] %v4632_v54 }
 0x1a2   :  { %1557 = vrot.lane.b32.xlu1 %v1549_v51, %s4019_s30  ;;  %1559 = vrot.lane.b32.xlu0 %v1552_v14, %s4019_s30  ;;  %v1614_v51 = vmul.f32 %v4444_v36, %v1612_v53  ;;  %v1592_v44 = vsel %vm276_vm6, %v1590_v35, %v1591_v1  ;;  %v1594_v37 = vsel %vm276_vm6, %v1591_v1, %v1593_v16  ;;  %v1652_v35 = vstv %s3842_s6  ;;  %s5244_s6 = sld [smem:[#allocation8 + $0x33]] }
 0x1a3   :  { %v1654_v23 = vmul.f32 %v4444_v36, %v1652_v35  ;;  %v1655_v16 = vmul.f32 %v4482_v15, %v1652_v35 }
 0x1a4   :  { %v4641_v8 = vpop.permute.xlu1 %1025  ;;  %v4643_v54 = vpop.permute.xlu0 %1027  ;;  %v1626_v60 = vrot.slane %v1614_v51, 5 }
 0x1a5   :  { %6751 = vst [vmem:[#allocation72_spill] sm:$0xff] %v4641_v8  ;;  %6752 = vst [vmem:[#allocation73_spill] sm:$0xff] %v4643_v54  ;;  %v1630_v54 = vrot.slane %v1616_v33, 5  ;;  %v1666_v33 = vrot.slane %v1654_v23, 6 }
 0x1a6   :  { %1561 = vrot.lane.b32.xlu1 %v1554_v20, %s4019_s30  ;;  %1595 = vrot.lane.b32.xlu0 %v1587_v32, %s4019_s30  ;;  %v1617_v20 = vmul.f32 %v4462_v58, %v1612_v53  ;;  %v1625_v32 = vrot.slane %v1613_v31, 5  ;;  %v1653_v31 = vmul.f32 %v4449_v41, %v1652_v35  ;;  %v1629_v1 = vsel %vm309_vm7, %v1626_v60, %v1628_v30 }
 0x1a7   :  { %v1633_v53 = vrot.slane %v1618_v2, 5  ;;  %v1668_v30 = vrot.slane %v1655_v16, 6  ;;  %v1692_v16 = vstv %s3843_s7  ;;  %s5249_s7 = sld [smem:[#allocation8 + $0x3a]] }
 0x1a8   :  { %v4652_v14 = vpop.permute.xlu1 %1029  ;;  %v4654_v9 = vpop.permute.xlu0 %1063  ;;  %v1627_v51 = vsel %vm309_vm7, %v1625_v32, %v1626_v60  ;;  %v1631_v8 = vrot.slane %v1617_v20, 5  ;;  %v1656_v20 = vmul.f32 %v4457_v57, %v1652_v35  ;;  %v1657_v32 = vmul.f32 %v4462_v58, %v1652_v35 }
 0x1a9   :  { %6753 = vst [vmem:[#allocation74_spill] sm:$0xff] %v4652_v14  ;;  %6754 = vst [vmem:[#allocation75_spill] sm:$0xff] %v4654_v9 }
 0x1aa   :  { %1597 = vrot.lane.b32.xlu1 %v1589_v25, %s4019_s30  ;;  %1599 = vrot.lane.b32.xlu0 %v1592_v44, %s4019_s30  ;;  %v1632_v59 = vsel %vm309_vm7, %v1630_v54, %v1631_v8  ;;  %v1634_v60 = vsel %vm309_vm7, %v1631_v8, %v1633_v53  ;;  %v1670_v54 = vrot.slane %v1656_v20, 6  ;;  %v1671_v2 = vrot.slane %v1657_v32, 6 }
 0x1ab   :  { %v1693_v32 = vmul.f32 %v4449_v41, %v1692_v16 }
 0x1ac   :  { %v4663_v14 = vpop.permute.xlu1 %1065  ;;  %v4665_v9 = vpop.permute.xlu0 %1067  ;;  %v1672_v8 = vsel %vm342_vm8, %v1670_v54, %v1671_v2  ;;  %v1694_v54 = vmul.f32 %v4444_v36, %v1692_v16 }
 0x1ad   :  { %6755 = vst [vmem:[#allocation76_spill] sm:$0xff] %v4663_v14  ;;  %6756 = vst [vmem:[#allocation77_spill] sm:$0xff] %v4665_v9 }
 0x1ae   :  { %1601 = vrot.lane.b32.xlu1 %v1594_v37, %s4019_s30  ;;  %1635 = vrot.lane.b32.xlu0 %v1627_v51, %s4019_s30  ;;  %v1665_v37 = vrot.slane %v1653_v31, 6 }
 0x1b0   :  { %v4674_v25 = vpop.permute.xlu1 %1069  ;;  %v4676_v44 = vpop.permute.xlu0 %1103  ;;  %v1667_v23 = vsel %vm342_vm8, %v1665_v37, %v1666_v33  ;;  %v1718_v37 = vstv %s3844_s8  ;;  %s5289_s8 = sld [smem:[#allocation8 + $0x41]] }
 0x1b1   :  { %6757 = vst [vmem:[#allocation78_spill] sm:$0xff] %v4674_v25  ;;  %6758 = vst [vmem:[#allocation79_spill] sm:$0xff] %v4676_v44  ;;  %v1658_v25 = vmul.f32 %v4497_v52, %v1652_v35 }
 0x1b2   :  { %1637 = vrot.lane.b32.xlu1 %v1629_v1, %s4019_s30  ;;  %1639 = vrot.lane.b32.xlu0 %v1632_v59, %s4019_s30  ;;  %v1669_v59 = vsel %vm342_vm8, %v1666_v33, %v1668_v30  ;;  %v1720_v33 = vmul.f32 %v4444_v36, %v1718_v37 }
 0x1b3   :  { %v1673_v53 = vrot.slane %v1658_v25, 6  ;;  %v1719_v25 = vmul.f32 %v4449_v41, %v1718_v37 }
 0x1b4   :  { %v4685_v51 = vpop.permute.xlu1 %1105  ;;  %v4687_v44 = vpop.permute.xlu0 %1107 }
 0x1b5   :  { %6759 = vst [vmem:[#allocation80_spill] sm:$0xff] %v4685_v51  ;;  %6760 = vst [vmem:[#allocation81_spill] sm:$0xff] %v4687_v44 }
 0x1b6   :  { %1641 = vrot.lane.b32.xlu1 %v1634_v60, %s4019_s30  ;;  %1675 = vrot.lane.b32.xlu0 %v1667_v23, %s4019_s30  ;;  %v1674_v60 = vsel %vm342_vm8, %v1671_v2, %v1673_v53  ;;  %v1732_v2 = vrot.slane %v1720_v33, 1  ;;  %v1722_v53 = vmul.f32 %v4457_v57, %v1718_v37 }
 0x1b8   :  { %v4694_v1 = vpop.permute.xlu1 %1109  ;;  %v4696_v31 = vpop.permute.xlu0 %1143  ;;  %v1736_v51 = vrot.slane %v1722_v53, 1 }
 0x1b9   :  { %6761 = vst [vmem:[#allocation82_spill] sm:$0xff] %v4694_v1  ;;  %6762 = vst [vmem:[#allocation83_spill] sm:$0xff] %v4696_v31  ;;  %v1758_v1 = vstv %s3845_s9  ;;  %s5313_s9 = sld [smem:[#allocation8 + $0x48]] }
 0x1ba   :  { %1677 = vrot.lane.b32.xlu1 %v1669_v59, %s4019_s30  ;;  %1679 = vrot.lane.b32.xlu0 %v1672_v8, %s4019_s30  ;;  %v1695_v59 = vmul.f32 %v4457_v57, %v1692_v16  ;;  %v1721_v8 = vmul.f32 %v4482_v15, %v1718_v37 }
 0x1bc   :  { %v4702_v20 = vpop.permute.xlu1 %1145  ;;  %v4704_v35 = vpop.permute.xlu0 %1147  ;;  %v1734_v31 = vrot.slane %v1721_v8, 1 }
 0x1bd   :  { %6763 = vst [vmem:[#allocation84_spill] sm:$0xff] %v4702_v20  ;;  %6764 = vst [vmem:[#allocation85_spill] sm:$0xff] %v4704_v35  ;;  %v1724_v35 = vmul.f32 %v4497_v52, %v1718_v37 }
 0x1be   :  { %1681 = vrot.lane.b32.xlu1 %v1674_v60, %s4019_s30  ;;  %1701 = vrot.lane.b32.xlu0 %v1693_v32, %s4020_s10  ;;  %v1723_v60 = vmul.f32 %v4462_v58, %v1718_v37  ;;  %v1731_v32 = vrot.slane %v1719_v25, 1  ;;  %v1759_v25 = vmul.f32 %v4449_v41, %v1758_v1  ;;  %v1735_v37 = vsel %vm177_vm3, %v1732_v2, %v1734_v31 }
 0x1bf   :  { %v1739_v8 = vrot.slane %v1724_v35, 1 }
 0x1c0   :  { %v4712_v30 = vpop.permute.xlu1 %1149  ;;  %v4714_v23 = vpop.permute.xlu0 %1169  ;;  %v1733_v33 = vsel %vm177_vm3, %v1731_v32, %v1732_v2  ;;  %v1737_v44 = vrot.slane %v1723_v60, 1  ;;  %v1762_v32 = vmul.f32 %v4457_v57, %v1758_v1  ;;  %v1764_v2 = vmul.f32 %v4497_v52, %v1758_v1 }
 0x1c1   :  { %6765 = vst [vmem:[#allocation86_spill] sm:$0xff] %v4712_v30  ;;  %6766 = vst [vmem:[#allocation87_spill] sm:$0xff] %v4714_v23  ;;  %v1696_v23 = vmul.f32 %v4462_v58, %v1692_v16 }
 0x1c2   :  { %1703 = vrot.lane.b32.xlu1 %v1694_v54, %s4020_s10  ;;  %1705 = vrot.lane.b32.xlu0 %v1695_v59, %s4020_s10  ;;  %v1760_v54 = vmul.f32 %v4444_v36, %v1758_v1  ;;  %v1738_v53 = vsel %vm177_vm3, %v1736_v51, %v1737_v44  ;;  %v1740_v31 = vsel %vm177_vm3, %v1737_v44, %v1739_v8  ;;  %v1798_v51 = vstv %s3846_s11  ;;  %s5391_s11 = sld [smem:[#allocation8 + $0x56]] }
 0x1c3   :  { %v1801_v8 = vmul.f32 %v4482_v15, %v1798_v51 }
 0x1c4   :  { %v4723_v20 = vpop.permute.xlu1 %1171  ;;  %v4725_v30 = vpop.permute.xlu0 %1173  ;;  %v1772_v60 = vrot.slane %v1760_v54, 2 }
 0x1c5   :  { %6767 = vst [vmem:[#allocation88_spill] sm:$0xff] %v4723_v20  ;;  %6768 = vst [vmem:[#allocation89_spill] sm:$0xff] %v4725_v30  ;;  %v1761_v20 = vmul.f32 %v4482_v15, %v1758_v1  ;;  %v1776_v30 = vrot.slane %v1762_v32, 2 }
 0x1c6   :  { %1707 = vrot.lane.b32.xlu1 %v1696_v23, %s4020_s10  ;;  %1741 = vrot.lane.b32.xlu0 %v1733_v33, %s4020_s10  ;;  %v1763_v23 = vmul.f32 %v4462_v58, %v1758_v1  ;;  %v1771_v33 = vrot.slane %v1759_v25, 2  ;;  %v1799_v25 = vmul.f32 %v4449_v41, %v1798_v51 }
 0x1c7   :  { %v1774_v35 = vrot.slane %v1761_v20, 2  ;;  %v1779_v20 = vrot.slane %v1764_v2, 2  ;;  %v1804_v2 = vmul.f32 %v4497_v52, %v1798_v51 }
 0x1c8   :  { %v4734_v59 = vpop.permute.xlu1 %1175  ;;  %v4736_v16 = vpop.permute.xlu0 %1209  ;;  %v1773_v54 = vsel %vm210_vm4, %v1771_v33, %v1772_v60  ;;  %v1777_v9 = vrot.slane %v1763_v23, 2  ;;  %v1802_v33 = vmul.f32 %v4457_v57, %v1798_v51 }
 0x1c9   :  { %6769 = vst [vmem:[#allocation90_spill] sm:$0xff] %v4734_v59  ;;  %6770 = vst [vmem:[#allocation91_spill] sm:$0xff] %v4736_v16  ;;  %v1775_v1 = vsel %vm210_vm4, %v1772_v60, %v1774_v35  ;;  %v1814_v35 = vrot.slane %v1801_v8, 3 }
 0x1ca   :  { %1743 = vrot.lane.b32.xlu1 %v1735_v37, %s4020_s10  ;;  %1745 = vrot.lane.b32.xlu0 %v1738_v53, %s4020_s10  ;;  %v1800_v37 = vmul.f32 %v4444_v36, %v1798_v51  ;;  %v1778_v32 = vsel %vm210_vm4, %v1776_v30, %v1777_v9  ;;  %v1780_v60 = vsel %vm210_vm4, %v1777_v9, %v1779_v20  ;;  %v1838_v30 = vstv %s3847_s12  ;;  %s5424_s12 = sld [smem:[#allocation8 + $0x5d]] }
 0x1cb   :  { %v1819_v20 = vrot.slane %v1804_v2, 3  ;;  %v1841_v8 = vmul.f32 %v4482_v15, %v1838_v30  ;;  %v1878_v2 = vstv %s3848_s13  ;;  %s5476_s13 = sld [smem:[#allocation8 + $0x38]] }
 0x1cc   :  { %v4745_v59 = vpop.permute.xlu1 %1211  ;;  %v4747_v16 = vpop.permute.xlu0 %1213  ;;  %v1812_v23 = vrot.slane %v1800_v37, 3 }
 0x1cd   :  { %6771 = vst [vmem:[#allocation92_spill] sm:$0xff] %v4745_v59  ;;  %6772 = vst [vmem:[#allocation93_spill] sm:$0xff] %v4747_v16 }
 0x1ce   :  { %1747 = vrot.lane.b32.xlu1 %v1740_v31, %s4020_s10  ;;  %1781 = vrot.lane.b32.xlu0 %v1773_v54, %s4020_s10  ;;  %v1803_v31 = vmul.f32 %v4462_v58, %v1798_v51  ;;  %v1811_v54 = vrot.slane %v1799_v25, 3  ;;  %v1839_v25 = vmul.f32 %v4449_v41, %v1838_v30  ;;  %v1815_v51 = vsel %vm243_vm5, %v1812_v23, %v1814_v35 }
 0x1cf   :  { %v1854_v35 = vrot.slane %v1841_v8, 4 }
 0x1d0   :  { %v4756_v53 = vpop.permute.xlu1 %1215  ;;  %v4758_v44 = vpop.permute.xlu0 %1249  ;;  %v1813_v37 = vsel %vm243_vm5, %v1811_v54, %v1812_v23  ;;  %v1817_v16 = vrot.slane %v1803_v31, 3  ;;  %v1842_v54 = vmul.f32 %v4457_v57, %v1838_v30 }
 0x1d1   :  { %6773 = vst [vmem:[#allocation94_spill] sm:$0xff] %v4756_v53  ;;  %6774 = vst [vmem:[#allocation95_spill] sm:$0xff] %v4758_v44  ;;  %v1816_v53 = vrot.slane %v1802_v33, 3 }
 0x1d2   :  { %1783 = vrot.lane.b32.xlu1 %v1775_v1, %s4020_s10  ;;  %1785 = vrot.lane.b32.xlu0 %v1778_v32, %s4020_s10  ;;  %v1840_v1 = vmul.f32 %v4444_v36, %v1838_v30  ;;  %v1820_v23 = vsel %vm243_vm5, %v1817_v16, %v1819_v20 }
 0x1d3   :  { %v1818_v33 = vsel %vm243_vm5, %v1816_v53, %v1817_v16  ;;  %v1844_v53 = vmul.f32 %v4497_v52, %v1838_v30  ;;  %v1879_v16 = vmul.f32 %v4449_v41, %v1878_v2 }
 0x1d4   :  { %v4767_v59 = vpop.permute.xlu1 %1251  ;;  %v4769_v44 = vpop.permute.xlu0 %1253  ;;  %v1852_v31 = vrot.slane %v1840_v1, 4 }
 0x1d5   :  { %6775 = vst [vmem:[#allocation96_spill] sm:$0xff] %v4767_v59  ;;  %6776 = vst [vmem:[#allocation97_spill] sm:$0xff] %v4769_v44  ;;  %v1859_v8 = vrot.slane %v1844_v53, 4 }
 0x1d6   :  { %1787 = vrot.lane.b32.xlu1 %v1780_v60, %s4020_s10  ;;  %1821 = vrot.lane.b32.xlu0 %v1813_v37, %s4020_s10  ;;  %v1843_v60 = vmul.f32 %v4462_v58, %v1838_v30  ;;  %v1851_v37 = vrot.slane %v1839_v25, 4  ;;  %v1855_v20 = vsel %vm276_vm6, %v1852_v31, %v1854_v35 }
 0x1d8   :  { %v4778_v32 = vpop.permute.xlu1 %1255  ;;  %v4780_v9 = vpop.permute.xlu0 %1289  ;;  %v1853_v1 = vsel %vm276_vm6, %v1851_v37, %v1852_v31  ;;  %v1857_v44 = vrot.slane %v1843_v60, 4  ;;  %v1882_v37 = vmul.f32 %v4457_v57, %v1878_v2 }
 0x1d9   :  { %6777 = vst [vmem:[#allocation98_spill] sm:$0xff] %v4778_v32  ;;  %6778 = vst [vmem:[#allocation99_spill] sm:$0xff] %v4780_v9  ;;  %v1856_v32 = vrot.slane %v1842_v54, 4 }
 0x1da   :  { %1823 = vrot.lane.b32.xlu1 %v1815_v51, %s4020_s10  ;;  %1825 = vrot.lane.b32.xlu0 %v1818_v33, %s4020_s10  ;;  %v1880_v51 = vmul.f32 %v4444_v36, %v1878_v2  ;;  %v1881_v33 = vmul.f32 %v4482_v15, %v1878_v2 }
 0x1db   :  { %v1858_v54 = vsel %vm276_vm6, %v1856_v32, %v1857_v44  ;;  %v1891_v32 = vrot.slane %v1879_v16, 5  ;;  %v4841_v16 = vstv %s4799_s18  ;;  %s5497_s18 = sld [smem:[#allocation8 + $0x31]] }
 0x1dc   :  { %v4789_v59 = vpop.permute.xlu1 %1291  ;;  %v4791_v9 = vpop.permute.xlu0 %1293  ;;  %v1892_v60 = vrot.slane %v1880_v51, 5  ;;  %v1860_v51 = vsel %vm276_vm6, %v1857_v44, %v1859_v8  ;;  %v4844_v44 = vstv %s4803_s19  ;;  %s5506_s19 = sld [smem:[#allocation8 + $0x3f]] }
 0x1dd   :  { %6779 = vst [vmem:[#allocation100_spill] sm:$0xff] %v4789_v59  ;;  %6780 = vst [vmem:[#allocation101_spill] sm:$0xff] %v4791_v9  ;;  %v1894_v59 = vrot.slane %v1881_v33, 5  ;;  %v200_v4 = vmul.f32 %v4482_v15, %v4844_v44 }
 0x1de   :  { %1827 = vrot.lane.b32.xlu1 %v1820_v23, %s4020_s10  ;;  %1861 = vrot.lane.b32.xlu0 %v1853_v1, %s4020_s10  ;;  %v1883_v23 = vmul.f32 %v4462_v58, %v1878_v2  ;;  %v4815_v1 = vstv %s3802_s14  ;;  %s5485_s14 = sld [smem:[#allocation8 + $0x34]] }
 0x1df   :  { %v4823_v31 = vmul.f32 %v4444_v36, %v4815_v1  ;;  %v165_v34 = vmul.f32 %v4449_v41, %v4815_v1  ;;  %v214_v18 = vrot.slane %v200_v4, 2 }
 0x1e0   :  { %v4806_v30 = vpop.permute.xlu1 %1295  ;;  %v4808_v25 = vpop.permute.xlu0 %1329  ;;  %v1897_v9 = vrot.slane %v1883_v23, 5  ;;  %v1895_v23 = vsel %vm309_vm7, %v1892_v60, %v1894_v59  ;;  %v4872_v59 = vstv %s4817_s1  ;;  %s5512_s1 = sld [smem:[#allocation8 + $0x46]] }
 0x1e1   :  { %6781 = vst [vmem:[#allocation102_spill] sm:$0xff] %v4806_v30  ;;  %6782 = vst [vmem:[#allocation103_spill] sm:$0xff] %v4808_v25  ;;  %v1918_v25 = vstv %s4795_s17  ;;  %v1896_v30 = vrot.slane %v1882_v37, 5  ;;  %v178_v47 = vrot.slane %v165_v34, 1  ;;  %v6787_v34 = vrot.slane %v4823_v31, 1  ;;  %s5489_s17 = sld [smem:[#allocation8 + $0x3b]] }
 0x1e2   :  { %1863 = vrot.lane.b32.xlu1 %v1855_v20, %s4020_s10  ;;  %1865 = vrot.lane.b32.xlu0 %v1858_v54, %s4020_s10  ;;  %v1884_v20 = vmul.f32 %v4497_v52, %v1878_v2  ;;  %v1893_v54 = vsel %vm309_vm7, %v1891_v32, %v1892_v60  ;;  %v1920_v14 = vmul.f32 %v4444_v36, %v1918_v25 }
 0x1e3   :  { %v1919_v2 = vmul.f32 %v4449_v41, %v1918_v25  ;;  %v1923_v8 = vmul.f32 %v4462_v58, %v1918_v25  ;;  %v198_v60 = vmul.f32 %v4449_v41, %v4844_v44  ;;  %v1924_v42 = vmul.f32 %v4497_v52, %v1918_v25 }
 0x1e4   :  { %v4827_v35 = vpop.permute.xlu1 %1331  ;;  %v4829_v53 = vpop.permute.xlu0 %1333  ;;  %v1899_v32 = vrot.slane %v1884_v20, 5  ;;  %v4903_v52 = vstv %s4848_s21  ;;  %v233_v3 = vmul.f32 %v4482_v15, %v4872_v59  ;;  %s5533_s21 = sld [smem:[#allocation8 + $0x42]] }
 0x1e5   :  { %6783 = vst [vmem:[#allocation104_spill] sm:$0xff] %v4827_v35  ;;  %6784 = vst [vmem:[#allocation105_spill] sm:$0xff] %v4829_v53  ;;  %v1932_v35 = vrot.slane %v1920_v14, 6  ;;  %v1922_v53 = vmul.f32 %v4457_v57, %v1918_v25  ;;  %v155_v14 = vmul.f32 %v4449_v41, %v4841_v16  ;;  %v4875_v57 = vstv %s4825_s20  ;;  %s5518_s20 = sld [smem:[#allocation8 + $0x4d]] }
 0x1e6   :  { %1867 = vrot.lane.b32.xlu1 %v1860_v51, %s4020_s10  ;;  %1901 = vrot.lane.b32.xlu0 %v1893_v54, %s4020_s10  ;;  %v1921_v51 = vmul.f32 %v4482_v15, %v1918_v25  ;;  %v1898_v54 = vsel %vm309_vm7, %v1896_v30, %v1897_v9  ;;  %v1931_v58 = vrot.slane %v1919_v2, 6  ;;  %v180_v30 = vsel %vm177_vm3, %v178_v47, %v6787_v34 }
 0x1e7   :  { %v1936_v2 = vrot.slane %v1922_v53, 6  ;;  %v1937_v19 = vrot.slane %v1923_v8, 6  ;;  %v4894_v34 = vmul.f32 %v4444_v36, %v4872_v59  ;;  %v264_v53 = vmul.f32 %v4449_v41, %v4875_v57 }
 0x1e8   :  { %v4850_v33 = vpop.permute.xlu1 %1335  ;;  %v4852_v37 = vpop.permute.xlu0 %1369  ;;  %v1933_v7 = vsel %vm342_vm8, %v1931_v58, %v1932_v35  ;;  %v1939_v58 = vrot.slane %v1924_v42, 6  ;;  %v297_v42 = vmul.f32 %v4449_v41, %v4903_v52  ;;  %v4956_v24 = vmul.f32 %v4444_v36, %v4903_v52 }
 0x1e9   :  { %6785 = vst [vmem:[#allocation106_spill] sm:$0xff] %v4850_v33  ;;  %6786 = vst [vmem:[#allocation107_spill] sm:$0xff] %v4852_v37  ;;  %v4863_v33 = vmul.f32 %v4444_v36, %v4844_v44  ;;  %v1934_v37 = vrot.slane %v1921_v51, 6  ;;  %v4911_v51 = vld [vmem:[#allocation3] sm:$0xff] }
 0x1ea   :  { %1903 = vrot.lane.b32.xlu1 %v1895_v23, %s4020_s10  ;;  %1905 = vrot.lane.b32.xlu0 %v1898_v54, %s4020_s10  ;;  %v1900_v54 = vsel %vm309_vm7, %v1897_v9, %v1899_v32  ;;  %v211_v9 = vrot.slane %v198_v60, 2  ;;  %v231_v32 = vmul.f32 %v4449_v41, %v4872_v59  ;;  %v4916_v60 = vld [vmem:[#allocation3 + $0x8] sm:$0xff] }
 0x1eb   :  { %v6677_v47 = vrot.slane %v4863_v33, 2 }
 0x1ec   :  { %v4884_v20 = vpop.permute.xlu1 %1371  ;;  %v4886_v23 = vpop.permute.xlu0 %1373 }
 0x1ed   :  { %6788 = vst [vmem:[#allocation108_spill] sm:$0xff] %v4884_v20  ;;  %6789 = vst [vmem:[#allocation109_spill] sm:$0xff] %v4886_v23  ;;  %v192_v20 = vadd.f32 %v180_v30, %v155_v14  ;;  %v1938_v14 = vsel %vm342_vm8, %v1936_v2, %v1937_v19  ;;  %v2160_v30 = vstv %s4859_s23  ;;  %v244_v2 = vrot.slane %v231_v32, 3  ;;  %v4948_v32 = vld [vmem:[#allocation3 + $0x20] sm:$0xff]  ;;  %s5582_s23 = sld [smem:[#allocation8 + $0x54]] }
 0x1ee   :  { %1907 = vrot.lane.b32.xlu1 %v1900_v54, %s4020_s10  ;;  %1941 = vrot.lane.b32.xlu0 %v1933_v7, %s4020_s10  ;;  %v1935_v7 = vsel %vm342_vm8, %v1932_v35, %v1934_v37  ;;  %v213_v54 = vsel %vm210_vm4, %v211_v9, %v6677_v47  ;;  %v2186_v35 = vstv %s4867_s24  ;;  %v4932_v23 = vstv %s4882_s26  ;;  %s5597_s24 = sld [smem:[#allocation8 + $0x49]] }
 0x1ef   :  { %v225_v37 = vadd.f32 %v213_v54, %v192_v20  ;;  %v2161_v47 = vmul.f32 %v2160_v30, %v4911_v51  ;;  %v2187_v20 = vmul.f32 %v2186_v35, %v4911_v51  ;;  %v6794_v54 = vrot.slane %v4894_v34, 3  ;;  %s5670_s26 = sld [smem:[#allocation8 + $0x50]] }
 0x1f0   :  { %v4905_v25 = vpop.permute.xlu1 %1375  ;;  %v4907_v8 = vpop.permute.xlu0 %1409  ;;  %v4962_v11 = vmul.f32 %v4449_v41, %v4932_v23  ;;  %v2163_v48 = vmul.f32 %v2160_v30, %v4941_v12  ;;  %v4981_v0 = vmul.f32 %v2186_v35, %v4948_v32  ;;  %v2164_v29 = vmul.f32 %v2160_v30, %v4948_v32 }
 0x1f1   :  { %6790 = vst [vmem:[#allocation110_spill] sm:$0xff] %v4905_v25  ;;  %6791 = vst [vmem:[#allocation111_spill] sm:$0xff] %v4907_v8  ;;  %v4924_v8 = vmul.f32 %v4444_v36, %v4875_v57  ;;  %v4939_v25 = vld [vmem:[#allocation3 + $0x10] sm:$0x3f]  ;;  %v2162_v36 = vmul.f32 %v2160_v30, %v4916_v60 }
 0x1f2   :  { %1943 = vrot.lane.b32.xlu1 %v1935_v7, %s4020_s10  ;;  %1945 = vrot.lane.b32.xlu0 %v1938_v14, %s4020_s10  ;;  %v1940_v7 = vsel %vm342_vm8, %v1937_v19, %v1939_v58  ;;  %v4946_v14 = vmul.f32 %v2186_v35, %v4916_v60  ;;  %v310_v58 = vrot.slane %v297_v42, 5  ;;  %v2190_v42 = vmul.f32 %v2186_v35, %v4941_v12 }
 0x1f4   :  { %v4934_v22 = vpop.permute.xlu1 %1411  ;;  %v4936_v9 = vpop.permute.xlu0 %1413  ;;  %v2200_v41 = vrot.slane %v4946_v14, 1  ;;  %v3934_v14 = vld [vmem:[#allocation2 + $0x8] sm:$0xff]  ;;  %v2204_v28 = vrot.slane %v2190_v42, 1 }
 0x1f5   :  { %6792 = vst [vmem:[#allocation112_spill] sm:$0xff] %v4934_v22  ;;  %6793 = vst [vmem:[#allocation113_spill] sm:$0xff] %v4936_v9  ;;  %v246_v22 = vsel %vm243_vm5, %v244_v2, %v6794_v54  ;;  %v277_v9 = vrot.slane %v264_v53, 4  ;;  %v167_v2 = vmul.f32 %v4482_v15, %v4815_v1  ;;  %v4996_v46 = vmul.f32 %v3934_v14, %v4932_v23 }
 0x1f6   :  { %1947 = vrot.lane.b32.xlu1 %v1940_v7, %s4020_s10  ;;  %2169 = vrot.lane.b32.xlu0 %v2161_v47, %s4015_s22  ;;  %v258_v19 = vadd.f32 %v246_v22, %v225_v37  ;;  %v2189_v7 = vmul.f32 %v2186_v35, %v4939_v25  ;;  %v4974_v47 = vstv %s4909_s28  ;;  %v4976_v22 = vld [vmem:[#allocation3 + $0x28] sm:$0x3f]  ;;  %v2199_v37 = vrot.slane %v2187_v20, 1  ;;  %s5740_s28 = sld [smem:[#allocation8 + $0x57]] }
 0x1f7   :  { %v5034_v4 = vmul.f32 %v4974_v47, %v4948_v32 }
 0x1f8   :  { %v4966_v53 = vpop.permute.xlu1 %1415  ;;  %v4968_v54 = vpop.permute.xlu0 %1435 }
 0x1f9   :  { %6795 = vst [vmem:[#allocation114_spill] sm:$0xff] %v4966_v53  ;;  %6796 = vst [vmem:[#allocation115_spill] sm:$0xff] %v4968_v54  ;;  %v6797_v54 = vrot.slane %v4924_v8, 4 }
 0x1fa   :  { %2171 = vrot.lane.b32.xlu1 %v2162_v36, %s4015_s22  ;;  %2173 = vrot.lane.b32.xlu0 %v2163_v48, %s4015_s22  ;;  %v2192_v36 = vmul.f32 %v2186_v35, %v4976_v22  ;;  %v2227_v48 = vmul.f32 %v4974_v47, %v4911_v51  ;;  %v247_v35 = vrot.slane %v233_v3, 3 }
 0x1fb   :  { %v279_v53 = vsel %vm276_vm6, %v277_v9, %v6797_v54  ;;  %v181_v9 = vrot.slane %v167_v2, 1  ;;  %v266_v54 = vmul.f32 %v4482_v15, %v4875_v57  ;;  %v2202_v2 = vrot.slane %v2189_v7, 1 }
 0x1fc   :  { %v291_v20 = vadd.f32 %v279_v53, %v258_v19  ;;  %v5000_v21 = vpop.permute.xlu1 %1437  ;;  %v5002_v43 = vpop.permute.xlu0 %1439  ;;  %v2228_v19 = vmul.f32 %v4974_v47, %v4916_v60  ;;  %v2201_v53 = vsel %vm177_vm3, %v2199_v37, %v2200_v41  ;;  %v2205_v15 = vrot.slane %v4981_v0, 1 }
 0x1fd   :  { %6798 = vst [vmem:[#allocation116_spill] sm:$0xff] %v5000_v21  ;;  %6799 = vst [vmem:[#allocation117_spill] sm:$0xff] %v5002_v43  ;;  %v6800_v21 = vrot.slane %v4956_v24, 5  ;;  %v280_v6 = vrot.slane %v266_v54, 4  ;;  %v156_v7 = vmul.f32 %v3934_v14, %v4841_v16  ;;  %v2229_v0 = vmul.f32 %v4974_v47, %v4939_v25 }
 0x1fe   :  { %2175 = vrot.lane.b32.xlu1 %v2164_v29, %s4015_s22  ;;  %2209 = vrot.lane.b32.xlu0 %v2201_v53, %s4015_s22  ;;  %v6801_v37 = vrot.slane %v4823_v31, 1  ;;  %v2207_v29 = vrot.slane %v2192_v36, 1  ;;  %v2203_v42 = vsel %vm177_vm3, %v2200_v41, %v2202_v2  ;;  %v2206_v31 = vsel %vm177_vm3, %v2204_v28, %v2205_v15 }
 0x1ff   :  { %v312_v43 = vsel %vm309_vm7, %v310_v58, %v6800_v21  ;;  %v2240_v14 = vrot.slane %v2228_v19, 2  ;;  %v6804_v53 = vrot.slane %v4863_v33, 2  ;;  %v2266_v41 = vstv %s4993_s29  ;;  %v5055_v19 = vld [vmem:[#allocation2 + $0x18] sm:$0xff]  ;;  %s5836_s29 = sld [smem:[#allocation8 + $0x5e]] }
 0x200   :  { %v5018_v17 = vadd.f32 %v312_v43, %v291_v20  ;;  %v182_v21 = vsel %vm177_vm3, %v6801_v37, %v181_v9  ;;  %v5026_v58 = vpop.permute.xlu1 %1441  ;;  %v5028_v3 = vpop.permute.xlu0 %1475  ;;  %v2230_v43 = vmul.f32 %v4974_v47, %v4941_v12  ;;  %v2239_v20 = vrot.slane %v2227_v48, 2  ;;  %v3935_v9 = vld [vmem:[#allocation2 + $0x10] sm:$0x3f] }
 0x201   :  { %6802 = vst [vmem:[#allocation118_spill] sm:$0xff] %v5026_v58  ;;  %6803 = vst [vmem:[#allocation119_spill] sm:$0xff] %v5028_v3  ;;  %v5041_v54 = vmul.f32 %v3935_v9, %v4903_v52  ;;  %v5044_v36 = vmul.f32 %v3935_v9, %v4932_v23  ;;  %v215_v37 = vsel %vm210_vm4, %v6804_v53, %v214_v18  ;;  %v6805_v28 = vrot.slane %v4894_v34, 3 }
 0x202   :  { %2211 = vrot.lane.b32.xlu1 %v2203_v42, %s4015_s22  ;;  %2213 = vrot.lane.b32.xlu0 %v2206_v31, %s4015_s22  ;;  %v193_v2 = vadd.f32 %v182_v21, %v156_v7  ;;  %v168_v9 = vmul.f32 %v5055_v19, %v4815_v1  ;;  %v2242_v30 = vrot.slane %v2229_v0, 2  ;;  %v6806_v33 = vrot.slane %v4924_v8, 4 }
 0x203   :  { %v248_v48 = vsel %vm243_vm5, %v6805_v28, %v247_v35  ;;  %v2244_v7 = vrot.slane %v2230_v43, 2  ;;  %v2245_v34 = vrot.slane %v5034_v4, 2  ;;  %v2232_v35 = vmul.f32 %v4974_v47, %v4976_v22  ;;  %v5080_v43 = vld [vmem:[#allocation2 + $0x20] sm:$0xff] }
 0x204   :  { %v5062_v18 = vsel %vm276_vm6, %v6806_v33, %v280_v6  ;;  %v5064_v42 = vpop.permute.xlu1 %1477  ;;  %v5066_v31 = vpop.permute.xlu0 %1479  ;;  %v2208_v21 = vsel %vm177_vm3, %v2205_v15, %v2207_v29  ;;  %v2241_v53 = vsel %vm210_vm4, %v2239_v20, %v2240_v14  ;;  %v2267_v0 = vmul.f32 %v2266_v41, %v4911_v51 }
 0x205   :  { %6807 = vst [vmem:[#allocation120_spill] sm:$0xff] %v5064_v42  ;;  %6808 = vst [vmem:[#allocation121_spill] sm:$0xff] %v5066_v31  ;;  %v2268_v8 = vmul.f32 %v2266_v41, %v4916_v60  ;;  %v5078_v28 = vmul.f32 %v5055_v19, %v4841_v16  ;;  %v5084_v47 = vmul.f32 %v5080_v43, %v4815_v1  ;;  %v183_v4 = vrot.slane %v168_v9, 1 }
 0x206   :  { %v5088_v15 = vmul.f32 %v5055_v19, %v4844_v44  ;;  %2215 = vrot.lane.b32.xlu1 %v2208_v21, %s4015_s22  ;;  %2249 = vrot.lane.b32.xlu0 %v2241_v53, %s4015_s22  ;;  %v226_v29 = vadd.f32 %v215_v37, %v193_v2  ;;  %v5094_v20 = vmul.f32 %v5080_v43, %v4844_v44  ;;  %v2247_v58 = vrot.slane %v2232_v35, 2 }
 0x207   :  { %v2243_v33 = vsel %vm210_vm4, %v2240_v14, %v2242_v30  ;;  %v2246_v3 = vsel %vm210_vm4, %v2244_v7, %v2245_v34  ;;  %v2269_v31 = vmul.f32 %v2266_v41, %v4939_v25  ;;  %v2306_v21 = vstv %s5036_s3  ;;  %s5930_s3 = sld [smem:[#allocation8 + $0x3c]] }
 0x208   :  { %v5097_v6 = vpop.permute.xlu1 %1481  ;;  %v5099_v42 = vpop.permute.xlu0 %1515  ;;  %v2279_v37 = vrot.slane %v2267_v0, 3  ;;  %v2280_v2 = vrot.slane %v2268_v8, 3  ;;  %v2270_v9 = vmul.f32 %v2266_v41, %v4941_v12  ;;  %v2271_v53 = vmul.f32 %v2266_v41, %v4948_v32 }
 0x209   :  { %6809 = vst [vmem:[#allocation122_spill] sm:$0xff] %v5097_v6  ;;  %6810 = vst [vmem:[#allocation123_spill] sm:$0xff] %v5099_v42  ;;  %v184_v30 = vrot.slane %v5084_v47, 1  ;;  %v216_v14 = vrot.slane %v5088_v15, 2  ;;  %v234_v42 = vmul.f32 %v5055_v19, %v4872_v59  ;;  %v5114_v7 = vmul.f32 %v5080_v43, %v4872_v59  ;;  %v5123_v47 = vld [vmem:[#allocation2 + $0x28] sm:$0x3f] }
 0x20a   :  { %2251 = vrot.lane.b32.xlu1 %v2243_v33, %s4015_s22  ;;  %2253 = vrot.lane.b32.xlu0 %v2246_v3, %s4015_s22  ;;  %v259_v35 = vadd.f32 %v248_v48, %v226_v29  ;;  %v217_v0 = vrot.slane %v5094_v20, 2  ;;  %v5121_v8 = vmul.f32 %v5055_v19, %v4875_v57  ;;  %v170_v15 = vmul.f32 %v5123_v47, %v4815_v1 }
 0x20b   :  { %v2248_v33 = vsel %vm210_vm4, %v2245_v34, %v2247_v58  ;;  %v2282_v56 = vrot.slane %v2269_v31, 3  ;;  %v2272_v3 = vmul.f32 %v2266_v41, %v4976_v22  ;;  %v2307_v48 = vmul.f32 %v2306_v21, %v4911_v51 }
 0x20c   :  { %v5127_v6 = vpop.permute.xlu1 %1517  ;;  %v5129_v5 = vpop.permute.xlu0 %1519  ;;  %v2281_v29 = vsel %vm243_vm5, %v2279_v37, %v2280_v2  ;;  %v2284_v20 = vrot.slane %v2270_v9, 3  ;;  %v2285_v55 = vrot.slane %v2271_v53, 3  ;;  %v2308_v40 = vmul.f32 %v2306_v21, %v4916_v60 }
 0x20d   :  { %6811 = vst [vmem:[#allocation124_spill] sm:$0xff] %v5127_v6  ;;  %6812 = vst [vmem:[#allocation125_spill] sm:$0xff] %v5129_v5  ;;  %v185_v1 = vsel %vm177_vm3, %v183_v4, %v184_v30  ;;  %v249_v38 = vrot.slane %v234_v42, 3  ;;  %v5140_v58 = vmul.f32 %v5080_v43, %v4875_v57  ;;  %v5146_v41 = vmul.f32 %v5055_v19, %v4903_v52 }
 0x20e   :  { %2255 = vrot.lane.b32.xlu1 %v2248_v33, %s4015_s22  ;;  %2289 = vrot.lane.b32.xlu0 %v2281_v29, %s4015_s22  ;;  %v186_v31 = vrot.slane %v170_v15, 1  ;;  %v203_v34 = vmul.f32 %v5123_v47, %v4844_v44  ;;  %v2309_v42 = vmul.f32 %v2306_v21, %v4939_v25  ;;  %v2283_v9 = vsel %vm243_vm5, %v2280_v2, %v2282_v56 }
 0x20f   :  { %v2287_v53 = vrot.slane %v2272_v3, 3  ;;  %v2319_v33 = vrot.slane %v2307_v48, 4  ;;  %v2346_v6 = vstv %s5104_s4  ;;  %v2286_v29 = vsel %vm243_vm5, %v2284_v20, %v2285_v55  ;;  %s5939_s4 = sld [smem:[#allocation8 + $0x35]] }
 0x210   :  { %v5151_v4 = vpop.permute.xlu1 %1521  ;;  %v5153_v37 = vpop.permute.xlu0 %1555  ;;  %v2320_v5 = vrot.slane %v2308_v40, 4  ;;  %v2310_v27 = vmul.f32 %v2306_v21, %v4941_v12  ;;  %v2311_v15 = vmul.f32 %v2306_v21, %v4948_v32  ;;  %v5163_v44 = vadd.f32 %v5062_v18, %v259_v35 }
 0x211   :  { %6813 = vst [vmem:[#allocation126_spill] sm:$0xff] %v5151_v4  ;;  %6814 = vst [vmem:[#allocation127_spill] sm:$0xff] %v5153_v37  ;;  %v194_v4 = vadd.f32 %v185_v1, %v5078_v28  ;;  %v218_v37 = vsel %vm210_vm4, %v216_v14, %v217_v0  ;;  %v282_v56 = vrot.slane %v5121_v8, 4  ;;  %v187_v40 = vsel %vm177_vm3, %v184_v30, %v186_v31 }
 0x212   :  { %2291 = vrot.lane.b32.xlu1 %v2283_v9, %s4015_s22  ;;  %2293 = vrot.lane.b32.xlu0 %v2286_v29, %s4015_s22  ;;  %v219_v2 = vrot.slane %v203_v34, 2  ;;  %v236_v3 = vmul.f32 %v5123_v47, %v4872_v59  ;;  %v2322_v48 = vrot.slane %v2309_v42, 4  ;;  %v158_v18 = vmul.f32 %v5080_v43, %v4841_v16 }
 0x213   :  { %v2312_v14 = vmul.f32 %v2306_v21, %v4976_v22  ;;  %v2347_v8 = vmul.f32 %v2346_v6, %v4911_v51  ;;  %v2348_v20 = vmul.f32 %v2346_v6, %v4916_v60  ;;  %v2288_v30 = vsel %vm243_vm5, %v2285_v55, %v2287_v53 }
 0x214   :  { %v5175_v35 = vpop.permute.xlu1 %1557  ;;  %v5177_v28 = vpop.permute.xlu0 %1559  ;;  %v2321_v1 = vsel %vm276_vm6, %v2319_v33, %v2320_v5  ;;  %v2324_v31 = vrot.slane %v2310_v27, 4  ;;  %v2325_v59 = vrot.slane %v2311_v15, 4  ;;  %v6815_v34 = vrot.slane %v5114_v7, 3 }
 0x215   :  { %v283_v42 = vrot.slane %v5140_v58, 4  ;;  %v5190_v9 = vmul.f32 %v5080_v43, %v4903_v52  ;;  %v195_v21 = vadd.f32 %v187_v40, %v158_v18  ;;  %v220_v55 = vsel %vm210_vm4, %v217_v0, %v219_v2 }
 0x216   :  { %v251_v16 = vsel %vm243_vm5, %v249_v38, %v6815_v34  ;;  %2295 = vrot.lane.b32.xlu1 %v2288_v30, %s4015_s22  ;;  %2329 = vrot.lane.b32.xlu0 %v2321_v1, %s4015_s22  ;;  %v252_v27 = vrot.slane %v236_v3, 3  ;;  %v269_v53 = vmul.f32 %v5123_v47, %v4875_v57  ;;  %v2323_v38 = vsel %vm276_vm6, %v2320_v5, %v2322_v48 }
 0x217   :  { %v2327_v29 = vrot.slane %v2312_v14, 4  ;;  %v2359_v15 = vrot.slane %v2347_v8, 5  ;;  %v2360_v40 = vrot.slane %v2348_v20, 5  ;;  %v2349_v18 = vmul.f32 %v2346_v6, %v4939_v25 }
 0x218   :  { %v5198_v33 = vpop.permute.xlu1 %1561  ;;  %v5200_v58 = vpop.permute.xlu0 %1595  ;;  %v2326_v30 = vsel %vm276_vm6, %v2324_v31, %v2325_v59  ;;  %v2350_v1 = vmul.f32 %v2346_v6, %v4941_v12  ;;  %v2351_v0 = vmul.f32 %v2346_v6, %v4948_v32  ;;  %v2386_v2 = vstv %s5160_s5  ;;  %s5985_s5 = sld [smem:[#allocation8 + $0x43]] }
 0x219   :  { %v313_v57 = vrot.slane %v5041_v54, 5  ;;  %v227_v3 = vadd.f32 %v218_v37, %v194_v4  ;;  %v5210_v5 = vmul.f32 %v5055_v19, %v4932_v23  ;;  %v228_v48 = vadd.f32 %v220_v55, %v195_v21 }
 0x21a   :  { %2331 = vrot.lane.b32.xlu1 %v2323_v38, %s4015_s22  ;;  %2333 = vrot.lane.b32.xlu0 %v2326_v30, %s4015_s22  ;;  %v284_v14 = vsel %vm276_vm6, %v282_v56, %v283_v42  ;;  %v6816_v8 = vmov %v6815_v34  ;;  %v285_v31 = vrot.slane %v269_v53, 4  ;;  %v302_v54 = vmul.f32 %v5123_v47, %v4903_v52 }
 0x21b   :  { %v253_v20 = vsel %vm243_vm5, %v6816_v8, %v252_v27  ;;  %v2328_v19 = vsel %vm276_vm6, %v2325_v59, %v2327_v29  ;;  %v2362_v34 = vrot.slane %v2349_v18, 5  ;;  %v2352_v21 = vmul.f32 %v2346_v6, %v4976_v22 }
 0x21c   :  { %v5220_v4 = vpop.permute.xlu1 %1597  ;;  %v5222_v37 = vpop.permute.xlu0 %1599  ;;  %v2387_v55 = vmul.f32 %v2386_v2, %v4911_v51  ;;  %v2361_v56 = vsel %vm309_vm7, %v2359_v15, %v2360_v40  ;;  %v2364_v7 = vrot.slane %v2350_v1, 5  ;;  %v2365_v38 = vrot.slane %v2351_v0, 5 }
 0x21d   :  { %v2388_v27 = vmul.f32 %v2386_v2, %v4916_v60  ;;  %v260_v53 = vadd.f32 %v251_v16, %v227_v3  ;;  %v315_v52 = vrot.slane %v5146_v41, 5  ;;  %v334_v30 = vmul.f32 %v5080_v43, %v4932_v23 }
 0x21e   :  { %v261_v8 = vadd.f32 %v253_v20, %v228_v48  ;;  %2335 = vrot.lane.b32.xlu1 %v2328_v19, %s4015_s22  ;;  %2369 = vrot.lane.b32.xlu0 %v2361_v56, %s4015_s22  ;;  %v316_v6 = vrot.slane %v5190_v9, 5  ;;  %v286_v59 = vsel %vm276_vm6, %v283_v42, %v285_v31  ;;  %v318_v29 = vrot.slane %v302_v54, 5 }
 0x21f   :  { %v335_v15 = vmul.f32 %v5123_v47, %v4932_v23  ;;  %v2363_v41 = vsel %vm309_vm7, %v2360_v40, %v2362_v34  ;;  %v2367_v43 = vrot.slane %v2352_v21, 5  ;;  %v2399_v1 = vrot.slane %v2387_v55, 6 }
 0x220   :  { %v5238_v18 = vpop.permute.xlu1 %1601  ;;  %v5240_v16 = vpop.permute.xlu0 %1635  ;;  %v2389_v0 = vmul.f32 %v2386_v2, %v4939_v25  ;;  %v2366_v9 = vsel %vm309_vm7, %v2364_v7, %v2365_v38  ;;  %v2400_v3 = vrot.slane %v2388_v27, 6  ;;  %v2390_v42 = vmul.f32 %v2386_v2, %v4941_v12 }
 0x221   :  { %v2391_v48 = vmul.f32 %v2386_v2, %v4948_v32  ;;  %v346_v23 = vrot.slane %v5044_v36, 6  ;;  %v6817_v47 = vrot.slane %v4956_v24, 5  ;;  %v293_v20 = vadd.f32 %v284_v14, %v260_v53 }
 0x222   :  { %v294_v31 = vadd.f32 %v286_v59, %v261_v8  ;;  %2371 = vrot.lane.b32.xlu1 %v2363_v41, %s4015_s22  ;;  %2373 = vrot.lane.b32.xlu0 %v2366_v9, %s4015_s22  ;;  %v317_v19 = vsel %vm309_vm7, %v315_v52, %v316_v6  ;;  %v348_v34 = vrot.slane %v5210_v5, 6  ;;  %v349_v21 = vrot.slane %v334_v30, 6 }
 0x223   :  { %v314_v40 = vsel %vm309_vm7, %v6817_v47, %v313_v57  ;;  %v319_v55 = vsel %vm309_vm7, %v316_v6, %v318_v29  ;;  %v351_v36 = vrot.slane %v335_v15, 6  ;;  %v2368_v57 = vsel %vm309_vm7, %v2365_v38, %v2367_v43 }
 0x224   :  { %v325_v54 = vadd.f32 %v314_v40, %v5163_v44  ;;  %v5261_v56 = vpop.permute.xlu1 %1637  ;;  %v5263_v24 = vpop.permute.xlu0 %1639  ;;  %v2402_v14 = vrot.slane %v2389_v0, 6  ;;  %v2401_v7 = vsel %vm342_vm8, %v2399_v1, %v2400_v3  ;;  %v2404_v27 = vrot.slane %v2390_v42, 6 }
 0x225   :  { %v2405_v44 = vrot.slane %v2391_v48, 6  ;;  %v2392_v53 = vmul.f32 %v2386_v2, %v4976_v22  ;;  %v6818_v5 = vrot.slane %v4996_v46, 6  ;;  %v6819_v52 = vrot.slane %v4962_v11, 6 }
 0x226   :  { %v326_v8 = vadd.f32 %v317_v19, %v293_v20  ;;  %v327_v6 = vadd.f32 %v319_v55, %v294_v31  ;;  %2375 = vrot.lane.b32.xlu1 %v2368_v57, %s4015_s22  ;;  %2409 = vrot.lane.b32.xlu0 %v2401_v7, %s4015_s22  ;;  %v350_v15 = vsel %vm342_vm8, %v348_v34, %v349_v21  ;;  %v2426_v1 = vstv %s5244_s6  ;;  %s6032_s6 = sld [smem:[#allocation8 + $0x4a]] }
 0x227   :  { %v345_v30 = vsel %vm342_vm8, %v6819_v52, %v6818_v5  ;;  %v6820_v59 = vmov %v6818_v5  ;;  %v352_v11 = vsel %vm342_vm8, %v349_v21, %v351_v36  ;;  %v2403_v0 = vsel %vm342_vm8, %v2400_v3, %v2402_v14  ;;  %v6823_v5 = vld [vmem:[#allocation22_spill] sm:$0xff] }
 0x228   :  { %v357_v38 = vadd.f32 %v345_v30, %v5018_v17  ;;  %v347_v29 = vsel %vm342_vm8, %v6820_v59, %v346_v23  ;;  %v5281_v41 = vpop.permute.xlu1 %1641  ;;  %v5283_v43 = vpop.permute.xlu0 %1675  ;;  %v2406_v9 = vsel %vm342_vm8, %v2404_v27, %v2405_v44  ;;  %v2407_v42 = vrot.slane %v2392_v53, 6  ;;  %v6824_v30 = vld [vmem:[#allocation23_spill] sm:$0xff] }
 0x229   :  { %v358_v2 = vadd.f32 %v347_v29, %v325_v54  ;;  %v2452_v17 = vstv %s5249_s7  ;;  %v359_v46 = vadd.f32 %v350_v15, %v326_v8  ;;  %v360_v48 = vadd.f32 %v352_v11, %v327_v6  ;;  %v6825_v6 = vld [vmem:[#allocation24_spill] sm:$0xff]  ;;  %s6122_s7 = sld [smem:[#allocation8 + $0x58]] }
 0x22a   :  { %2411 = vrot.lane.b32.xlu1 %v2403_v0, %s4015_s22  ;;  %2413 = vrot.lane.b32.xlu0 %v2406_v9, %s4015_s22  ;;  %v383_v23 = vadd.f32 %v4258_v39, %v357_v38  ;;  %v2427_v54 = vmul.f32 %v2426_v1, %v4911_v51  ;;  %v2453_v19 = vmul.f32 %v2452_v17, %v4911_v51 }
 0x22b   :  { %v384_v47 = vadd.f32 %v4267_v49, %v358_v2  ;;  %v385_v40 = vadd.f32 %v4269_v50, %v359_v46  ;;  %v386_v3 = vadd.f32 %v4278_v63, %v360_v48  ;;  %v2408_v39 = vsel %vm342_vm8, %v2405_v44, %v2407_v42 }
 0x22c   :  { %v5297_v20 = vpop.permute.xlu1 %1677  ;;  %v5299_v31 = vpop.permute.xlu0 %1679  ;;  %v423_v34 = vadd.f32 %v4324_v45, %v383_v23  ;;  %v2454_v49 = vmul.f32 %v2452_v17, %v4916_v60  ;;  %v2428_v57 = vmul.f32 %v2426_v1, %v4916_v60  ;;  %v2429_v14 = vmul.f32 %v2426_v1, %v4941_v12  ;;  %v6827_v23 = vld [vmem:[#allocation25_spill] sm:$0xff] }
 0x22d   :  { %6821 = vst [vmem:[#allocation128_spill] sm:$0xff] %v5297_v20  ;;  %v424_v21 = vadd.f32 %v4333_v61, %v384_v47  ;;  %v425_v50 = vadd.f32 %v4335_v62, %v385_v40  ;;  %v426_v63 = vadd.f32 %v4344_v10, %v386_v3  ;;  %v2465_v7 = vrot.slane %v2453_v19, 1  ;;  %v6828_v40 = vld [vmem:[#allocation26_spill] sm:$0xff]  ;;  %v6830_v19 = vld [vmem:[#allocation28_spill] sm:$0xff] }
 0x22e   :  { %2415 = vrot.lane.b32.xlu1 %v2408_v39, %s4015_s22  ;;  %2435 = vrot.lane.b32.xlu0 %v2427_v54, %s4016_s25  ;;  %v463_v55 = vadd.f32 %v4346_v13, %v423_v34  ;;  %v2455_v27 = vmul.f32 %v2452_v17, %v4939_v25  ;;  %v2466_v62 = vrot.slane %v2454_v49, 1  ;;  %v2456_v10 = vmul.f32 %v2452_v17, %v4941_v12  ;;  %s5358_s22 = sld [smem:[#allocation8 + $0x4f]] }
 0x22f   :  { %v464_v36 = vadd.f32 %v4355_v26, %v424_v21  ;;  %v2457_v13 = vmul.f32 %v2452_v17, %v4948_v32  ;;  %v2492_v44 = vstv %s5289_s8  ;;  %v6822_v26 = vld [vmem:[#allocation21_spill] sm:$0xff]  ;;  %v466_v52 = vadd.f32 %v6823_v5, %v426_v63  ;;  %v6836_v5 = vld [vmem:[#allocation32_spill] sm:$0xff]  ;;  %s6171_s8 = sld [smem:[#allocation8 + $0x5f]] }
 0x230   :  { %v5315_v45 = vpop.permute.xlu1 %1681  ;;  %v5317_v61 = vpop.permute.xlu0 %1701  ;;  %v465_v53 = vadd.f32 %v6822_v26, %v425_v50  ;;  %v503_v8 = vadd.f32 %v6824_v30, %v463_v55  ;;  %v2430_v2 = vmul.f32 %v2426_v1, %v4948_v32  ;;  %v2468_v15 = vrot.slane %v2455_v27, 1  ;;  %v6829_v1 = vld [vmem:[#allocation27_spill] sm:$0xff]  ;;  %v6833_v27 = vld [vmem:[#allocation29_spill] sm:$0xff] }
 0x231   :  { %v504_v38 = vadd.f32 %v6825_v6, %v464_v36  ;;  %v2458_v11 = vmul.f32 %v2452_v17, %v4976_v22  ;;  %v2493_v0 = vmul.f32 %v2492_v44, %v4911_v51  ;;  %v2467_v9 = vsel %vm177_vm3, %v2465_v7, %v2466_v62  ;;  %v6835_v26 = vld [vmem:[#allocation31_spill] sm:$0xff] }
 0x232   :  { %2437 = vrot.lane.b32.xlu1 %v2428_v57, %s4016_s25  ;;  %2439 = vrot.lane.b32.xlu0 %v2429_v14, %s4016_s25  ;;  %v2470_v42 = vrot.slane %v2456_v10, 1  ;;  %v2471_v46 = vrot.slane %v2457_v13, 1  ;;  %v2494_v48 = vmul.f32 %v2492_v44, %v4916_v60  ;;  %v505_v47 = vadd.f32 %v6827_v23, %v465_v53 }
 0x233   :  { %v506_v3 = vadd.f32 %v6828_v40, %v466_v52  ;;  %v543_v54 = vadd.f32 %v6829_v1, %v503_v8  ;;  %v544_v17 = vadd.f32 %v6830_v19, %v504_v38  ;;  %v2532_v34 = vstv %s5313_s9  ;;  %v6841_v1 = vld [vmem:[#allocation36_spill] sm:$0xff]  ;;  %s6253_s9 = sld [smem:[#allocation8 + $0x36]] }
 0x234   :  { %v5331_v59 = vpop.permute.xlu1 %1703  ;;  %v5333_v29 = vpop.permute.xlu0 %1705  ;;  %v2469_v49 = vsel %vm177_vm3, %v2466_v62, %v2468_v15  ;;  %v2473_v50 = vrot.slane %v2458_v11, 1  ;;  %v2505_v63 = vrot.slane %v2493_v0, 2  ;;  %v2495_v55 = vmul.f32 %v2492_v44, %v4939_v25  ;;  %v6834_v62 = vld [vmem:[#allocation30_spill] sm:$0xff] }
 0x235   :  { %6826 = vst [vmem:[#allocation21_spill] sm:$0xff] %v5331_v59  ;;  %v2472_v36 = vsel %vm177_vm3, %v2470_v42, %v2471_v46  ;;  %v2506_v57 = vrot.slane %v2494_v48, 2  ;;  %v2496_v14 = vmul.f32 %v2492_v44, %v4941_v12  ;;  %v2497_v7 = vmul.f32 %v2492_v44, %v4948_v32  ;;  %v6838_v48 = vld [vmem:[#allocation33_spill] sm:$0xff] }
 0x236   :  { %2441 = vrot.lane.b32.xlu1 %v2430_v2, %s4016_s25  ;;  %2475 = vrot.lane.b32.xlu0 %v2467_v9, %s4016_s25  ;;  %v545_v10 = vadd.f32 %v6833_v27, %v505_v47  ;;  %v546_v13 = vadd.f32 %v6834_v62, %v506_v3  ;;  %v583_v53 = vadd.f32 %v6835_v26, %v543_v54  ;;  %v2508_v6 = vrot.slane %v2495_v55, 2  ;;  %v6839_v47 = vld [vmem:[#allocation34_spill] sm:$0xff]  ;;  %v6921_v59 = vld [vmem:[#allocation73_spill] sm:$0xff] }
 0x237   :  { %v584_v52 = vadd.f32 %v6836_v5, %v544_v17  ;;  %v2498_v38 = vmul.f32 %v2492_v44, %v4976_v22  ;;  %v2533_v2 = vmul.f32 %v2532_v34, %v4911_v51  ;;  %v2534_v15 = vmul.f32 %v2532_v34, %v4916_v60  ;;  %v6840_v44 = vld [vmem:[#allocation35_spill] sm:$0xff] }
 0x238   :  { %v5347_v21 = vpop.permute.xlu1 %1707  ;;  %v5349_v39 = vpop.permute.xlu0 %1741  ;;  %v2474_v11 = vsel %vm177_vm3, %v2471_v46, %v2473_v50  ;;  %v2507_v0 = vsel %vm210_vm4, %v2505_v63, %v2506_v57  ;;  %v2510_v9 = vrot.slane %v2496_v14, 2  ;;  %v2511_v42 = vrot.slane %v2497_v7, 2 }
 0x239   :  { %6831 = vst [vmem:[#allocation22_spill] sm:$0xff] %v5347_v21  ;;  %6832 = vst [vmem:[#allocation23_spill] sm:$0xff] %v5349_v39  ;;  %v585_v23 = vadd.f32 %v6838_v48, %v545_v10  ;;  %v586_v40 = vadd.f32 %v6839_v47, %v546_v13  ;;  %v623_v3 = vadd.f32 %v6840_v44, %v583_v53  ;;  %v2513_v17 = vrot.slane %v2498_v38, 2  ;;  %v6844_v10 = vld [vmem:[#allocation13_spill] sm:$0xff]  ;;  %v6845_v13 = vld [vmem:[#allocation14_spill] sm:$0xff] }
 0x23a   :  { %2477 = vrot.lane.b32.xlu1 %v2469_v49, %s4016_s25  ;;  %2479 = vrot.lane.b32.xlu0 %v2472_v36, %s4016_s25  ;;  %v624_v54 = vadd.f32 %v6841_v1, %v584_v52  ;;  %v2545_v49 = vrot.slane %v2533_v2, 3  ;;  %v2546_v50 = vrot.slane %v2534_v15, 3  ;;  %v2535_v63 = vmul.f32 %v2532_v34, %v4939_v25  ;;  %v6846_v53 = vld [vmem:[#allocation37_spill] sm:$0xff]  ;;  %v6852_v1 = vld [vmem:[#allocation39_spill] sm:$0xff] }
 0x23b   :  { %v2509_v55 = vsel %vm210_vm4, %v2506_v57, %v2508_v6  ;;  %v2512_v36 = vsel %vm210_vm4, %v2510_v9, %v2511_v42  ;;  %v2536_v14 = vmul.f32 %v2532_v34, %v4941_v12  ;;  %v2537_v7 = vmul.f32 %v2532_v34, %v4948_v32  ;;  %v6847_v57 = vld [vmem:[#allocation38_spill] sm:$0xff] }
 0x23c   :  { %v5364_v30 = vpop.permute.xlu1 %1743  ;;  %v5366_v8 = vpop.permute.xlu0 %1745  ;;  %v2572_v27 = vstv %s5358_s22  ;;  %v649_v62 = vadd.f32 %v6844_v10, %v623_v3  ;;  %v650_v26 = vadd.f32 %v6845_v13, %v624_v54  ;;  %v625_v5 = vadd.f32 %v6846_v53, %v585_v23  ;;  %v6850_v23 = vld [vmem:[#allocation15_spill] sm:$0xff]  ;;  %v6851_v3 = vld [vmem:[#allocation16_spill] sm:$0xff]  ;;  %s6260_s22 = sld [smem:[#allocation8 + $0x3d]] }
 0x23d   :  { %6837 = vst [vmem:[#allocation24_spill] sm:$0xff] %v5364_v30  ;;  %v626_v52 = vadd.f32 %v6847_v57, %v586_v40  ;;  %v2514_v2 = vsel %vm210_vm4, %v2511_v42, %v2513_v17  ;;  %v2547_v15 = vsel %vm243_vm5, %v2545_v49, %v2546_v50  ;;  %v2550_v9 = vrot.slane %v2536_v14, 3  ;;  %v6853_v17 = vld [vmem:[#allocation40_spill] sm:$0xff]  ;;  %v6857_v57 = vld [vmem:[#allocation42_spill] sm:$0xff] }
 0x23e   :  { %2481 = vrot.lane.b32.xlu1 %v2474_v11, %s4016_s25  ;;  %2515 = vrot.lane.b32.xlu0 %v2507_v0, %s4016_s25  ;;  %v2548_v11 = vrot.slane %v2535_v63, 3  ;;  %v2538_v0 = vmul.f32 %v2532_v34, %v4976_v22  ;;  %v2551_v48 = vrot.slane %v2537_v7, 3  ;;  %v2573_v47 = vmul.f32 %v2572_v27, %v4911_v51 }
 0x23f   :  { %v2574_v44 = vmul.f32 %v2572_v27, %v4916_v60  ;;  %v651_v40 = vadd.f32 %v6850_v23, %v625_v5  ;;  %v652_v42 = vadd.f32 %v6851_v3, %v626_v52  ;;  %v689_v54 = vadd.f32 %v6852_v1, %v649_v62 }
 0x240   :  { %v5379_v19 = vpop.permute.xlu1 %1747  ;;  %v5381_v46 = vpop.permute.xlu0 %1781  ;;  %v690_v49 = vadd.f32 %v6853_v17, %v650_v26  ;;  %v2575_v14 = vmul.f32 %v2572_v27, %v4939_v25  ;;  %v2576_v7 = vmul.f32 %v2572_v27, %v4941_v12  ;;  %v2552_v10 = vsel %vm243_vm5, %v2550_v9, %v2551_v48  ;;  %v6856_v26 = vld [vmem:[#allocation41_spill] sm:$0xff] }
 0x241   :  { %6842 = vst [vmem:[#allocation25_spill] sm:$0xff] %v5379_v19  ;;  %6843 = vst [vmem:[#allocation26_spill] sm:$0xff] %v5381_v46  ;;  %v2585_v13 = vrot.slane %v2573_v47, 4  ;;  %v2586_v53 = vrot.slane %v2574_v44, 4  ;;  %v2577_v5 = vmul.f32 %v2572_v27, %v4948_v32  ;;  %v2612_v62 = vstv %s5391_s11  ;;  %s6310_s11 = sld [smem:[#allocation8 + $0x44]] }
 0x242   :  { %2517 = vrot.lane.b32.xlu1 %v2509_v55, %s4016_s25  ;;  %2519 = vrot.lane.b32.xlu0 %v2512_v36, %s4016_s25  ;;  %v2549_v55 = vsel %vm243_vm5, %v2546_v50, %v2548_v11  ;;  %v2553_v36 = vrot.slane %v2538_v0, 3  ;;  %v691_v50 = vadd.f32 %v6856_v26, %v651_v40  ;;  %v692_v52 = vadd.f32 %v6857_v57, %v652_v42  ;;  %v6859_v11 = vld [vmem:[#allocation44_spill] sm:$0xff] }
 0x243   :  { %v730_v0 = vadd.f32 %v6859_v11, %v690_v49  ;;  %v2588_v23 = vrot.slane %v2575_v14, 4  ;;  %v2590_v3 = vrot.slane %v2576_v7, 4  ;;  %v2578_v1 = vmul.f32 %v2572_v27, %v4976_v22  ;;  %v6865_v7 = vld [vmem:[#allocation48_spill] sm:$0xff] }
 0x244   :  { %v5397_v6 = vpop.permute.xlu1 %1783  ;;  %v5399_v38 = vpop.permute.xlu0 %1785  ;;  %v2554_v44 = vsel %vm243_vm5, %v2551_v48, %v2553_v36  ;;  %v2587_v17 = vsel %vm276_vm6, %v2585_v13, %v2586_v53  ;;  %v2613_v40 = vmul.f32 %v2612_v62, %v4911_v51  ;;  %v2614_v42 = vmul.f32 %v2612_v62, %v4916_v60  ;;  %v6864_v36 = vld [vmem:[#allocation47_spill] sm:$0xff] }
 0x245   :  { %6848 = vst [vmem:[#allocation27_spill] sm:$0xff] %v5397_v6  ;;  %6849 = vst [vmem:[#allocation28_spill] sm:$0xff] %v5399_v38  ;;  %v770_v27 = vadd.f32 %v6865_v7, %v730_v0  ;;  %v2615_v57 = vmul.f32 %v2612_v62, %v4939_v25  ;;  %v2617_v11 = vmul.f32 %v2612_v62, %v4948_v32  ;;  %v6868_v0 = vld [vmem:[#allocation49_spill] sm:$0xff]  ;;  %v6871_v7 = vld [vmem:[#allocation52_spill] sm:$0xff] }
 0x246   :  { %2521 = vrot.lane.b32.xlu1 %v2514_v2, %s4016_s25  ;;  %2555 = vrot.lane.b32.xlu0 %v2547_v15, %s4016_s25  ;;  %v6858_v2 = vld [vmem:[#allocation43_spill] sm:$0xff] }
 0x247   :  { %v729_v15 = vadd.f32 %v6858_v2, %v689_v54  ;;  %v6862_v54 = vld [vmem:[#allocation45_spill] sm:$0xff]  ;;  %v2616_v2 = vmul.f32 %v2612_v62, %v4941_v12 }
 0x248   :  { %v5412_v34 = vpop.permute.xlu1 %1787  ;;  %v5414_v63 = vpop.permute.xlu0 %1821  ;;  %v731_v49 = vadd.f32 %v6862_v54, %v691_v50 }
 0x249   :  { %6854 = vst [vmem:[#allocation29_spill] sm:$0xff] %v5412_v34  ;;  %6855 = vst [vmem:[#allocation30_spill] sm:$0xff] %v5414_v63  ;;  %v769_v14 = vadd.f32 %v6864_v36, %v729_v15  ;;  %v2652_v15 = vstv %s5424_s12  ;;  %s6330_s12 = sld [smem:[#allocation8 + $0x4b]] }
 0x24a   :  { %2557 = vrot.lane.b32.xlu1 %v2549_v55, %s4016_s25  ;;  %2559 = vrot.lane.b32.xlu0 %v2552_v10, %s4016_s25  ;;  %v2591_v55 = vrot.slane %v2577_v5, 4  ;;  %v6863_v10 = vld [vmem:[#allocation46_spill] sm:$0xff]  ;;  %v2589_v5 = vsel %vm276_vm6, %v2586_v53, %v2588_v23  ;;  %v771_v54 = vadd.f32 %v6868_v0, %v731_v49  ;;  %v6870_v23 = vld [vmem:[#allocation51_spill] sm:$0xff]  ;;  %v2653_v49 = vmul.f32 %v2652_v15, %v4911_v51 }
 0x24b   :  { %v732_v48 = vadd.f32 %v6863_v10, %v692_v52  ;;  %v2625_v52 = vrot.slane %v2613_v40, 5  ;;  %v6869_v10 = vld [vmem:[#allocation50_spill] sm:$0xff]  ;;  %v809_v36 = vadd.f32 %v6870_v23, %v769_v14  ;;  %v2631_v40 = vrot.slane %v2617_v11, 5  ;;  %v6874_v14 = vld [vmem:[#allocation53_spill] sm:$0xff] }
 0x24c   :  { %v5430_v9 = vpop.permute.xlu1 %1823  ;;  %v5432_v47 = vpop.permute.xlu0 %1825  ;;  %v2592_v50 = vsel %vm276_vm6, %v2590_v3, %v2591_v55  ;;  %v2628_v3 = vrot.slane %v2615_v57, 5  ;;  %v6875_v0 = vld [vmem:[#allocation54_spill] sm:$0xff]  ;;  %v2655_v23 = vmul.f32 %v2652_v15, %v4939_v25 }
 0x24d   :  { %6860 = vst [vmem:[#allocation31_spill] sm:$0xff] %v5430_v9  ;;  %6861 = vst [vmem:[#allocation32_spill] sm:$0xff] %v5432_v47  ;;  %v772_v53 = vadd.f32 %v6869_v10, %v732_v48  ;;  %v810_v9 = vadd.f32 %v6871_v7, %v770_v27  ;;  %v2654_v48 = vmul.f32 %v2652_v15, %v4916_v60  ;;  %v6877_v10 = vld [vmem:[#allocation56_spill] sm:$0xff]  ;;  %v6880_v7 = vld [vmem:[#allocation57_spill] sm:$0xff] }
 0x24e   :  { %2561 = vrot.lane.b32.xlu1 %v2554_v44, %s4016_s25  ;;  %2595 = vrot.lane.b32.xlu0 %v2587_v17, %s4016_s25  ;;  %v2593_v44 = vrot.slane %v2578_v1, 4  ;;  %v2626_v17 = vrot.slane %v2614_v42, 5  ;;  %v2630_v1 = vrot.slane %v2616_v2, 5  ;;  %v2618_v42 = vmul.f32 %v2612_v62, %v4976_v22  ;;  %v6876_v2 = vld [vmem:[#allocation55_spill] sm:$0xff]  ;;  %v6917_v47 = vld [vmem:[#allocation72_spill] sm:$0xff] }
 0x24f   :  { %v811_v27 = vadd.f32 %v6874_v14, %v771_v54  ;;  %v812_v57 = vadd.f32 %v6875_v0, %v772_v53  ;;  %v849_v11 = vadd.f32 %v6876_v2, %v809_v36  ;;  %v850_v62 = vadd.f32 %v6877_v10, %v810_v9 }
 0x250   :  { %v5445_v26 = vpop.permute.xlu1 %1827  ;;  %v5447_v13 = vpop.permute.xlu0 %1861  ;;  %v2629_v51 = vsel %vm309_vm7, %v2626_v17, %v2628_v3  ;;  %v2632_v60 = vsel %vm309_vm7, %v2630_v1, %v2631_v40  ;;  %v2665_v54 = vrot.slane %v2653_v49, 6  ;;  %v2666_v53 = vrot.slane %v2654_v48, 6  ;;  %v6883_v3 = vld [vmem:[#allocation60_spill] sm:$0xff] }
 0x251   :  { %6866 = vst [vmem:[#allocation33_spill] sm:$0xff] %v5445_v26  ;;  %6867 = vst [vmem:[#allocation34_spill] sm:$0xff] %v5447_v13  ;;  %v2656_v36 = vmul.f32 %v2652_v15, %v4941_v12  ;;  %v2657_v9 = vmul.f32 %v2652_v15, %v4948_v32  ;;  %v890_v1 = vadd.f32 %v6883_v3, %v850_v62  ;;  %v6885_v32 = vld [vmem:[#allocation62_spill] sm:$0xff]  ;;  %v6895_v3 = vld [vmem:[#allocation63_spill] sm:$0xff] }
 0x252   :  { %2597 = vrot.lane.b32.xlu1 %v2589_v5, %s4016_s25  ;;  %2599 = vrot.lane.b32.xlu0 %v2592_v50, %s4016_s25  ;;  %v2594_v5 = vsel %vm276_vm6, %v2591_v55, %v2593_v44  ;;  %v2627_v50 = vsel %vm309_vm7, %v2625_v52, %v2626_v17  ;;  %v2633_v52 = vrot.slane %v2618_v42, 5  ;;  %v6882_v17 = vld [vmem:[#allocation59_spill] sm:$0xff]  ;;  %v6884_v42 = vld [vmem:[#allocation61_spill] sm:$0xff]  ;;  %v2667_v2 = vsel %vm342_vm8, %v2665_v54, %v2666_v53 }
 0x253   :  { %v889_v25 = vadd.f32 %v6882_v17, %v849_v11  ;;  %v2670_v11 = vrot.slane %v2656_v36, 6  ;;  %v2671_v10 = vrot.slane %v2657_v9, 6  ;;  %v2658_v62 = vmul.f32 %v2652_v15, %v4976_v22  ;;  %v6891_v54 = vld [vmem:[#allocation19_spill] sm:$0xff]  ;;  %v6892_v9 = vld [vmem:[#allocation20_spill] sm:$0xff] }
 0x254   :  { %v5461_v13 = vpop.permute.xlu1 %1863  ;;  %v5463_v26 = vpop.permute.xlu0 %1865  ;;  %v2634_v0 = vsel %vm309_vm7, %v2631_v40, %v2633_v52  ;;  %v5516_v40 = vstv %s5476_s13  ;;  %v6890_v52 = vld [vmem:[#allocation18_spill] sm:$0xff]  ;;  %v2692_v17 = vstv %s5485_s14  ;;  %s6436_s13 = sld [smem:[#allocation8 + $0x59]] }
 0x255   :  { %6872 = vst [vmem:[#allocation35_spill] sm:$0xff] %v5461_v13  ;;  %6873 = vst [vmem:[#allocation36_spill] sm:$0xff] %v5463_v26  ;;  %s6455_s14 = sld [smem:[#allocation8 + $0x60]] }
 0x256   :  { %2601 = vrot.lane.b32.xlu1 %v2594_v5, %s4016_s25  ;;  %2635 = vrot.lane.b32.xlu0 %v2627_v50, %s4016_s25  ;;  %v851_v5 = vadd.f32 %v6880_v7, %v811_v27  ;;  %v6881_v50 = vld [vmem:[#allocation58_spill] sm:$0xff]  ;;  %6889 = vst [vmem:[#allocation15_spill] sm:$0xff] %v5516_v40 }
 0x257   :  { %v852_v14 = vadd.f32 %v6881_v50, %v812_v57  ;;  %v2668_v57 = vrot.slane %v2655_v23, 6  ;;  %v916_v23 = vadd.f32 %v6890_v52, %v890_v1  ;;  %v2672_v50 = vsel %vm342_vm8, %v2670_v11, %v2671_v10 }
 0x258   :  { %v5478_v55 = vpop.permute.xlu1 %1867  ;;  %v5480_v44 = vpop.permute.xlu0 %1901  ;;  %v891_v12 = vadd.f32 %v6884_v42, %v851_v5  ;;  %v6896_v42 = vld [vmem:[#allocation64_spill] sm:$0xff]  ;;  %v5546_v11 = vstv %s5497_s18  ;;  %s3893_s18 = sld [smem:[#allocation8 + $0x3e]] }
 0x259   :  { %6878 = vst [vmem:[#allocation13_spill] sm:$0xff] %v5478_v55  ;;  %6879 = vst [vmem:[#allocation14_spill] sm:$0xff] %v5480_v44  ;;  %v892_v49 = vadd.f32 %v6885_v32, %v852_v14  ;;  %v2669_v5 = vsel %vm342_vm8, %v2666_v53, %v2668_v57  ;;  %v2673_v14 = vrot.slane %v2658_v62, 6  ;;  %v5537_v32 = vld [vmem:[#allocation3] sm:$0xff]  ;;  %v6897_v53 = vld [vmem:[#allocation65_spill] sm:$0xff] }
 0x25a   :  { %2637 = vrot.lane.b32.xlu1 %v2629_v51, %s4016_s25  ;;  %2639 = vrot.lane.b32.xlu0 %v2632_v60, %s4016_s25  ;;  %v6888_v51 = vld [vmem:[#allocation17_spill] sm:$0xff]  ;;  %v917_v36 = vadd.f32 %v6891_v54, %v891_v12  ;;  %v956_v12 = vadd.f32 %v6896_v42, %v916_v23  ;;  %v6898_v57 = vld [vmem:[#allocation66_spill] sm:$0xff]  ;;  %6899 = vst [vmem:[#allocation40_spill] sm:$0xff] %v5546_v11  ;;  %v5548_v62 = vld [vmem:[#allocation3 + $0x8] sm:$0xff]  ;;  %v5556_v23 = vstv %s5506_s19  ;;  %s3894_s19 = sld [smem:[#allocation8 + $0x45]] }
 0x25b   :  { %v915_v60 = vadd.f32 %v6888_v51, %v889_v25  ;;  %v918_v7 = vadd.f32 %v6892_v9, %v892_v49  ;;  %v5531_v25 = vstv %s5489_s17  ;;  %v1969_v49 = vmul.f32 %v5537_v32, %v5516_v40  ;;  %6901 = vst [vmem:[#allocation41_spill] sm:$0xff] %v5556_v23  ;;  %s3892_s17 = sld [smem:[#allocation8 + $0x37]] }
 0x25c   :  { %v5501_v48 = vpop.permute.xlu1 %1903  ;;  %v5503_v27 = vpop.permute.xlu0 %1905  ;;  %v5552_v51 = vmul.f32 %v5548_v62, %v5516_v40  ;;  %v5620_v13 = vmul.f32 %v5548_v62, %v5556_v23 }
 0x25d   :  { %6886 = vst [vmem:[#allocation37_spill] sm:$0xff] %v5501_v48  ;;  %6887 = vst [vmem:[#allocation38_spill] sm:$0xff] %v5503_v27  ;;  %v955_v1 = vadd.f32 %v6895_v3, %v915_v60  ;;  %v6900_v60 = vld [vmem:[#allocation67_spill] sm:$0xff]  ;;  %v6905_v3 = vld [vmem:[#allocation69_spill] sm:$0xff] }
 0x25e   :  { %2641 = vrot.lane.b32.xlu1 %v2634_v0, %s4016_s25  ;;  %2675 = vrot.lane.b32.xlu0 %v2667_v2, %s4016_s25  ;;  %v957_v0 = vadd.f32 %v6897_v53, %v917_v36  ;;  %v958_v2 = vadd.f32 %v6898_v57, %v918_v7  ;;  %v2693_v36 = vmul.f32 %v5537_v32, %v2692_v17  ;;  %v6906_v57 = vld [vmem:[#allocation70_spill] sm:$0xff] }
 0x25f   :  { %v995_v52 = vadd.f32 %v6900_v60, %v955_v1  ;;  %v2719_v7 = vmul.f32 %v5537_v32, %v5531_v25  ;;  %v2674_v1 = vsel %vm342_vm8, %v2671_v10, %v2673_v14  ;;  %v2720_v53 = vmul.f32 %v5548_v62, %v5531_v25 }
 0x260   :  { %v5523_v22 = vpop.permute.xlu1 %1907  ;;  %v5525_v15 = vpop.permute.xlu0 %1941  ;;  %v5567_v42 = vadd.f32 %v6905_v3, %v957_v0  ;;  %v5573_v60 = vadd.f32 %v6906_v57, %v958_v2  ;;  %v5589_v14 = vmul.f32 %v5537_v32, %v5556_v23  ;;  %v5595_v0 = vstv %s5518_s20  ;;  %v5607_v3 = vld [vmem:[#allocation3 + $0x10] sm:$0x3f]  ;;  %s3897_s20 = sld [smem:[#allocation8 + $0x5a]] }
 0x261   :  { %6893 = vst [vmem:[#allocation16_spill] sm:$0xff] %v5523_v22  ;;  %6894 = vst [vmem:[#allocation39_spill] sm:$0xff] %v5525_v15  ;;  %v5580_v15 = vmul.f32 %v5537_v32, %v5546_v11  ;;  %v1981_v22 = vrot.slane %v1969_v49, 1  ;;  %v2732_v57 = vrot.slane %v2720_v53, 1  ;;  %v6912_v53 = vrot.slane %v5552_v51, 1 }
 0x262   :  { %2677 = vrot.lane.b32.xlu1 %v2669_v5, %s4016_s25  ;;  %2679 = vrot.lane.b32.xlu0 %v2672_v50, %s4016_s25  ;;  %v6904_v5 = vld [vmem:[#allocation68_spill] sm:$0xff]  ;;  %v2013_v55 = vrot.slane %v5589_v14, 2  ;;  %v2065_v27 = vmul.f32 %v5537_v32, %v5595_v0  ;;  %v5640_v6 = vmul.f32 %v5548_v62, %v5595_v0  ;;  %v1037_v38 = vadd.f32 %v6921_v59, %v5567_v42 }
 0x263   :  { %v996_v50 = vadd.f32 %v6904_v5, %v956_v12  ;;  %6908 = vst [vmem:[#allocation44_spill] sm:$0xff] %v5580_v15  ;;  %v5592_v12 = vstv %s5512_s1  ;;  %v2731_v5 = vrot.slane %v2719_v7, 1  ;;  %v5613_v15 = vld [vmem:[#allocation3 + $0x20] sm:$0xff]  ;;  %v5633_v44 = vsel %vm177_vm3, %v1981_v22, %v6912_v53  ;;  %v5649_v22 = vld [vmem:[#allocation3 + $0x28] sm:$0x3f]  ;;  %s3895_s1 = sld [smem:[#allocation8 + $0x4c]] }
 0x264   :  { %v5558_v54 = vpop.permute.xlu1 %1943  ;;  %v5560_v9 = vpop.permute.xlu0 %1945  ;;  %6909 = vst [vmem:[#allocation45_spill] sm:$0xff] %v5592_v12  ;;  %v2033_v7 = vmul.f32 %v5537_v32, %v5592_v12  ;;  %6913 = vst [vmem:[#allocation48_spill] sm:$0xff] %v5633_v44  ;;  %v2724_v14 = vmul.f32 %v5649_v22, %v5531_v25  ;;  %v6927_v42 = vrot.slane %v5640_v6, 4 }
 0x265   :  { %6902 = vst [vmem:[#allocation42_spill] sm:$0xff] %v5558_v54  ;;  %6903 = vst [vmem:[#allocation43_spill] sm:$0xff] %v5560_v9  ;;  %v6907_v54 = vld [vmem:[#allocation71_spill] sm:$0xff]  ;;  %v5626_v9 = vmul.f32 %v5548_v62, %v5592_v12  ;;  %v2733_v44 = vsel %vm177_vm3, %v2731_v5, %v2732_v57  ;;  %v5665_v5 = vstv %s5582_s23 }
 0x266   :  { %v5576_v48 = vadd.f32 %v6907_v54, %v995_v52  ;;  %2681 = vrot.lane.b32.xlu1 %v2674_v1, %s4016_s25  ;;  %2701 = vrot.lane.b32.xlu0 %v2693_v36, %s4017_s27  ;;  %v2694_v52 = vmul.f32 %v5548_v62, %v2692_v17  ;;  %v5604_v54 = vld [vmem:[#allocation3 + $0x18] sm:$0xff]  ;;  %v2721_v1 = vmul.f32 %v5607_v3, %v5531_v25  ;;  %s5642_s25 = sld [smem:[#allocation8 + $0x5b]] }
 0x267   :  { %v2695_v36 = vmul.f32 %v5604_v54, %v2692_v17  ;;  %v2722_v10 = vmul.f32 %v5604_v54, %v5531_v25  ;;  %6914 = vst [vmem:[#allocation49_spill] sm:$0xff] %v5640_v6  ;;  %6918 = vst [vmem:[#allocation52_spill] sm:$0xff] %v5665_v5 }
 0x268   :  { %v5599_v49 = vpop.permute.xlu1 %1947  ;;  %v5601_v2 = vpop.permute.xlu0 %2169  ;;  %v2734_v63 = vrot.slane %v2721_v1, 1  ;;  %v2045_v1 = vrot.slane %v2033_v7, 3  ;;  %v2739_v7 = vrot.slane %v2724_v14, 1 }
 0x269   :  { %6910 = vst [vmem:[#allocation46_spill] sm:$0xff] %v5599_v49  ;;  %6911 = vst [vmem:[#allocation47_spill] sm:$0xff] %v5601_v2  ;;  %v2723_v2 = vmul.f32 %v5613_v15, %v5531_v25  ;;  %v2758_v49 = vstv %s5533_s21  ;;  %v2736_v34 = vrot.slane %v2722_v10, 1  ;;  %v2077_v25 = vrot.slane %v2065_v27, 4  ;;  %s3898_s21 = sld [smem:[#allocation8 + $0x61]] }
 0x26a   :  { %2703 = vrot.lane.b32.xlu1 %v2694_v52, %s4017_s27  ;;  %2705 = vrot.lane.b32.xlu0 %v2695_v36, %s4017_s27  ;;  %v2696_v36 = vmul.f32 %v5613_v15, %v2692_v17  ;;  %v2759_v53 = vmul.f32 %v5537_v32, %v2758_v49  ;;  %v5668_v10 = vstv %s5597_s24  ;;  %v2762_v46 = vmul.f32 %v5604_v54, %v2758_v49 }
 0x26b   :  { %v2737_v30 = vrot.slane %v2723_v2, 1  ;;  %v2735_v2 = vsel %vm177_vm3, %v2732_v57, %v2734_v63  ;;  %v2763_v17 = vmul.f32 %v5613_v15, %v2758_v49  ;;  %v5687_v63 = vmul.f32 %v5548_v62, %v5665_v5 }
 0x26c   :  { %v5644_v26 = vpop.permute.xlu1 %2171  ;;  %v5646_v52 = vpop.permute.xlu0 %2173  ;;  %v6925_v57 = vrot.slane %v5626_v9, 3  ;;  %v5704_v14 = vsel %vm276_vm6, %v2077_v25, %v6927_v42  ;;  %v2776_v6 = vrot.slane %v2762_v46, 2  ;;  %v2800_v42 = vmul.f32 %v5548_v62, %v5668_v10  ;;  %v6932_v46 = vld [vmem:[#allocation74_spill] sm:$0xff] }
 0x26d   :  { %6915 = vst [vmem:[#allocation50_spill] sm:$0xff] %v5644_v26  ;;  %6916 = vst [vmem:[#allocation51_spill] sm:$0xff] %v5646_v52  ;;  %v2760_v26 = vmul.f32 %v5548_v62, %v2758_v49  ;;  %v5657_v52 = vadd.f32 %v6917_v47, %v996_v50  ;;  %v2738_v27 = vsel %vm177_vm3, %v2736_v34, %v2737_v30  ;;  %v6923_v34 = vrot.slane %v5620_v13, 2 }
 0x26e   :  { %2707 = vrot.lane.b32.xlu1 %v2696_v36, %s4017_s27  ;;  %2741 = vrot.lane.b32.xlu0 %v2733_v44, %s4017_s27  ;;  %v2771_v36 = vrot.slane %v2759_v53, 2  ;;  %v2761_v44 = vmul.f32 %v5607_v3, %v2758_v49  ;;  %6922 = vst [vmem:[#allocation55_spill] sm:$0xff] %v5687_v63  ;;  %v5699_v59 = vsel %vm243_vm5, %v2045_v1, %v6925_v57  ;;  %6928 = vst [vmem:[#allocation58_spill] sm:$0xff] %v5704_v14 }
 0x26f   :  { %v2772_v19 = vrot.slane %v2760_v26, 2  ;;  %v5694_v26 = vsel %vm210_vm4, %v2013_v55, %v6923_v34  ;;  %6926 = vst [vmem:[#allocation57_spill] sm:$0xff] %v5699_v59  ;;  %v5707_v53 = vstv %s5642_s25  ;;  %v2764_v34 = vmul.f32 %v5649_v22, %v2758_v49 }
 0x270   :  { %v5672_v47 = vpop.permute.xlu1 %2175  ;;  %v5674_v50 = vpop.permute.xlu0 %2209  ;;  %6924 = vst [vmem:[#allocation56_spill] sm:$0xff] %v5694_v26  ;;  %v2774_v55 = vrot.slane %v2761_v44, 2  ;;  %v2799_v1 = vmul.f32 %v5537_v32, %v5668_v10  ;;  %v2777_v25 = vrot.slane %v2763_v17, 2  ;;  %v1971_v49 = vmul.f32 %v5607_v3, %v5516_v40 }
 0x271   :  { %6919 = vst [vmem:[#allocation53_spill] sm:$0xff] %v5672_v47  ;;  %6920 = vst [vmem:[#allocation54_spill] sm:$0xff] %v5674_v50  ;;  %v2097_v50 = vmul.f32 %v5537_v32, %v5665_v5  ;;  %v2740_v47 = vsel %vm177_vm3, %v2737_v30, %v2739_v7  ;;  %v2773_v57 = vsel %vm210_vm4, %v2771_v36, %v2772_v19  ;;  %v5738_v36 = vstv %s5670_s26 }
 0x272   :  { %2743 = vrot.lane.b32.xlu1 %v2735_v2, %s4017_s27  ;;  %2745 = vrot.lane.b32.xlu0 %v2738_v27, %s4017_s27  ;;  %v5723_v30 = vmul.f32 %v5537_v32, %v5707_v53  ;;  %v1038_v17 = vadd.f32 %v6932_v46, %v5573_v60  ;;  %v5733_v7 = vmul.f32 %v5548_v62, %v5707_v53  ;;  %v2812_v59 = vrot.slane %v2800_v42, 3  ;;  %v6940_v42 = vld [vmem:[#allocation77_spill] sm:$0xff] }
 0x273   :  { %v2109_v14 = vrot.slane %v2097_v50, 5  ;;  %v2003_v50 = vmul.f32 %v5607_v3, %v5556_v23  ;;  %v2801_v60 = vmul.f32 %v5607_v3, %v5668_v10  ;;  %v2778_v46 = vsel %vm210_vm4, %v2776_v6, %v2777_v25  ;;  %v6939_v6 = vld [vmem:[#allocation76_spill] sm:$0xff] }
 0x274   :  { %v5709_v2 = vpop.permute.xlu1 %2211  ;;  %v5711_v27 = vpop.permute.xlu0 %2213  ;;  %6931 = vst [vmem:[#allocation61_spill] sm:$0xff] %v5723_v30  ;;  %6933 = vst [vmem:[#allocation62_spill] sm:$0xff] %v5733_v7  ;;  %v2802_v26 = vmul.f32 %v5604_v54, %v5668_v10  ;;  %v2803_v39 = vmul.f32 %v5613_v15, %v5668_v10  ;;  %v1077_v20 = vadd.f32 %v6940_v42, %v1037_v38  ;;  %v6944_v42 = vrot.slane %v5552_v51, 1  ;;  %v6998_v7 = vld [vmem:[#allocation103_spill] sm:$0xff] }
 0x275   :  { %6929 = vst [vmem:[#allocation59_spill] sm:$0xff] %v5709_v2  ;;  %6930 = vst [vmem:[#allocation60_spill] sm:$0xff] %v5711_v27  ;;  %v2811_v27 = vrot.slane %v2799_v1, 3  ;;  %v1076_v1 = vadd.f32 %v6939_v6, %v5657_v52  ;;  %v2839_v52 = vmul.f32 %v5537_v32, %v5738_v36  ;;  %v6949_v51 = vrot.slane %v5620_v13, 2 }
 0x276   :  { %2747 = vrot.lane.b32.xlu1 %v2740_v47, %s4017_s27  ;;  %2781 = vrot.lane.b32.xlu0 %v2773_v57, %s4017_s27  ;;  %v2775_v47 = vsel %vm210_vm4, %v2772_v19, %v2774_v55  ;;  %v2779_v57 = vrot.slane %v2764_v34, 2  ;;  %v1984_v55 = vrot.slane %v1971_v49, 1  ;;  %v2035_v34 = vmul.f32 %v5607_v3, %v5592_v12 }
 0x277   :  { %v2813_v38 = vsel %vm243_vm5, %v2811_v27, %v2812_v59  ;;  %v2817_v6 = vrot.slane %v2803_v39, 3  ;;  %v6948_v39 = vld [vmem:[#allocation78_spill] sm:$0xff]  ;;  %v2841_v13 = vmul.f32 %v5607_v3, %v5738_v36 }
 0x278   :  { %v5742_v44 = vpop.permute.xlu1 %2215  ;;  %v5744_v2 = vpop.permute.xlu0 %2249  ;;  %v2780_v49 = vsel %vm210_vm4, %v2777_v25, %v2779_v57  ;;  %v2048_v25 = vrot.slane %v2035_v34, 3  ;;  %v5791_v57 = vmul.f32 %v5607_v3, %v5595_v0 }
 0x279   :  { %6934 = vst [vmem:[#allocation17_spill] sm:$0xff] %v5742_v44  ;;  %6935 = vst [vmem:[#allocation18_spill] sm:$0xff] %v5744_v2  ;;  %v6936_v44 = vld [vmem:[#allocation75_spill] sm:$0xff]  ;;  %v6937_v2 = vrot.slane %v5687_v63, 5  ;;  %v2814_v63 = vrot.slane %v2801_v60, 3  ;;  %v5807_v60 = vmul.f32 %v5607_v3, %v5707_v53 }
 0x27a   :  { %v1075_v21 = vadd.f32 %v6936_v44, %v5576_v48  ;;  %2783 = vrot.lane.b32.xlu1 %v2775_v47, %s4017_s27  ;;  %2785 = vrot.lane.b32.xlu0 %v2778_v46, %s4017_s27  ;;  %v5770_v48 = vmul.f32 %v5548_v62, %v5546_v11  ;;  %v2016_v44 = vrot.slane %v2003_v50, 2  ;;  %v2804_v47 = vmul.f32 %v5649_v22, %v5668_v10 }
 0x27b   :  { %v5759_v19 = vsel %vm309_vm7, %v2109_v14, %v6937_v2  ;;  %v2816_v46 = vrot.slane %v2802_v26, 3  ;;  %v2840_v50 = vmul.f32 %v5548_v62, %v5738_v36  ;;  %6946 = vst [vmem:[#allocation66_spill] sm:$0xff] %v5791_v57  ;;  %v5795_v10 = vmul.f32 %v5607_v3, %v5665_v5  ;;  %6951 = vst [vmem:[#allocation69_spill] sm:$0xff] %v5807_v60  ;;  %v6954_v60 = vld [vmem:[#allocation79_spill] sm:$0xff]  ;;  %v7011_v57 = vld [vmem:[#allocation114_spill] sm:$0xff] }
 0x27c   :  { %6938 = vst [vmem:[#allocation19_spill] sm:$0xff] %v5759_v19  ;;  %6941 = vst [vmem:[#allocation20_spill] sm:$0xff] %v5770_v48  ;;  %v5772_v14 = vpop.permute.xlu1 %2251  ;;  %v5774_v2 = vpop.permute.xlu0 %2253  ;;  %v1078_v26 = vadd.f32 %v6948_v39, %v1038_v17  ;;  %v5803_v27 = vsel %vm210_vm4, %v6949_v51, %v2016_v44  ;;  %v2842_v39 = vmul.f32 %v5604_v54, %v5738_v36 }
 0x27d   :  { %6942 = vst [vmem:[#allocation63_spill] sm:$0xff] %v5772_v14  ;;  %6943 = vst [vmem:[#allocation64_spill] sm:$0xff] %v5774_v2  ;;  %v5787_v14 = vsel %vm177_vm3, %v6944_v42, %v1984_v55  ;;  %v5810_v55 = vstv %s5740_s28  ;;  %v2851_v2 = vrot.slane %v2839_v52, 4  ;;  %v2818_v17 = vsel %vm243_vm5, %v2816_v46, %v2817_v6 }
 0x27e   :  { %6945 = vst [vmem:[#allocation65_spill] sm:$0xff] %v5787_v14  ;;  %6947 = vst [vmem:[#allocation67_spill] sm:$0xff] %v5795_v10  ;;  %2787 = vrot.lane.b32.xlu1 %v2780_v49, %s4017_s27  ;;  %2821 = vrot.lane.b32.xlu0 %v2813_v38, %s4017_s27  ;;  %v2815_v49 = vsel %vm243_vm5, %v2812_v59, %v2814_v63  ;;  %v2819_v38 = vrot.slane %v2804_v47, 3  ;;  %v2852_v44 = vrot.slane %v2840_v50, 4  ;;  %v6958_v47 = vld [vmem:[#allocation81_spill] sm:$0xff] }
 0x27f   :  { %6950 = vst [vmem:[#allocation68_spill] sm:$0xff] %v5803_v27  ;;  %v2843_v51 = vmul.f32 %v5613_v15, %v5738_v36  ;;  %v5832_v59 = vmul.f32 %v5604_v54, %v5546_v11  ;;  %v1117_v52 = vadd.f32 %v6958_v47, %v1077_v20  ;;  %v5847_v46 = vmul.f32 %v5604_v54, %v5556_v23  ;;  %v6970_v11 = vld [vmem:[#allocation89_spill] sm:$0xff] }
 0x280   :  { %v5812_v34 = vpop.permute.xlu1 %2255  ;;  %v5814_v42 = vpop.permute.xlu0 %2289  ;;  %v2844_v20 = vmul.f32 %v5649_v22, %v5738_v36  ;;  %v2856_v47 = vrot.slane %v2842_v39, 4  ;;  %v2880_v10 = vmul.f32 %v5548_v62, %v5810_v55  ;;  %v5871_v36 = vmul.f32 %v5613_v15, %v5592_v12 }
 0x281   :  { %6952 = vst [vmem:[#allocation70_spill] sm:$0xff] %v5812_v34  ;;  %6953 = vst [vmem:[#allocation71_spill] sm:$0xff] %v5814_v42  ;;  %v1115_v34 = vadd.f32 %v6954_v60, %v1075_v21  ;;  %v6955_v42 = vrot.slane %v5626_v9, 3  ;;  %v1972_v21 = vmul.f32 %v5604_v54, %v5516_v40  ;;  %v5843_v9 = vmul.f32 %v5613_v15, %v5516_v40 }
 0x282   :  { %6957 = vst [vmem:[#allocation73_spill] sm:$0xff] %v5832_v59  ;;  %2823 = vrot.lane.b32.xlu1 %v2815_v49, %s4017_s27  ;;  %2825 = vrot.lane.b32.xlu0 %v2818_v17, %s4017_s27  ;;  %v2820_v60 = vsel %vm243_vm5, %v2817_v6, %v2819_v38  ;;  %v2879_v49 = vmul.f32 %v5537_v32, %v5810_v55  ;;  %v2857_v19 = vrot.slane %v2843_v51, 4  ;;  %6961 = vst [vmem:[#allocation76_spill] sm:$0xff] %v5871_v36  ;;  %v6964_v51 = vld [vmem:[#allocation85_spill] sm:$0xff] }
 0x283   :  { %v5828_v63 = vsel %vm243_vm5, %v6955_v42, %v2048_v25  ;;  %v2854_v42 = vrot.slane %v2841_v13, 4  ;;  %v2853_v17 = vsel %vm276_vm6, %v2851_v2, %v2852_v44  ;;  %v5867_v6 = vmul.f32 %v5604_v54, %v5592_v12  ;;  %v6962_v2 = vld [vmem:[#allocation80_spill] sm:$0xff]  ;;  %v6963_v13 = vld [vmem:[#allocation82_spill] sm:$0xff] }
 0x284   :  { %6956 = vst [vmem:[#allocation72_spill] sm:$0xff] %v5828_v63  ;;  %v5849_v50 = vpop.permute.xlu1 %2291  ;;  %v5851_v25 = vpop.permute.xlu0 %2293  ;;  %v1116_v38 = vadd.f32 %v6962_v2, %v1076_v1  ;;  %v1118_v39 = vadd.f32 %v6963_v13, %v1078_v26  ;;  %v5880_v63 = vmul.f32 %v5604_v54, %v5595_v0  ;;  %v2882_v1 = vmul.f32 %v5604_v54, %v5810_v55 }
 0x285   :  { %6959 = vst [vmem:[#allocation74_spill] sm:$0xff] %v5849_v50  ;;  %6960 = vst [vmem:[#allocation75_spill] sm:$0xff] %v5851_v25  ;;  %v5863_v50 = vmul.f32 %v5613_v15, %v5556_v23  ;;  %v1157_v25 = vadd.f32 %v6964_v51, %v1117_v52  ;;  %v2855_v12 = vsel %vm276_vm6, %v2852_v44, %v2854_v42  ;;  %v2891_v2 = vrot.slane %v2879_v49, 5  ;;  %v6968_v42 = vld [vmem:[#allocation83_spill] sm:$0xff]  ;;  %v6969_v23 = vld [vmem:[#allocation86_spill] sm:$0xff] }
 0x286   :  { %2827 = vrot.lane.b32.xlu1 %v2820_v60, %s4017_s27  ;;  %2861 = vrot.lane.b32.xlu0 %v2853_v17, %s4017_s27  ;;  %6965 = vst [vmem:[#allocation77_spill] sm:$0xff] %v5880_v63  ;;  %v2881_v60 = vmul.f32 %v5607_v3, %v5810_v55  ;;  %v2883_v26 = vmul.f32 %v5613_v15, %v5810_v55  ;;  %v2859_v17 = vrot.slane %v2844_v20, 4  ;;  %v2892_v13 = vrot.slane %v2880_v10, 5 }
 0x287   :  { %v2858_v52 = vsel %vm276_vm6, %v2856_v47, %v2857_v19  ;;  %v1986_v51 = vrot.slane %v1972_v21, 1  ;;  %v2918_v44 = vstv %s5836_s29  ;;  %v1155_v48 = vadd.f32 %v6968_v42, %v1115_v34 }
 0x288   :  { %v5882_v27 = vpop.permute.xlu1 %2295  ;;  %v5884_v14 = vpop.permute.xlu0 %2329  ;;  %v1158_v59 = vadd.f32 %v6969_v23, %v1118_v39  ;;  %v1183_v40 = vadd.f32 %v6970_v11, %v1157_v25  ;;  %v2894_v21 = vrot.slane %v2881_v60, 5  ;;  %v2896_v47 = vrot.slane %v2882_v1, 5 }
 0x289   :  { %6966 = vst [vmem:[#allocation78_spill] sm:$0xff] %v5882_v27  ;;  %6967 = vst [vmem:[#allocation79_spill] sm:$0xff] %v5884_v14  ;;  %v6684_v27 = vrot.slane %v5843_v9, 1  ;;  %v2018_v14 = vrot.slane %v5847_v46, 2  ;;  %v2897_v46 = vrot.slane %v2883_v26, 5  ;;  %v2893_v34 = vsel %vm309_vm7, %v2891_v2, %v2892_v13  ;;  %v6974_v26 = vld [vmem:[#allocation87_spill] sm:$0xff] }
 0x28a   :  { %2863 = vrot.lane.b32.xlu1 %v2855_v12, %s4017_s27  ;;  %2865 = vrot.lane.b32.xlu0 %v2858_v52, %s4017_s27  ;;  %v2884_v12 = vmul.f32 %v5649_v22, %v5810_v55  ;;  %v2860_v52 = vsel %vm276_vm6, %v2857_v19, %v2859_v17  ;;  %v2919_v23 = vmul.f32 %v5537_v32, %v2918_v44  ;;  %v2050_v39 = vrot.slane %v5867_v6, 3  ;;  %v6973_v19 = vld [vmem:[#allocation84_spill] sm:$0xff]  ;;  %v6975_v2 = vld [vmem:[#allocation90_spill] sm:$0xff] }
 0x28b   :  { %v2920_v11 = vmul.f32 %v5548_v62, %v2918_v44  ;;  %v5916_v25 = vsel %vm177_vm3, %v1986_v51, %v6684_v27  ;;  %v5922_v55 = vmul.f32 %v5613_v15, %v5595_v0  ;;  %v1156_v1 = vadd.f32 %v6973_v19, %v1116_v38  ;;  %v6976_v51 = vld [vmem:[#allocation93_spill] sm:$0xff]  ;;  %v6979_v19 = vld [vmem:[#allocation91_spill] sm:$0xff] }
 0x28c   :  { %v5903_v49 = vpop.permute.xlu1 %2331  ;;  %v5905_v10 = vpop.permute.xlu0 %2333  ;;  %v1181_v17 = vadd.f32 %v6974_v26, %v1155_v48  ;;  %v1184_v42 = vadd.f32 %v6975_v2, %v1158_v59  ;;  %v1223_v27 = vadd.f32 %v6976_v51, %v1183_v40  ;;  %v2895_v20 = vsel %vm309_vm7, %v2892_v13, %v2894_v21 }
 0x28d   :  { %6971 = vst [vmem:[#allocation81_spill] sm:$0xff] %v5903_v49  ;;  %6972 = vst [vmem:[#allocation80_spill] sm:$0xff] %v5905_v10  ;;  %v2899_v49 = vrot.slane %v2884_v12, 5  ;;  %v2931_v48 = vrot.slane %v2919_v23, 6  ;;  %v2932_v38 = vrot.slane %v2920_v11, 6  ;;  %v2922_v59 = vmul.f32 %v5604_v54, %v2918_v44  ;;  %v6982_v23 = vld [vmem:[#allocation94_spill] sm:$0xff] }
 0x28e   :  { %2867 = vrot.lane.b32.xlu1 %v2860_v52, %s4017_s27  ;;  %2901 = vrot.lane.b32.xlu0 %v2893_v34, %s4017_s27  ;;  %v2898_v52 = vsel %vm309_vm7, %v2896_v47, %v2897_v46  ;;  %v2921_v34 = vmul.f32 %v5607_v3, %v2918_v44  ;;  %v2923_v40 = vmul.f32 %v5613_v15, %v2918_v44  ;;  %v6980_v51 = vrot.slane %v5863_v50, 2  ;;  %v6981_v47 = vld [vmem:[#allocation88_spill] sm:$0xff] }
 0x28f   :  { %v1221_v26 = vadd.f32 %v6979_v19, %v1181_v17  ;;  %v5952_v21 = vmul.f32 %v5604_v54, %v5665_v5  ;;  %v1182_v12 = vadd.f32 %v6981_v47, %v1156_v1  ;;  %v1224_v11 = vadd.f32 %v6982_v23, %v1184_v42  ;;  %v6983_v17 = vld [vmem:[#allocation97_spill] sm:$0xff] }
 0x290   :  { %v5932_v6 = vpop.permute.xlu1 %2335  ;;  %v5934_v60 = vpop.permute.xlu0 %2369  ;;  %v5948_v13 = vsel %vm210_vm4, %v2018_v14, %v6980_v51  ;;  %v1263_v19 = vadd.f32 %v6983_v17, %v1223_v27  ;;  %v6984_v2 = vrot.slane %v5871_v36, 3  ;;  %v6985_v14 = vld [vmem:[#allocation95_spill] sm:$0xff]  ;;  %v2924_v1 = vmul.f32 %v5649_v22, %v2918_v44  ;;  %v6988_v42 = vld [vmem:[#allocation101_spill] sm:$0xff]  ;;  %v6991_v44 = vld [vmem:[#allocation98_spill] sm:$0xff] }
 0x291   :  { %6977 = vst [vmem:[#allocation82_spill] sm:$0xff] %v5932_v6  ;;  %6978 = vst [vmem:[#allocation85_spill] sm:$0xff] %v5934_v60  ;;  %v1261_v51 = vadd.f32 %v6985_v14, %v1221_v26  ;;  %v2933_v27 = vsel %vm342_vm8, %v2931_v48, %v2932_v38  ;;  %v2936_v23 = vrot.slane %v2922_v59, 6  ;;  %v2937_v17 = vrot.slane %v2923_v40, 6  ;;  %v6993_v59 = vld [vmem:[#allocation105_spill] sm:$0xff] }
 0x292   :  { %2903 = vrot.lane.b32.xlu1 %v2895_v20, %s4017_s27  ;;  %2905 = vrot.lane.b32.xlu0 %v2898_v52, %s4017_s27  ;;  %v5962_v60 = vsel %vm243_vm5, %v2050_v39, %v6984_v2  ;;  %v2900_v20 = vsel %vm309_vm7, %v2897_v46, %v2899_v49  ;;  %v2934_v52 = vrot.slane %v2921_v34, 6  ;;  %v1303_v47 = vadd.f32 %v6988_v42, %v1263_v19  ;;  %v6989_v39 = vld [vmem:[#allocation92_spill] sm:$0xff]  ;;  %v6992_v34 = vld [vmem:[#allocation99_spill] sm:$0xff] }
 0x293   :  { %v1222_v2 = vadd.f32 %v6989_v39, %v1182_v12  ;;  %v5977_v14 = vmul.f32 %v5613_v15, %v5665_v5  ;;  %v5981_v49 = vmul.f32 %v5604_v54, %v5707_v53  ;;  %v1264_v46 = vadd.f32 %v6991_v44, %v1224_v11  ;;  %v6994_v19 = vld [vmem:[#allocation96_spill] sm:$0xff]  ;;  %v6999_v11 = vld [vmem:[#allocation109_spill] sm:$0xff]  ;;  %v7024_v5 = vld [vmem:[#allocation126_spill] sm:$0xff] }
 0x294   :  { %v5965_v6 = vpop.permute.xlu1 %2371  ;;  %v5967_v10 = vpop.permute.xlu0 %2373  ;;  %v1301_v48 = vadd.f32 %v6992_v34, %v1261_v51  ;;  %v1343_v40 = vadd.f32 %v6993_v59, %v1303_v47  ;;  %v2984_v12 = vstv %s5930_s3  ;;  %v2938_v51 = vsel %vm342_vm8, %v2936_v23, %v2937_v17  ;;  %v7000_v47 = vld [vmem:[#allocation100_spill] sm:$0xff]  ;;  %v7002_v59 = vld [vmem:[#allocation107_spill] sm:$0xff] }
 0x295   :  { %6986 = vst [vmem:[#allocation83_spill] sm:$0xff] %v5965_v6  ;;  %6987 = vst [vmem:[#allocation86_spill] sm:$0xff] %v5967_v10  ;;  %v1262_v42 = vadd.f32 %v6994_v19, %v1222_v2  ;;  %v2935_v6 = vsel %vm342_vm8, %v2932_v38, %v2934_v52  ;;  %v2958_v10 = vstv %s5939_s4  ;;  %v2985_v38 = vmul.f32 %v5537_v32, %v2984_v12 }
 0x296   :  { %6990 = vst [vmem:[#allocation89_spill] sm:$0xff] %v5981_v49  ;;  %2907 = vrot.lane.b32.xlu1 %v2900_v20, %s4017_s27  ;;  %2941 = vrot.lane.b32.xlu0 %v2933_v27, %s4017_s27  ;;  %v2939_v20 = vrot.slane %v2924_v1, 6  ;;  %v6997_v27 = vld [vmem:[#allocation102_spill] sm:$0xff]  ;;  %v1341_v49 = vadd.f32 %v6998_v7, %v1301_v48  ;;  %v1383_v44 = vadd.f32 %v6999_v11, %v1343_v40  ;;  %v7003_v48 = vld [vmem:[#allocation113_spill] sm:$0xff] }
 0x297   :  { %v1304_v30 = vadd.f32 %v6997_v27, %v1264_v46  ;;  %v1302_v34 = vadd.f32 %v7000_v47, %v1262_v42  ;;  %v2986_v52 = vmul.f32 %v5548_v62, %v2984_v12  ;;  %v7001_v1 = vld [vmem:[#allocation106_spill] sm:$0xff]  ;;  %v2959_v23 = vmul.f32 %v5537_v32, %v2958_v10 }
 0x298   :  { %v5992_v39 = vpop.permute.xlu1 %2375  ;;  %v5994_v26 = vpop.permute.xlu0 %2409  ;;  %v1381_v7 = vadd.f32 %v7002_v59, %v1341_v49  ;;  %v1423_v40 = vadd.f32 %v7003_v48, %v1383_v44  ;;  %v2960_v27 = vmul.f32 %v5548_v62, %v2958_v10  ;;  %v2961_v11 = vmul.f32 %v5604_v54, %v2958_v10  ;;  %v7007_v49 = vld [vmem:[#allocation110_spill] sm:$0xff]  ;;  %v7008_v44 = vld [vmem:[#allocation111_spill] sm:$0xff]  ;;  %v7009_v48 = vld [vmem:[#allocation117_spill] sm:$0xff] }
 0x299   :  { %6995 = vst [vmem:[#allocation84_spill] sm:$0xff] %v5992_v39  ;;  %6996 = vst [vmem:[#allocation87_spill] sm:$0xff] %v5994_v26  ;;  %v1344_v46 = vadd.f32 %v7001_v1, %v1304_v30  ;;  %v7006_v30 = vld [vmem:[#allocation104_spill] sm:$0xff]  ;;  %v3024_v26 = vstv %s5985_s5 }
 0x29a   :  { %2943 = vrot.lane.b32.xlu1 %v2935_v6, %s4017_s27  ;;  %2945 = vrot.lane.b32.xlu0 %v2938_v51, %s4017_s27  ;;  %v2940_v6 = vsel %vm342_vm8, %v2937_v17, %v2939_v20  ;;  %v2987_v51 = vmul.f32 %v5607_v3, %v2984_v12  ;;  %v1342_v47 = vadd.f32 %v7006_v30, %v1302_v34  ;;  %v2997_v20 = vrot.slane %v2985_v38, 1  ;;  %v7010_v39 = vld [vmem:[#allocation108_spill] sm:$0xff]  ;;  %v7012_v34 = vld [vmem:[#allocation115_spill] sm:$0xff] }
 0x29b   :  { %v1384_v1 = vadd.f32 %v7007_v49, %v1344_v46  ;;  %v1421_v59 = vadd.f32 %v7008_v44, %v1381_v7  ;;  %v1449_v2 = vadd.f32 %v7009_v48, %v1423_v40  ;;  %v2962_v17 = vmul.f32 %v5613_v15, %v2958_v10  ;;  %v7013_v46 = vld [vmem:[#allocation121_spill] sm:$0xff] }
 0x29c   :  { %v6012_v19 = vpop.permute.xlu1 %2411  ;;  %v6014_v42 = vpop.permute.xlu0 %2413  ;;  %v2988_v10 = vmul.f32 %v5604_v54, %v2984_v12  ;;  %v2989_v38 = vmul.f32 %v5613_v15, %v2984_v12  ;;  %v7019_v44 = vld [vmem:[#allocation125_spill] sm:$0xff] }
 0x29d   :  { %7004 = vst [vmem:[#allocation90_spill] sm:$0xff] %v6012_v19  ;;  %7005 = vst [vmem:[#allocation93_spill] sm:$0xff] %v6014_v42  ;;  %v2998_v19 = vrot.slane %v2986_v52, 1  ;;  %v1382_v42 = vadd.f32 %v7010_v39, %v1342_v47  ;;  %v1424_v36 = vadd.f32 %v7011_v57, %v1384_v1  ;;  %v1447_v30 = vadd.f32 %v7012_v34, %v1421_v59  ;;  %v7016_v57 = vld [vmem:[#allocation112_spill] sm:$0xff] }
 0x29e   :  { %2947 = vrot.lane.b32.xlu1 %v2940_v6, %s4017_s27  ;;  %2967 = vrot.lane.b32.xlu0 %v2959_v23, %s4018_s0  ;;  %v1489_v49 = vadd.f32 %v7013_v46, %v1449_v2  ;;  %v3000_v23 = vrot.slane %v2987_v51, 1  ;;  %v2990_v52 = vmul.f32 %v5649_v22, %v2984_v12  ;;  %s6041_s27 = sld [smem:[#allocation8 + $0x51]]  ;;  %v7017_v6 = vld [vmem:[#allocation118_spill] sm:$0xff]  ;;  %v7018_v2 = vld [vmem:[#allocation119_spill] sm:$0xff]  ;;  %v3025_v12 = vmul.f32 %v5537_v32, %v3024_v26  ;;  %v7020_v46 = vld [vmem:[#allocation116_spill] sm:$0xff] }
 0x29f   :  { %v1422_v39 = vadd.f32 %v7016_v57, %v1382_v42  ;;  %v1450_v47 = vadd.f32 %v7017_v6, %v1424_v36  ;;  %v1487_v1 = vadd.f32 %v7018_v2, %v1447_v30  ;;  %v2999_v51 = vsel %vm177_vm3, %v2997_v20, %v2998_v19  ;;  %v7021_v57 = vld [vmem:[#allocation122_spill] sm:$0xff]  ;;  %v7022_v6 = vld [vmem:[#allocation123_spill] sm:$0xff] }
 0x2a0   :  { %v6034_v7 = vpop.permute.xlu1 %2415  ;;  %v6036_v40 = vpop.permute.xlu0 %2435  ;;  %v1529_v59 = vadd.f32 %v7019_v44, %v1489_v49  ;;  %v3026_v34 = vmul.f32 %v5548_v62, %v3024_v26  ;;  %v3003_v20 = vrot.slane %v2989_v38, 1  ;;  %v3005_v48 = vrot.slane %v2990_v52, 1 }
 0x2a1   :  { %7014 = vst [vmem:[#allocation91_spill] sm:$0xff] %v6034_v7  ;;  %7015 = vst [vmem:[#allocation88_spill] sm:$0xff] %v6036_v40  ;;  %v1448_v42 = vadd.f32 %v7020_v46, %v1422_v39  ;;  %v1490_v36 = vadd.f32 %v7021_v57, %v1450_v47  ;;  %v1527_v30 = vadd.f32 %v7022_v6, %v1487_v1  ;;  %v7023_v40 = vld [vmem:[#allocation120_spill] sm:$0xff]  ;;  %v7025_v39 = vld [vmem:[#allocation127_spill] sm:$0xff] }
 0x2a2   :  { %2969 = vrot.lane.b32.xlu1 %v2960_v27, %s4018_s0  ;;  %2971 = vrot.lane.b32.xlu0 %v2961_v11, %s4018_s0  ;;  %v1569_v49 = vadd.f32 %v5177_v28, %v1529_v59  ;;  %v3001_v27 = vsel %vm177_vm3, %v2998_v19, %v3000_v23  ;;  %v3002_v11 = vrot.slane %v2988_v10, 1  ;;  %v3037_v28 = vrot.slane %v3025_v12, 2 }
 0x2a3   :  { %v1488_v7 = vadd.f32 %v7023_v40, %v1448_v42  ;;  %v1530_v63 = vadd.f32 %v7024_v5, %v1490_v36  ;;  %v1567_v46 = vadd.f32 %v7025_v39, %v1527_v30  ;;  %v3027_v19 = vmul.f32 %v5607_v3, %v3024_v26  ;;  %v7026_v40 = vld [vmem:[#allocation124_spill] sm:$0xff] }
 0x2a4   :  { %v6057_v2 = vpop.permute.xlu1 %2437  ;;  %v6059_v44 = vpop.permute.xlu0 %2439  ;;  %v1609_v47 = vadd.f32 %v5222_v37, %v1569_v49  ;;  %v3028_v23 = vmul.f32 %v5604_v54, %v3024_v26  ;;  %v3029_v10 = vmul.f32 %v5613_v15, %v3024_v26  ;;  %v3004_v59 = vsel %vm177_vm3, %v3002_v11, %v3003_v20 }
 0x2a5   :  { %v1528_v38 = vadd.f32 %v7026_v40, %v1488_v7  ;;  %v1570_v5 = vadd.f32 %v5198_v33, %v1530_v63  ;;  %v1607_v52 = vadd.f32 %v5200_v58, %v1567_v46  ;;  %v3064_v12 = vstv %s6032_s6 }
 0x2a6   :  { %2973 = vrot.lane.b32.xlu1 %v2962_v17, %s4018_s0  ;;  %3007 = vrot.lane.b32.xlu0 %v2999_v51, %s4018_s0  ;;  %v1649_v37 = vadd.f32 %v5263_v24, %v1609_v47  ;;  %v3038_v51 = vrot.slane %v3026_v34, 2  ;;  %v6082_v42 = vstv %s6041_s27  ;;  %v3040_v24 = vrot.slane %v3027_v19, 2  ;;  %v7027_v47 = vld [vmem:[#allocation128_spill] sm:$0xff] }
 0x2a7   :  { %v1568_v57 = vadd.f32 %v5175_v35, %v1528_v38  ;;  %v1610_v7 = vadd.f32 %v5238_v18, %v1570_v5  ;;  %v1647_v33 = vadd.f32 %v5240_v16, %v1607_v52  ;;  %v3042_v63 = vrot.slane %v3028_v23, 2 }
 0x2a8   :  { %v6075_v1 = vpop.permute.xlu1 %2441  ;;  %v6077_v17 = vpop.permute.xlu0 %2475  ;;  %v1689_v58 = vadd.f32 %v5299_v31, %v1649_v37  ;;  %v3043_v36 = vrot.slane %v3029_v10, 2  ;;  %v3030_v34 = vmul.f32 %v5649_v22, %v3024_v26  ;;  %v3006_v49 = vsel %vm177_vm3, %v3003_v20, %v3005_v48 }
 0x2a9   :  { %v1608_v6 = vadd.f32 %v5220_v4, %v1568_v57  ;;  %v1650_v30 = vadd.f32 %v5281_v41, %v1610_v7  ;;  %v1687_v35 = vadd.f32 %v5283_v43, %v1647_v33  ;;  %v3065_v11 = vmul.f32 %v5537_v32, %v3064_v12  ;;  %v7032_v57 = vld [vmem:[#allocation25_spill] sm:$0xff]  ;;  %v7033_v33 = vld [vmem:[#allocation26_spill] sm:$0xff] }
 0x2aa   :  { %3009 = vrot.lane.b32.xlu1 %v3001_v27, %s4018_s0  ;;  %3011 = vrot.lane.b32.xlu0 %v3004_v59, %s4018_s0  ;;  %v1715_v18 = vadd.f32 %v5333_v29, %v1689_v58  ;;  %v3039_v27 = vsel %vm210_vm4, %v3037_v28, %v3038_v51  ;;  %v3066_v26 = vmul.f32 %v5548_v62, %v3064_v12  ;;  %v3045_v39 = vrot.slane %v3030_v34, 2  ;;  %v7031_v59 = vld [vmem:[#allocation21_spill] sm:$0xff] }
 0x2ab   :  { %v1648_v4 = vadd.f32 %v5261_v56, %v1608_v6  ;;  %v1690_v41 = vadd.f32 %v5315_v45, %v1650_v30  ;;  %v1713_v43 = vadd.f32 %v5317_v61, %v1687_v35  ;;  %v3041_v48 = vsel %vm210_vm4, %v3038_v51, %v3040_v24  ;;  %v7028_v56 = vld [vmem:[#allocation22_spill] sm:$0xff]  ;;  %v7029_v45 = vld [vmem:[#allocation23_spill] sm:$0xff]  ;;  %v7030_v61 = vld [vmem:[#allocation28_spill] sm:$0xff] }
 0x2ac   :  { %v6095_v16 = vpop.permute.xlu1 %2477  ;;  %v6097_v31 = vpop.permute.xlu0 %2479  ;;  %v1755_v29 = vadd.f32 %v5366_v8, %v1715_v18  ;;  %v3044_v20 = vsel %vm210_vm4, %v3042_v63, %v3043_v36  ;;  %v3067_v46 = vmul.f32 %v5607_v3, %v3064_v12  ;;  %v3077_v38 = vrot.slane %v3065_v11, 3  ;;  %v7034_v24 = vld [vmem:[#allocation32_spill] sm:$0xff] }
 0x2ad   :  { %v1688_v28 = vadd.f32 %v7027_v47, %v1648_v4  ;;  %v1716_v19 = vadd.f32 %v7028_v56, %v1690_v41  ;;  %v1753_v23 = vadd.f32 %v7029_v45, %v1713_v43  ;;  %v3078_v5 = vrot.slane %v3066_v26, 3  ;;  %v7035_v18 = vld [vmem:[#allocation24_spill] sm:$0xff]  ;;  %v7037_v26 = vld [vmem:[#allocation30_spill] sm:$0xff] }
 0x2ae   :  { %3013 = vrot.lane.b32.xlu1 %v3006_v49, %s4018_s0  ;;  %3047 = vrot.lane.b32.xlu0 %v3039_v27, %s4018_s0  ;;  %v1795_v10 = vadd.f32 %v7030_v61, %v1755_v29  ;;  %v3068_v52 = vmul.f32 %v5604_v54, %v3064_v12  ;;  %v3069_v37 = vmul.f32 %v5613_v15, %v3064_v12  ;;  %v3080_v6 = vrot.slane %v3067_v46, 3  ;;  %v7036_v27 = vld [vmem:[#allocation29_spill] sm:$0xff]  ;;  %v7038_v41 = vld [vmem:[#allocation36_spill] sm:$0xff]  ;;  %v7039_v46 = vld [vmem:[#allocation27_spill] sm:$0xff] }
 0x2af   :  { %v1714_v51 = vadd.f32 %v7031_v59, %v1688_v28  ;;  %v1756_v7 = vadd.f32 %v7032_v57, %v1716_v19  ;;  %v1793_v58 = vadd.f32 %v7033_v33, %v1753_v23  ;;  %v3046_v34 = vsel %vm210_vm4, %v3043_v36, %v3045_v39  ;;  %v7040_v28 = vld [vmem:[#allocation33_spill] sm:$0xff]  ;;  %v7041_v19 = vld [vmem:[#allocation34_spill] sm:$0xff]  ;;  %v7043_v59 = vld [vmem:[#allocation31_spill] sm:$0xff] }
 0x2b0   :  { %v6116_v8 = vpop.permute.xlu1 %2481  ;;  %v6118_v40 = vpop.permute.xlu0 %2515  ;;  %v1835_v63 = vadd.f32 %v7034_v24, %v1795_v10  ;;  %v3070_v30 = vmul.f32 %v5649_v22, %v3064_v12  ;;  %v3105_v35 = vmul.f32 %v5537_v32, %v6082_v42  ;;  %v3079_v36 = vsel %vm243_vm5, %v3077_v38, %v3078_v5  ;;  %v7042_v23 = vld [vmem:[#allocation38_spill] sm:$0xff]  ;;  %v7044_v57 = vld [vmem:[#allocation13_spill] sm:$0xff]  ;;  %v7046_v24 = vld [vmem:[#allocation43_spill] sm:$0xff] }
 0x2b1   :  { %v1754_v49 = vadd.f32 %v7035_v18, %v1714_v51  ;;  %v1796_v11 = vadd.f32 %v7036_v27, %v1756_v7  ;;  %v1833_v4 = vadd.f32 %v7037_v26, %v1793_v58  ;;  %v3083_v39 = vrot.slane %v3069_v37, 3  ;;  %v7045_v33 = vld [vmem:[#allocation14_spill] sm:$0xff] }
 0x2b2   :  { %3049 = vrot.lane.b32.xlu1 %v3041_v48, %s4018_s0  ;;  %3051 = vrot.lane.b32.xlu0 %v3044_v20, %s4018_s0  ;;  %v1875_v43 = vadd.f32 %v7038_v41, %v1835_v63  ;;  %v3082_v20 = vrot.slane %v3068_v52, 3  ;;  %v3106_v12 = vmul.f32 %v5548_v62, %v6082_v42  ;;  %v3081_v10 = vsel %vm243_vm5, %v3078_v5, %v3080_v6 }
 0x2b3   :  { %v1794_v47 = vadd.f32 %v7039_v46, %v1754_v49  ;;  %v1836_v56 = vadd.f32 %v7040_v28, %v1796_v11  ;;  %v1873_v45 = vadd.f32 %v7041_v19, %v1833_v4  ;;  %v3085_v38 = vrot.slane %v3070_v30, 3  ;;  %v7048_v11 = vld [vmem:[#allocation16_spill] sm:$0xff]  ;;  %v7049_v4 = vld [vmem:[#allocation39_spill] sm:$0xff]  ;;  %v7052_v19 = vld [vmem:[#allocation37_spill] sm:$0xff] }
 0x2b4   :  { %v6138_v29 = vpop.permute.xlu1 %2517  ;;  %v6140_v48 = vpop.permute.xlu0 %2519  ;;  %v1915_v61 = vadd.f32 %v7042_v23, %v1875_v43  ;;  %v3117_v52 = vrot.slane %v3105_v35, 4  ;;  %v3107_v37 = vmul.f32 %v5607_v3, %v6082_v42  ;;  %v3118_v49 = vrot.slane %v3106_v12, 4  ;;  %v7047_v35 = vld [vmem:[#allocation35_spill] sm:$0xff]  ;;  %v7053_v23 = vld [vmem:[#allocation73_spill] sm:$0xff] }
 0x2b5   :  { %v1834_v51 = vadd.f32 %v7043_v59, %v1794_v47  ;;  %v1876_v7 = vadd.f32 %v7044_v57, %v1836_v56  ;;  %v1913_v58 = vadd.f32 %v7045_v33, %v1873_v45  ;;  %v3108_v5 = vmul.f32 %v5604_v54, %v6082_v42  ;;  %v7050_v12 = vld [vmem:[#allocation15_spill] sm:$0xff]  ;;  %v7051_v47 = vld [vmem:[#allocation40_spill] sm:$0xff] }
 0x2b6   :  { %3053 = vrot.lane.b32.xlu1 %v3046_v34, %s4018_s0  ;;  %3087 = vrot.lane.b32.xlu0 %v3079_v36, %s4018_s0  ;;  %v1955_v63 = vadd.f32 %v7046_v24, %v1915_v61  ;;  %v3109_v6 = vmul.f32 %v5613_v15, %v6082_v42  ;;  %v3144_v30 = vstv %s6122_s7  ;;  %v3084_v43 = vsel %vm243_vm5, %v3082_v20, %v3083_v39  ;;  %v7054_v20 = vld [vmem:[#allocation46_spill] sm:$0xff] }
 0x2b7   :  { %v1874_v27 = vadd.f32 %v7047_v35, %v1834_v51  ;;  %v1916_v26 = vadd.f32 %v7048_v11, %v1876_v7  ;;  %v1953_v41 = vadd.f32 %v7049_v4, %v1913_v58  ;;  %v2083_v36 = vrot.slane %v5922_v55, 4 }
 0x2b8   :  { %v6158_v18 = vpop.permute.xlu1 %2521  ;;  %v6160_v34 = vpop.permute.xlu0 %2555  ;;  %v1974_v46 = vmul.f32 %v5649_v22, %v7050_v12  ;;  %v1962_v28 = vmul.f32 %v5613_v15, %v7051_v47  ;;  %v3120_v56 = vrot.slane %v3107_v37, 4  ;;  %v1965_v61 = vadd.f32 %v7053_v23, %v1955_v63  ;;  %v7055_v37 = vld [vmem:[#allocation44_spill] sm:$0xff] }
 0x2b9   :  { %v1914_v45 = vadd.f32 %v7052_v19, %v1874_v27  ;;  %v1956_v59 = vadd.f32 %v7054_v20, %v1916_v26  ;;  %v3110_v51 = vmul.f32 %v5649_v22, %v6082_v42  ;;  %v3086_v33 = vsel %vm243_vm5, %v3083_v39, %v3085_v38  ;;  %v7056_v27 = vld [vmem:[#allocation42_spill] sm:$0xff]  ;;  %v7058_v20 = vld [vmem:[#allocation48_spill] sm:$0xff] }
 0x2ba   :  { %3089 = vrot.lane.b32.xlu1 %v3081_v10, %s4018_s0  ;;  %3091 = vrot.lane.b32.xlu0 %v3084_v43, %s4018_s0  ;;  %v3122_v58 = vrot.slane %v3108_v5, 4  ;;  %v3123_v10 = vrot.slane %v3109_v6, 4  ;;  %v3145_v24 = vmul.f32 %v5537_v32, %v3144_v30  ;;  %v1963_v35 = vadd.f32 %v7055_v37, %v1953_v41  ;;  %v7057_v43 = vld [vmem:[#allocation41_spill] sm:$0xff] }
 0x2bb   :  { %v1954_v11 = vadd.f32 %v7056_v27, %v1914_v45  ;;  %v3119_v63 = vsel %vm276_vm6, %v3117_v52, %v3118_v49  ;;  %v3146_v26 = vmul.f32 %v5548_v62, %v3144_v30  ;;  %v2114_v42 = vrot.slane %v5952_v21, 5 }
 0x2bc   :  { %v6185_v57 = vpop.permute.xlu1 %2557  ;;  %v6187_v7 = vpop.permute.xlu0 %2559  ;;  %v1989_v4 = vrot.slane %v1974_v46, 1  ;;  %v2006_v12 = vmul.f32 %v5649_v22, %v7057_v43  ;;  %v3121_v39 = vsel %vm276_vm6, %v3118_v49, %v3120_v56  ;;  %v1997_v38 = vadd.f32 %v5916_v25, %v1965_v61  ;;  %v7059_v49 = vld [vmem:[#allocation20_spill] sm:$0xff] }
 0x2bd   :  { %v1966_v5 = vadd.f32 %v1962_v28, %v1956_v59  ;;  %v3125_v6 = vrot.slane %v3110_v51, 4  ;;  %v3147_v52 = vmul.f32 %v5607_v3, %v3144_v30  ;;  %v3124_v46 = vsel %vm276_vm6, %v3122_v58, %v3123_v10  ;;  %v7060_v51 = vld [vmem:[#allocation45_spill] sm:$0xff] }
 0x2be   :  { %3093 = vrot.lane.b32.xlu1 %v3086_v33, %s4018_s0  ;;  %3127 = vrot.lane.b32.xlu0 %v3119_v63, %s4018_s0  ;;  %v3157_v19 = vrot.slane %v3145_v24, 5  ;;  %v3148_v45 = vmul.f32 %v5604_v54, %v3144_v30  ;;  %v3149_v23 = vmul.f32 %v5613_v15, %v3144_v30  ;;  %v1995_v33 = vadd.f32 %v7058_v20, %v1963_v35 }
 0x2bf   :  { %v1964_v56 = vadd.f32 %v7059_v49, %v1954_v11  ;;  %v3158_v25 = vrot.slane %v3146_v26, 5  ;;  %v3184_v28 = vstv %s6171_s8  ;;  %v2115_v61 = vrot.slane %v5977_v14, 5  ;;  %v7062_v49 = vld [vmem:[#allocation56_spill] sm:$0xff] }
 0x2c0   :  { %v6203_v41 = vpop.permute.xlu1 %2561  ;;  %v6205_v47 = vpop.permute.xlu0 %2595  ;;  %v2021_v59 = vrot.slane %v2006_v12, 2  ;;  %v2038_v37 = vmul.f32 %v5649_v22, %v7060_v51  ;;  %v7061_v27 = vrot.slane %v5843_v9, 1  ;;  %v2029_v24 = vadd.f32 %v5948_v13, %v1997_v38  ;;  %v7063_v51 = vld [vmem:[#allocation65_spill] sm:$0xff] }
 0x2c1   :  { %v3160_v11 = vrot.slane %v3147_v52, 5  ;;  %v3150_v63 = vmul.f32 %v5649_v22, %v3144_v30  ;;  %v3126_v12 = vsel %vm276_vm6, %v3123_v10, %v3125_v6  ;;  %v3162_v20 = vrot.slane %v3148_v45, 5 }
 0x2c2   :  { %v1990_v58 = vsel %vm177_vm3, %v7061_v27, %v1989_v4  ;;  %3129 = vrot.lane.b32.xlu1 %v3121_v39, %s4018_s0  ;;  %3131 = vrot.lane.b32.xlu0 %v3124_v46, %s4018_s0  ;;  %v3163_v9 = vrot.slane %v3149_v23, 5  ;;  %v3185_v4 = vmul.f32 %v5537_v32, %v3184_v28  ;;  %v2027_v39 = vadd.f32 %v7062_v49, %v1995_v33 }
 0x2c3   :  { %v1998_v35 = vadd.f32 %v1990_v58, %v1966_v5  ;;  %v1996_v46 = vadd.f32 %v7063_v51, %v1964_v56  ;;  %v3159_v13 = vsel %vm309_vm7, %v3157_v19, %v3158_v25  ;;  %v3186_v38 = vmul.f32 %v5548_v62, %v3184_v28 }
 0x2c4   :  { %v6223_v26 = vpop.permute.xlu1 %2597  ;;  %v6225_v43 = vpop.permute.xlu0 %2599  ;;  %v6235_v30 = vmul.f32 %v5613_v15, %v5707_v53  ;;  %v2053_v5 = vrot.slane %v2038_v37, 3  ;;  %v2070_v10 = vmul.f32 %v5649_v22, %v5595_v0  ;;  %v7064_v6 = vrot.slane %v5863_v50, 2  ;;  %v7065_v37 = vld [vmem:[#allocation57_spill] sm:$0xff] }
 0x2c5   :  { %v2061_v52 = vadd.f32 %v5962_v60, %v2029_v24  ;;  %v3161_v62 = vsel %vm309_vm7, %v3158_v25, %v3160_v11  ;;  %v3165_v45 = vrot.slane %v3150_v63, 5  ;;  %v3164_v0 = vsel %vm309_vm7, %v3162_v20, %v3163_v9  ;;  %v7066_v60 = vld [vmem:[#allocation68_spill] sm:$0xff] }
 0x2c6   :  { %v2022_v32 = vsel %vm210_vm4, %v7064_v6, %v2021_v59  ;;  %3133 = vrot.lane.b32.xlu1 %v3126_v12, %s4018_s0  ;;  %3167 = vrot.lane.b32.xlu0 %v3159_v13, %s4018_s0  ;;  %v3197_v56 = vrot.slane %v3185_v4, 6  ;;  %v3187_v50 = vmul.f32 %v5607_v3, %v3184_v28  ;;  %v3188_v59 = vmul.f32 %v5604_v54, %v3184_v28  ;;  %v7069_v54 = vld [vmem:[#allocation52_spill] sm:$0xff] }
 0x2c7   :  { %v2030_v19 = vadd.f32 %v2022_v32, %v1998_v35  ;;  %v2059_v27 = vadd.f32 %v7065_v37, %v2027_v39  ;;  %v2028_v58 = vadd.f32 %v7066_v60, %v1996_v46  ;;  %v3198_v24 = vrot.slane %v3186_v38, 6  ;;  %v7067_v35 = vld [vmem:[#allocation77_spill] sm:$0xff]  ;;  %v7070_v20 = vld [vmem:[#allocation76_spill] sm:$0xff] }
 0x2c8   :  { %v6246_v23 = vpop.permute.xlu1 %2601  ;;  %v6248_v33 = vpop.permute.xlu0 %2635  ;;  %v6258_v25 = vmul.f32 %v5613_v15, %v3184_v28  ;;  %v7068_v11 = vrot.slane %v7067_v35, 4  ;;  %v2085_v63 = vrot.slane %v2070_v10, 4  ;;  %v2102_v12 = vmul.f32 %v5649_v22, %v7069_v54  ;;  %v7072_v15 = vld [vmem:[#allocation89_spill] sm:$0xff]  ;;  %v7080_v54 = vld [vmem:[#allocation19_spill] sm:$0xff] }
 0x2c9   :  { %v7071_v4 = vrot.slane %v7070_v20, 3  ;;  %v2146_v39 = vrot.slane %v7072_v15, 6  ;;  %v2134_v46 = vmul.f32 %v5649_v22, %v5707_v53  ;;  %v3166_v6 = vsel %vm309_vm7, %v3163_v9, %v3165_v45  ;;  %v7081_v15 = vld [vmem:[#allocation62_spill] sm:$0xff] }
 0x2ca   :  { %v2084_v3 = vsel %vm276_vm6, %v7068_v11, %v2083_v36  ;;  %3169 = vrot.lane.b32.xlu1 %v3161_v62, %s4018_s0  ;;  %3171 = vrot.lane.b32.xlu0 %v3164_v0, %s4018_s0  ;;  %v3200_v32 = vrot.slane %v3187_v50, 6  ;;  %v3202_v37 = vrot.slane %v3188_v59, 6  ;;  %v7073_v62 = vld [vmem:[#allocation58_spill] sm:$0xff]  ;;  %v7074_v0 = vld [vmem:[#allocation72_spill] sm:$0xff]  ;;  %v3203_v11 = vrot.slane %v6258_v25, 6  ;;  %v7079_v59 = vld [vmem:[#allocation67_spill] sm:$0xff] }
 0x2cb   :  { %v2054_v49 = vsel %vm243_vm5, %v7071_v4, %v2053_v5  ;;  %v2093_v51 = vadd.f32 %v2084_v3, %v2061_v52  ;;  %v3190_v5 = vmul.f32 %v5649_v22, %v3184_v28  ;;  %v2091_v60 = vadd.f32 %v7073_v62, %v2059_v27  ;;  %v7075_v28 = vld [vmem:[#allocation66_spill] sm:$0xff] }
 0x2cc   :  { %v2062_v13 = vadd.f32 %v2054_v49, %v2030_v19  ;;  %v6277_v38 = vpop.permute.xlu1 %2637  ;;  %v6279_v10 = vpop.permute.xlu0 %2639  ;;  %v2060_v35 = vadd.f32 %v7074_v0, %v2028_v58  ;;  %v3199_v52 = vsel %vm342_vm8, %v3197_v56, %v3198_v24  ;;  %v2116_v53 = vsel %vm309_vm7, %v2114_v42, %v2115_v61  ;;  %v7077_v56 = vld [vmem:[#allocation49_spill] sm:$0xff] }
 0x2cd   :  { %v2147_v9 = vrot.slane %v6235_v30, 6  ;;  %v2117_v19 = vrot.slane %v2102_v12, 5  ;;  %v2086_v22 = vsel %vm276_vm6, %v2083_v36, %v2085_v63  ;;  %v7076_v45 = vrot.slane %v7075_v28, 4  ;;  %v6341_v28 = vld [vmem:[#allocation3 + $0x8] sm:$0xff] }
 0x2ce   :  { %3173 = vrot.lane.b32.xlu1 %v3166_v6, %s4018_s0  ;;  %3207 = vrot.lane.b32.xlu0 %v3199_v52, %s4018_s0  ;;  %v7078_v50 = vrot.slane %v7077_v56, 4  ;;  %v2112_v42 = vrot.slane %v7079_v59, 5  ;;  %v2125_v27 = vadd.f32 %v2116_v53, %v2093_v51  ;;  %v2094_v30 = vadd.f32 %v2086_v22, %v2062_v13  ;;  %v7083_v13 = vld [vmem:[#allocation61_spill] sm:$0xff] }
 0x2cf   :  { %v2149_v58 = vrot.slane %v2134_v46, 6  ;;  %v3201_v36 = vsel %vm342_vm8, %v3198_v24, %v3200_v32  ;;  %v3205_v3 = vrot.slane %v3190_v5, 6  ;;  %v3224_v63 = vstv %s6253_s9  ;;  %v7085_v32 = vld [vmem:[#allocation55_spill] sm:$0xff]  ;;  %v6345_v59 = vld [vmem:[#allocation3 + $0x10] sm:$0x3f] }
 0x2d0   :  { %v2081_v21 = vsel %vm276_vm6, %v7078_v50, %v7076_v45  ;;  %v6304_v25 = vpop.permute.xlu1 %2641  ;;  %v6306_v55 = vpop.permute.xlu0 %2675  ;;  %v2123_v12 = vadd.f32 %v7080_v54, %v2091_v60  ;;  %v3204_v4 = vsel %vm342_vm8, %v3202_v37, %v3203_v11  ;;  %v3250_v49 = vstv %s6260_s22  ;;  %v7087_v60 = vld [vmem:[#allocation69_spill] sm:$0xff] }
 0x2d1   :  { %v2092_v20 = vadd.f32 %v2081_v21, %v2060_v35  ;;  %v7082_v51 = vrot.slane %v7081_v15, 6  ;;  %v7084_v46 = vrot.slane %v7083_v13, 6  ;;  %v2148_v62 = vsel %vm342_vm8, %v2146_v39, %v2147_v9 }
 0x2d2   :  { %v2118_v24 = vsel %vm309_vm7, %v2115_v61, %v2117_v19  ;;  %3209 = vrot.lane.b32.xlu1 %v3201_v36, %s4018_s0  ;;  %3211 = vrot.lane.b32.xlu0 %v3204_v4, %s4018_s0  ;;  %v7086_v5 = vrot.slane %v7085_v32, 5  ;;  %v2144_v0 = vrot.slane %v7087_v60, 6  ;;  %v2157_v35 = vadd.f32 %v2148_v62, %v2125_v27  ;;  %v6337_v61 = vld [vmem:[#allocation3] sm:$0xff]  ;;  %v6356_v36 = vld [vmem:[#allocation3 + $0x28] sm:$0x3f] }
 0x2d3   :  { %v2143_v6 = vsel %vm342_vm8, %v7084_v46, %v7082_v51  ;;  %v2126_v52 = vadd.f32 %v2118_v24, %v2094_v30  ;;  %v2150_v39 = vsel %vm342_vm8, %v2147_v9, %v2149_v58  ;;  %v3225_v19 = vmul.f32 %v6337_v61, %v3224_v63  ;;  %v6353_v30 = vld [vmem:[#allocation3 + $0x20] sm:$0xff] }
 0x2d4   :  { %v2113_v37 = vsel %vm309_vm7, %v7086_v5, %v2112_v42  ;;  %v6333_v53 = vpop.permute.xlu1 %2677  ;;  %v6335_v14 = vpop.permute.xlu0 %2679  ;;  %v3251_v22 = vmul.f32 %v6337_v61, %v3250_v49  ;;  %v3252_v45 = vmul.f32 %v6341_v28, %v3250_v49  ;;  %v2155_v56 = vadd.f32 %v2143_v6, %v2123_v12  ;;  %v6350_v42 = vld [vmem:[#allocation3 + $0x18] sm:$0xff]  ;;  %v7093_v5 = vld [vmem:[#allocation47_spill] sm:$0xff] }
 0x2d5   :  { %7088 = vst [vmem:[#allocation94_spill] sm:$0xff] %v6333_v53  ;;  %v2124_v50 = vadd.f32 %v2113_v37, %v2092_v20  ;;  %v3206_v21 = vsel %vm342_vm8, %v3203_v11, %v3205_v3  ;;  %v3253_v9 = vmul.f32 %v6345_v59, %v3250_v49  ;;  %v3254_v27 = vmul.f32 %v6350_v42, %v3250_v49  ;;  %v7090_v20 = vld [vmem:[#allocation51_spill] sm:$0xff]  ;;  %v7114_v53 = vld [vmem:[#allocation74_spill] sm:$0xff] }
 0x2d6   :  { %3213 = vrot.lane.b32.xlu1 %v3206_v21, %s4018_s0  ;;  %3233 = vrot.lane.b32.xlu0 %v3225_v19, %s4019_s30  ;;  %v3255_v58 = vmul.f32 %v6353_v30, %v3250_v49  ;;  %v3256_v11 = vmul.f32 %v6356_v36, %v3250_v49  ;;  %v7089_v3 = vmov %v7082_v51  ;;  %v2158_v12 = vadd.f32 %v2150_v39, %v2126_v52  ;;  %v7094_v52 = vld [vmem:[#allocation53_spill] sm:$0xff]  ;;  %v7095_v19 = vld [vmem:[#allocation60_spill] sm:$0xff]  ;;  %s6405_s0 = sld [smem:[#allocation8 + $0x52]] }
 0x2d7   :  { %v2145_v54 = vsel %vm342_vm8, %v7089_v3, %v2144_v0  ;;  %v2183_v4 = vadd.f32 %v7090_v20, %v2157_v35  ;;  %v3226_v51 = vmul.f32 %v6341_v28, %v3224_v63  ;;  %v3227_v6 = vmul.f32 %v6350_v42, %v3224_v63 }
 0x2d8   :  { %v6364_v13 = vpop.permute.xlu1 %2681  ;;  %v6366_v46 = vpop.permute.xlu0 %2701  ;;  %v3263_v62 = vrot.slane %v3251_v22, 1  ;;  %v3264_v24 = vrot.slane %v3252_v45, 1  ;;  %v3290_v32 = vstv %s6310_s11  ;;  %v2156_v49 = vadd.f32 %v2145_v54, %v2124_v50 }
 0x2d9   :  { %7091 = vst [vmem:[#allocation97_spill] sm:$0xff] %v6364_v13  ;;  %7092 = vst [vmem:[#allocation95_spill] sm:$0xff] %v6366_v46  ;;  %v2181_v15 = vadd.f32 %v7093_v5, %v2155_v56  ;;  %v3266_v37 = vrot.slane %v3253_v9, 1  ;;  %v3268_v60 = vrot.slane %v3254_v27, 1  ;;  %v3269_v0 = vrot.slane %v3255_v58, 1  ;;  %v7097_v58 = vld [vmem:[#allocation50_spill] sm:$0xff] }
 0x2da   :  { %3235 = vrot.lane.b32.xlu1 %v3226_v51, %s4019_s30  ;;  %3237 = vrot.lane.b32.xlu0 %v3227_v6, %s4019_s30  ;;  %v3271_v35 = vrot.slane %v3256_v11, 1  ;;  %v2184_v39 = vadd.f32 %v7094_v52, %v2158_v12  ;;  %v2223_v21 = vadd.f32 %v7095_v19, %v2183_v4  ;;  %v3291_v3 = vmul.f32 %v6337_v61, %v3290_v32  ;;  %v7098_v12 = vld [vmem:[#allocation54_spill] sm:$0xff]  ;;  %v7099_v4 = vld [vmem:[#allocation64_spill] sm:$0xff]  ;;  %v7100_v52 = vld [vmem:[#allocation17_spill] sm:$0xff] }
 0x2db   :  { %v3330_v22 = vstv %s6330_s12  ;;  %v3228_v56 = vmul.f32 %v6353_v30, %v3224_v63  ;;  %v3265_v9 = vsel %vm177_vm3, %v3263_v62, %v3264_v24  ;;  %v3292_v54 = vmul.f32 %v6341_v28, %v3290_v32  ;;  %v7115_v13 = vld [vmem:[#allocation82_spill] sm:$0xff] }
 0x2dc   :  { %v6377_v45 = vpop.permute.xlu1 %2703  ;;  %v6379_v50 = vpop.permute.xlu0 %2705  ;;  %v3293_v27 = vmul.f32 %v6345_v59, %v3290_v32  ;;  %v2182_v11 = vadd.f32 %v7097_v58, %v2156_v49  ;;  %v2221_v20 = vadd.f32 %v7098_v12, %v2181_v15  ;;  %v2263_v51 = vadd.f32 %v7099_v4, %v2223_v21  ;;  %v7101_v49 = vld [vmem:[#allocation18_spill] sm:$0xff]  ;;  %v7102_v15 = vld [vmem:[#allocation75_spill] sm:$0xff] }
 0x2dd   :  { %7096 = vst [vmem:[#allocation101_spill] sm:$0xff] %v6377_v45  ;;  %v3267_v6 = vsel %vm177_vm3, %v3264_v24, %v3266_v37  ;;  %v3270_v63 = vsel %vm177_vm3, %v3268_v60, %v3269_v0  ;;  %v3272_v62 = vsel %vm177_vm3, %v3269_v0, %v3271_v35  ;;  %v6394_v5 = vmul.f32 %v6337_v61, %v3330_v22  ;;  %v7105_v35 = vld [vmem:[#allocation59_spill] sm:$0xff] }
 0x2de   :  { %3239 = vrot.lane.b32.xlu1 %v3228_v56, %s4019_s30  ;;  %3273 = vrot.lane.b32.xlu0 %v3265_v9, %s4019_s30  ;;  %v2224_v19 = vadd.f32 %v7100_v52, %v2184_v39  ;;  %v2261_v58 = vadd.f32 %v7101_v49, %v2221_v20  ;;  %v2303_v12 = vadd.f32 %v7102_v15, %v2263_v51  ;;  %v3303_v21 = vrot.slane %v3291_v3, 2  ;;  %v7106_v39 = vld [vmem:[#allocation70_spill] sm:$0xff]  ;;  %v7107_v20 = vld [vmem:[#allocation71_spill] sm:$0xff]  ;;  %v7108_v51 = vld [vmem:[#allocation80_spill] sm:$0xff] }
 0x2df   :  { %v3304_v37 = vrot.slane %v3292_v54, 2  ;;  %v3306_v56 = vrot.slane %v3293_v27, 2  ;;  %v3294_v60 = vmul.f32 %v6350_v42, %v3290_v32  ;;  %v3295_v0 = vmul.f32 %v6353_v30, %v3290_v32 }
 0x2e0   :  { %v6399_v4 = vpop.permute.xlu1 %2707  ;;  %v6401_v24 = vpop.permute.xlu0 %2741  ;;  %v2222_v9 = vadd.f32 %v7105_v35, %v2182_v11  ;;  %v2264_v52 = vadd.f32 %v7106_v39, %v2224_v19  ;;  %v2301_v49 = vadd.f32 %v7107_v20, %v2261_v58  ;;  %v2343_v3 = vadd.f32 %v7108_v51, %v2303_v12  ;;  %v7110_v35 = vld [vmem:[#allocation78_spill] sm:$0xff]  ;;  %v7111_v39 = vld [vmem:[#allocation79_spill] sm:$0xff] }
 0x2e1   :  { %7103 = vst [vmem:[#allocation92_spill] sm:$0xff] %v6399_v4  ;;  %7104 = vst [vmem:[#allocation98_spill] sm:$0xff] %v6401_v24  ;;  %v3296_v54 = vmul.f32 %v6356_v36, %v3290_v32  ;;  %v3332_v27 = vmul.f32 %v6341_v28, %v3330_v22  ;;  %v3343_v15 = vrot.slane %v6394_v5, 3  ;;  %v3333_v45 = vmul.f32 %v6345_v59, %v3330_v22  ;;  %v7109_v24 = vld [vmem:[#allocation63_spill] sm:$0xff]  ;;  %v7112_v20 = vld [vmem:[#allocation86_spill] sm:$0xff] }
 0x2e2   :  { %3275 = vrot.lane.b32.xlu1 %v3267_v6, %s4019_s30  ;;  %3277 = vrot.lane.b32.xlu0 %v3270_v63, %s4019_s30  ;;  %v2262_v11 = vadd.f32 %v7109_v24, %v2222_v9  ;;  %v2304_v19 = vadd.f32 %v7110_v35, %v2264_v52  ;;  %v2341_v58 = vadd.f32 %v7111_v39, %v2301_v49  ;;  %v3308_v4 = vrot.slane %v3294_v60, 2  ;;  %v7116_v9 = vld [vmem:[#allocation85_spill] sm:$0xff]  ;;  %v7119_v60 = vld [vmem:[#allocation84_spill] sm:$0xff] }
 0x2e3   :  { %v2383_v12 = vadd.f32 %v7112_v20, %v2343_v3  ;;  %v3305_v32 = vsel %vm210_vm4, %v3303_v21, %v3304_v37  ;;  %v3307_v63 = vsel %vm210_vm4, %v3304_v37, %v3306_v56  ;;  %v3309_v5 = vrot.slane %v3295_v0, 2  ;;  %v7117_v35 = vld [vmem:[#allocation93_spill] sm:$0xff] }
 0x2e4   :  { %v6421_v51 = vpop.permute.xlu1 %2743  ;;  %v6423_v6 = vpop.permute.xlu0 %2745  ;;  %v2302_v46 = vadd.f32 %v7114_v53, %v2262_v11  ;;  %v2344_v24 = vadd.f32 %v7115_v13, %v2304_v19  ;;  %v2381_v52 = vadd.f32 %v7116_v9, %v2341_v58  ;;  %v3311_v3 = vrot.slane %v3296_v54, 2  ;;  %v7118_v53 = vld [vmem:[#allocation81_spill] sm:$0xff]  ;;  %v7120_v11 = vld [vmem:[#allocation87_spill] sm:$0xff] }
 0x2e5   :  { %7113 = vst [vmem:[#allocation99_spill] sm:$0xff] %v6421_v51  ;;  %v2423_v49 = vadd.f32 %v7117_v35, %v2383_v12  ;;  %v3334_v21 = vmul.f32 %v6350_v42, %v3330_v22  ;;  %v3335_v37 = vmul.f32 %v6353_v30, %v3330_v22  ;;  %v3336_v56 = vmul.f32 %v6356_v36, %v3330_v22  ;;  %v7121_v22 = vld [vmem:[#allocation83_spill] sm:$0xff] }
 0x2e6   :  { %3279 = vrot.lane.b32.xlu1 %v3272_v62, %s4019_s30  ;;  %3313 = vrot.lane.b32.xlu0 %v3305_v32, %s4019_s30  ;;  %v2342_v13 = vadd.f32 %v7118_v53, %v2302_v46  ;;  %v2384_v0 = vadd.f32 %v7119_v60, %v2344_v24  ;;  %v2421_v19 = vadd.f32 %v7120_v11, %v2381_v52  ;;  %v3344_v20 = vrot.slane %v3332_v27, 3  ;;  %v7122_v35 = vld [vmem:[#allocation91_spill] sm:$0xff]  ;;  %v7123_v46 = vld [vmem:[#allocation88_spill] sm:$0xff] }
 0x2e7   :  { %v2449_v62 = vadd.f32 %v6059_v44, %v2423_v49  ;;  %v3310_v54 = vsel %vm210_vm4, %v3308_v4, %v3309_v5  ;;  %v3346_v12 = vrot.slane %v3333_v45, 3  ;;  %v3370_v32 = vstv %s6405_s0  ;;  %v7124_v45 = vld [vmem:[#allocation90_spill] sm:$0xff] }
 0x2e8   :  { %v6442_v39 = vpop.permute.xlu1 %2747  ;;  %v6444_v58 = vpop.permute.xlu0 %2781  ;;  %v2382_v9 = vadd.f32 %v7121_v22, %v2342_v13  ;;  %v2424_v51 = vadd.f32 %v7122_v35, %v2384_v0  ;;  %v2447_v53 = vadd.f32 %v7123_v46, %v2421_v19  ;;  %v3312_v44 = vsel %vm210_vm4, %v3309_v5, %v3311_v3 }
 0x2e9   :  { %v2489_v24 = vadd.f32 %v6097_v31, %v2449_v62  ;;  %v3348_v52 = vrot.slane %v3334_v21, 3  ;;  %v3349_v49 = vrot.slane %v3335_v37, 3  ;;  %v3351_v4 = vrot.slane %v3336_v56, 3 }
 0x2ea   :  { %3315 = vrot.lane.b32.xlu1 %v3307_v63, %s4019_s30  ;;  %3317 = vrot.lane.b32.xlu0 %v3310_v54, %s4019_s30  ;;  %v2422_v27 = vadd.f32 %v7124_v45, %v2382_v9  ;;  %v2450_v13 = vadd.f32 %v6075_v1, %v2424_v51  ;;  %v2487_v60 = vadd.f32 %v6077_v17, %v2447_v53  ;;  %v6479_v19 = vstv %s6436_s13 }
 0x2eb   :  { %v2529_v0 = vadd.f32 %v6140_v48, %v2489_v24  ;;  %v3345_v5 = vsel %vm243_vm5, %v3343_v15, %v3344_v20  ;;  %v3347_v3 = vsel %vm243_vm5, %v3344_v20, %v3346_v12  ;;  %v3371_v21 = vmul.f32 %v6337_v61, %v3370_v32 }
 0x2ec   :  { %v6461_v31 = vpop.permute.xlu1 %2783  ;;  %v6463_v63 = vpop.permute.xlu0 %2785  ;;  %v3372_v37 = vmul.f32 %v6341_v28, %v3370_v32  ;;  %v2448_v56 = vadd.f32 %v6057_v2, %v2422_v27  ;;  %v2490_v1 = vadd.f32 %v6116_v8, %v2450_v13  ;;  %v2527_v17 = vadd.f32 %v6118_v40, %v2487_v60 }
 0x2ed   :  { %v2569_v48 = vadd.f32 %v6187_v7, %v2529_v0  ;;  %v3350_v15 = vsel %vm243_vm5, %v3348_v52, %v3349_v49  ;;  %v3352_v51 = vsel %vm243_vm5, %v3349_v49, %v3351_v4  ;;  %v3373_v11 = vmul.f32 %v6345_v59, %v3370_v32 }
 0x2ee   :  { %3319 = vrot.lane.b32.xlu1 %v3312_v44, %s4019_s30  ;;  %3353 = vrot.lane.b32.xlu0 %v3345_v5, %s4019_s30  ;;  %v2488_v2 = vadd.f32 %v6095_v16, %v2448_v56  ;;  %v2530_v8 = vadd.f32 %v6158_v18, %v2490_v1  ;;  %v2567_v40 = vadd.f32 %v6160_v34, %v2527_v17  ;;  %v3383_v20 = vrot.slane %v3371_v21, 4  ;;  %v7126_v21 = vld [vmem:[#allocation95_spill] sm:$0xff] }
 0x2ef   :  { %v2609_v7 = vadd.f32 %v6225_v43, %v2569_v48  ;;  %v3384_v12 = vrot.slane %v3372_v37, 4  ;;  %v3374_v22 = vmul.f32 %v6350_v42, %v3370_v32  ;;  %v3375_v9 = vmul.f32 %v6353_v30, %v3370_v32 }
 0x2f0   :  { %v6485_v62 = vpop.permute.xlu1 %2787  ;;  %v6487_v54 = vpop.permute.xlu0 %2821  ;;  %v2528_v35 = vadd.f32 %v6138_v29, %v2488_v2  ;;  %v2570_v16 = vadd.f32 %v6203_v41, %v2530_v8  ;;  %v2607_v18 = vadd.f32 %v6205_v47, %v2567_v40  ;;  %v3376_v43 = vmul.f32 %v6356_v36, %v3370_v32  ;;  %v7129_v2 = vld [vmem:[#allocation98_spill] sm:$0xff] }
 0x2f1   :  { %v2649_v34 = vadd.f32 %v6279_v10, %v2609_v7  ;;  %v3411_v46 = vmul.f32 %v6337_v61, %v6479_v19  ;;  %v3412_v53 = vmul.f32 %v6341_v28, %v6479_v19  ;;  %v6503_v24 = vstv %s6455_s14 }
 0x2f2   :  { %3355 = vrot.lane.b32.xlu1 %v3347_v3, %s4019_s30  ;;  %3357 = vrot.lane.b32.xlu0 %v3350_v15, %s4019_s30  ;;  %v2568_v29 = vadd.f32 %v6185_v57, %v2528_v35  ;;  %v2610_v41 = vadd.f32 %v6246_v23, %v2570_v16  ;;  %v2647_v47 = vadd.f32 %v6248_v33, %v2607_v18  ;;  %v3386_v49 = vrot.slane %v3373_v11, 4  ;;  %v7125_v3 = vld [vmem:[#allocation97_spill] sm:$0xff]  ;;  %v7127_v15 = vld [vmem:[#allocation94_spill] sm:$0xff] }
 0x2f3   :  { %v2689_v10 = vadd.f32 %v6335_v14, %v2649_v34  ;;  %v3385_v32 = vsel %vm276_vm6, %v3383_v20, %v3384_v12  ;;  %v3388_v4 = vrot.slane %v3374_v22, 4  ;;  %v3389_v45 = vrot.slane %v3375_v9, 4  ;;  %v7130_v22 = vld [vmem:[#allocation101_spill] sm:$0xff] }
 0x2f4   :  { %v6509_v44 = vpop.permute.xlu1 %2823  ;;  %v2826_v52 = vpop.permute.xlu0 %2825  ;;  %v2608_v27 = vadd.f32 %v6223_v26, %v2568_v29  ;;  %v2650_v13 = vadd.f32 %v6304_v25, %v2610_v41  ;;  %v2687_v57 = vadd.f32 %v6306_v55, %v2647_v47  ;;  %v3391_v33 = vrot.slane %v3376_v43, 4  ;;  %v7131_v41 = vld [vmem:[#allocation99_spill] sm:$0xff] }
 0x2f5   :  { %v2715_v23 = vadd.f32 %v6379_v50, %v2689_v10  ;;  %v3423_v14 = vrot.slane %v3411_v46, 5  ;;  %v3424_v60 = vrot.slane %v3412_v53, 5  ;;  %v3413_v0 = vmul.f32 %v6345_v59, %v6479_v19 }
 0x2f6   :  { %3359 = vrot.lane.b32.xlu1 %v3352_v51, %s4019_s30  ;;  %3393 = vrot.lane.b32.xlu0 %v3385_v32, %s4019_s30  ;;  %v2648_v5 = vadd.f32 %v6277_v38, %v2608_v27  ;;  %v2690_v26 = vadd.f32 %v7125_v3, %v2650_v13  ;;  %v2713_v25 = vadd.f32 %v7126_v21, %v2687_v57  ;;  %v7128_v51 = vld [vmem:[#allocation92_spill] sm:$0xff] }
 0x2f7   :  { %v2755_v55 = vadd.f32 %v6423_v6, %v2715_v23  ;;  %v3387_v56 = vsel %vm276_vm6, %v3384_v12, %v3386_v49  ;;  %v3390_v1 = vsel %vm276_vm6, %v3388_v4, %v3389_v45  ;;  %v3414_v17 = vmul.f32 %v6350_v42, %v6479_v19 }
 0x2f8   :  { %v2828_v37 = vpop.permute.xlu1 %2827  ;;  %v2862_v50 = vpop.permute.xlu0 %2861  ;;  %v3415_v48 = vmul.f32 %v6353_v30, %v6479_v19  ;;  %v2688_v38 = vadd.f32 %v7127_v15, %v2648_v5  ;;  %v2716_v11 = vadd.f32 %v7128_v51, %v2690_v26  ;;  %v2753_v8 = vadd.f32 %v7129_v2, %v2713_v25 }
 0x2f9   :  { %v2795_v6 = vadd.f32 %v6463_v63, %v2755_v55  ;;  %v3392_v40 = vsel %vm276_vm6, %v3389_v45, %v3391_v33  ;;  %v3425_v7 = vsel %vm309_vm7, %v3423_v14, %v3424_v60  ;;  %v3426_v20 = vrot.slane %v3413_v0, 5 }
 0x2fa   :  { %3395 = vrot.lane.b32.xlu1 %v3387_v56, %s4019_s30  ;;  %3397 = vrot.lane.b32.xlu0 %v3390_v1, %s4019_s30  ;;  %v3451_v12 = vmul.f32 %v6337_v61, %v6503_v24  ;;  %v2714_v9 = vadd.f32 %v7130_v22, %v2688_v38  ;;  %v2756_v35 = vadd.f32 %v6442_v39, %v2716_v11  ;;  %v3428_v43 = vrot.slane %v3414_v17, 5 }
 0x2fb   :  { %v2793_v16 = vadd.f32 %v6444_v58, %v2753_v8  ;;  %v2835_v18 = vadd.f32 %v2826_v52, %v2795_v6  ;;  %v3429_v46 = vrot.slane %v3415_v48, 5  ;;  %v3416_v53 = vmul.f32 %v6356_v36, %v6479_v19 }
 0x2fc   :  { %v2864_v63 = vpop.permute.xlu1 %2863  ;;  %v2866_v34 = vpop.permute.xlu0 %2865  ;;  %v3452_v29 = vmul.f32 %v6341_v28, %v6503_v24  ;;  %v2754_v47 = vadd.f32 %v7131_v41, %v2714_v9  ;;  %v2796_v10 = vadd.f32 %v6485_v62, %v2756_v35  ;;  %v3427_v58 = vsel %vm309_vm7, %v3424_v60, %v3426_v20 }
 0x2fd   :  { %v2833_v32 = vadd.f32 %v6487_v54, %v2793_v16  ;;  %v2875_v39 = vadd.f32 %v2866_v34, %v2835_v18  ;;  %v3463_v52 = vrot.slane %v3451_v12, 6  ;;  %v3453_v45 = vmul.f32 %v6345_v59, %v6503_v24 }
 0x2fe   :  { %3399 = vrot.lane.b32.xlu1 %v3392_v40, %s4019_s30  ;;  %3433 = vrot.lane.b32.xlu0 %v3425_v7, %s4019_s30  ;;  %v2794_v49 = vadd.f32 %v6461_v31, %v2754_v47  ;;  %v2836_v19 = vadd.f32 %v2828_v37, %v2796_v10  ;;  %v3431_v62 = vrot.slane %v3416_v53, 5  ;;  %v3464_v57 = vrot.slane %v3452_v29, 6 }
 0x2ff   :  { %v2873_v4 = vadd.f32 %v2862_v50, %v2833_v32  ;;  %v3454_v54 = vmul.f32 %v6350_v42, %v6503_v24  ;;  %v3455_v23 = vmul.f32 %v6353_v30, %v6503_v24  ;;  %v3430_v60 = vsel %vm309_vm7, %v3428_v43, %v3429_v46 }
 0x300   :  { %v2868_v27 = vpop.permute.xlu1 %2867  ;;  %v2902_v13 = vpop.permute.xlu0 %2901  ;;  %v2834_v33 = vadd.f32 %v6509_v44, %v2794_v49  ;;  %v3432_v26 = vsel %vm309_vm7, %v3429_v46, %v3431_v62  ;;  %v3465_v21 = vsel %vm342_vm8, %v3463_v52, %v3464_v57  ;;  %v3466_v25 = vrot.slane %v3453_v45, 6 }
 0x301   :  { %v2876_v14 = vadd.f32 %v2868_v27, %v2836_v19  ;;  %v2913_v31 = vadd.f32 %v2902_v13, %v2873_v4  ;;  %v3456_v44 = vmul.f32 %v6356_v36, %v6503_v24  ;;  %v3468_v50 = vrot.slane %v3454_v54, 6 }
 0x302   :  { %3435 = vrot.lane.b32.xlu1 %v3427_v58, %s4019_s30  ;;  %3437 = vrot.lane.b32.xlu0 %v3430_v60, %s4019_s30  ;;  %v2874_v0 = vadd.f32 %v2864_v63, %v2834_v33  ;;  %v3469_v56 = vrot.slane %v3455_v23, 6  ;;  %v3490_v15 = vstv %s3892_s17  ;;  %v3467_v11 = vsel %vm342_vm8, %v3464_v57, %v3466_v25 }
 0x303   :  { %v3471_v48 = vrot.slane %v3456_v44, 6  ;;  %v3516_v24 = vstv %s3893_s18  ;;  %v3491_v7 = vmul.f32 %v6337_v61, %v3490_v15  ;;  %v3492_v35 = vmul.f32 %v6341_v28, %v3490_v15 }
 0x304   :  { %v2904_v5 = vpop.permute.xlu1 %2903  ;;  %v2906_v3 = vpop.permute.xlu0 %2905  ;;  %v3470_v2 = vsel %vm342_vm8, %v3468_v50, %v3469_v56  ;;  %v3517_v22 = vmul.f32 %v6337_v61, %v3516_v24  ;;  %v3518_v9 = vmul.f32 %v6341_v28, %v3516_v24  ;;  %v3493_v16 = vmul.f32 %v6350_v42, %v3490_v15 }
 0x305   :  { %v2914_v55 = vadd.f32 %v2904_v5, %v2874_v0  ;;  %v2915_v37 = vadd.f32 %v2906_v3, %v2875_v39  ;;  %v3472_v40 = vsel %vm342_vm8, %v3469_v56, %v3471_v48  ;;  %v3519_v34 = vmul.f32 %v6345_v59, %v3516_v24 }
 0x306   :  { %3439 = vrot.lane.b32.xlu1 %v3432_v26, %s4019_s30  ;;  %3473 = vrot.lane.b32.xlu0 %v3465_v21, %s4019_s30  ;;  %v3520_v43 = vmul.f32 %v6350_v42, %v3516_v24  ;;  %v3521_v46 = vmul.f32 %v6353_v30, %v3516_v24  ;;  %v3556_v53 = vstv %s3894_s19  ;;  %v3529_v47 = vrot.slane %v3517_v22, 1 }
 0x307   :  { %v3530_v10 = vrot.slane %v3518_v9, 1  ;;  %v3494_v32 = vmul.f32 %v6353_v30, %v3490_v15  ;;  %v3557_v39 = vmul.f32 %v6337_v61, %v3556_v53  ;;  %v3558_v58 = vmul.f32 %v6341_v28, %v3556_v53 }
 0x308   :  { %v2908_v1 = vpop.permute.xlu1 %2907  ;;  %v2942_v17 = vpop.permute.xlu0 %2941  ;;  %v3532_v19 = vrot.slane %v3519_v34, 1  ;;  %v3534_v4 = vrot.slane %v3520_v43, 1  ;;  %v3535_v45 = vrot.slane %v3521_v46, 1  ;;  %v3522_v27 = vmul.f32 %v6356_v36, %v3516_v24 }
 0x309   :  { %v2916_v38 = vadd.f32 %v2908_v1, %v2876_v14  ;;  %v2953_v51 = vadd.f32 %v2942_v17, %v2913_v31  ;;  %v3531_v57 = vsel %vm177_vm3, %v3529_v47, %v3530_v10  ;;  %v3569_v54 = vrot.slane %v3557_v39, 2 }
 0x30a   :  { %3475 = vrot.lane.b32.xlu1 %v3467_v11, %s4019_s30  ;;  %3477 = vrot.lane.b32.xlu0 %v3470_v2, %s4019_s30  ;;  %v3570_v23 = vrot.slane %v3558_v58, 2  ;;  %v3559_v33 = vmul.f32 %v6345_v59, %v3556_v53  ;;  %v3533_v60 = vsel %vm177_vm3, %v3530_v10, %v3532_v19  ;;  %v3536_v0 = vsel %vm177_vm3, %v3534_v4, %v3535_v45 }
 0x30b   :  { %v3537_v5 = vrot.slane %v3522_v27, 1  ;;  %v3596_v3 = vstv %s3895_s1  ;;  %v3560_v25 = vmul.f32 %v6350_v42, %v3556_v53  ;;  %v3561_v44 = vmul.f32 %v6353_v30, %v3556_v53 }
 0x30c   :  { %v2944_v8 = vpop.permute.xlu1 %2943  ;;  %v2946_v6 = vpop.permute.xlu0 %2945  ;;  %v3562_v17 = vmul.f32 %v6356_v36, %v3556_v53  ;;  %v3597_v48 = vmul.f32 %v6337_v61, %v3596_v3  ;;  %v3598_v15 = vmul.f32 %v6341_v28, %v3596_v3  ;;  %v3600_v9 = vmul.f32 %v6350_v42, %v3596_v3 }
 0x30d   :  { %v2954_v20 = vadd.f32 %v2944_v8, %v2914_v55  ;;  %v2955_v12 = vadd.f32 %v2946_v6, %v2915_v37  ;;  %v3571_v55 = vsel %vm210_vm4, %v3569_v54, %v3570_v23  ;;  %v3572_v37 = vrot.slane %v3559_v33, 2 }
 0x30e   :  { %3479 = vrot.lane.b32.xlu1 %v3472_v40, %s4019_s30  ;;  %3499 = vrot.lane.b32.xlu0 %v3491_v7, %s4020_s10  ;;  %s3896_s30 = sld [smem:[#allocation8 + $0x53]]  ;;  %v3538_v1 = vsel %vm177_vm3, %v3535_v45, %v3537_v5  ;;  %v3574_v11 = vrot.slane %v3560_v25, 2  ;;  %v3575_v2 = vrot.slane %v3561_v44, 2  ;;  %v3599_v8 = vmul.f32 %v6345_v59, %v3596_v3 }
 0x30f   :  { %v3573_v24 = vsel %vm210_vm4, %v3570_v23, %v3572_v37  ;;  %v3610_v22 = vrot.slane %v3598_v15, 3  ;;  %v3602_v43 = vmul.f32 %v6356_v36, %v3596_v3  ;;  %v3614_v58 = vrot.slane %v3600_v9, 3 }
 0x310   :  { %v2948_v18 = vpop.permute.xlu1 %2947  ;;  %v2968_v63 = vpop.permute.xlu0 %2967  ;;  %v3612_v34 = vrot.slane %v3599_v8, 3  ;;  %v3676_v54 = vstv %s3897_s20 }
 0x311   :  { %v2956_v29 = vadd.f32 %v2948_v18, %v2916_v38  ;;  %v2979_v41 = vadd.f32 %v2968_v63, %v2953_v51  ;;  %v3576_v18 = vsel %vm210_vm4, %v3574_v11, %v3575_v2  ;;  %v3601_v63 = vmul.f32 %v6353_v30, %v3596_v3 }
 0x312   :  { %3501 = vrot.lane.b32.xlu1 %v3492_v35, %s4020_s10  ;;  %3503 = vrot.lane.b32.xlu0 %v3493_v16, %s4020_s10  ;;  %v3617_v19 = vrot.slane %v3602_v43, 3  ;;  %v3677_v44 = vmul.f32 %v6337_v61, %v3676_v54 }
 0x314   :  { %v2970_v52 = vpop.permute.xlu1 %2969  ;;  %v2972_v49 = vpop.permute.xlu0 %2971  ;;  %v3636_v6 = vstv %s3896_s30  ;;  %v3689_v11 = vrot.slane %v3677_v44, 5 }
 0x315   :  { %v2980_v13 = vadd.f32 %v2970_v52, %v2954_v20  ;;  %v2981_v62 = vadd.f32 %v2972_v49, %v2955_v12  ;;  %v3577_v20 = vrot.slane %v3562_v17, 2  ;;  %v3609_v12 = vrot.slane %v3597_v48, 3 }
 0x316   :  { %3505 = vrot.lane.b32.xlu1 %v3494_v32, %s4020_s10  ;;  %3539 = vrot.lane.b32.xlu0 %v3531_v57, %s4020_s10  ;;  %v3637_v47 = vmul.f32 %v6337_v61, %v3636_v6  ;;  %v3638_v10 = vmul.f32 %v6341_v28, %v3636_v6  ;;  %v3615_v52 = vrot.slane %v3601_v63, 3  ;;  %v3613_v49 = vsel %vm243_vm5, %v3610_v22, %v3612_v34 }
 0x317   :  { %v3639_v4 = vmul.f32 %v6345_v59, %v3636_v6  ;;  %v3640_v57 = vmul.f32 %v6350_v42, %v3636_v6  ;;  %v3642_v25 = vmul.f32 %v6356_v36, %v3636_v6  ;;  %v3679_v17 = vmul.f32 %v6345_v59, %v3676_v54 }
 0x318   :  { %v2974_v14 = vpop.permute.xlu1 %2973  ;;  %v3008_v31 = vpop.permute.xlu0 %3007  ;;  %v3716_v48 = vstv %s3898_s21 }
 0x319   :  { %v2982_v26 = vadd.f32 %v2974_v14, %v2956_v29  ;;  %v3019_v21 = vadd.f32 %v3008_v31, %v2979_v41  ;;  %v3578_v29 = vsel %vm210_vm4, %v3575_v2, %v3577_v20  ;;  %v3611_v41 = vsel %vm243_vm5, %v3609_v12, %v3610_v22 }
 0x31a   :  { %3541 = vrot.lane.b32.xlu1 %v3533_v60, %s4020_s10  ;;  %3543 = vrot.lane.b32.xlu0 %v3536_v0, %s4020_s10  ;;  %v3616_v14 = vsel %vm243_vm5, %v3614_v58, %v3615_v52  ;;  %v3641_v31 = vmul.f32 %v6353_v30, %v3636_v6  ;;  %v3618_v60 = vsel %vm243_vm5, %v3615_v52, %v3617_v19  ;;  %v3652_v0 = vrot.slane %v3639_v4, 4 }
 0x31b   :  { %v3680_v2 = vmul.f32 %v6350_v42, %v3676_v54  ;;  %v3692_v20 = vrot.slane %v3679_v17, 5  ;;  %v3717_v12 = vmul.f32 %v6337_v61, %v3716_v48  ;;  %v3718_v63 = vmul.f32 %v6341_v28, %v3716_v48 }
 0x31c   :  { %v3010_v50 = vpop.permute.xlu1 %3009  ;;  %v3012_v56 = vpop.permute.xlu0 %3011  ;;  %v3721_v19 = vmul.f32 %v6353_v30, %v3716_v48 }
 0x31d   :  { %v3020_v38 = vadd.f32 %v3010_v50, %v2980_v13  ;;  %v3021_v51 = vadd.f32 %v3012_v56, %v2981_v62  ;;  %v3649_v13 = vrot.slane %v3637_v47, 4  ;;  %v3650_v62 = vrot.slane %v3638_v10, 4 }
 0x31e   :  { %3545 = vrot.lane.b32.xlu1 %v3538_v1, %s4020_s10  ;;  %3579 = vrot.lane.b32.xlu0 %v3571_v55, %s4020_s10  ;;  %v3655_v50 = vrot.slane %v3641_v31, 4  ;;  %v3678_v56 = vmul.f32 %v6341_v28, %v3676_v54  ;;  %v3719_v28 = vmul.f32 %v6345_v59, %v3716_v48 }
 0x31f   :  { %v3653_v1 = vsel %vm276_vm6, %v3650_v62, %v3652_v0 }
 0x320   :  { %v3014_v40 = vpop.permute.xlu1 %3013  ;;  %v3048_v7 = vpop.permute.xlu0 %3047 }
 0x321   :  { %v3022_v35 = vadd.f32 %v3014_v40, %v2982_v26  ;;  %v3059_v16 = vadd.f32 %v3048_v7, %v3019_v21  ;;  %v3651_v26 = vsel %vm276_vm6, %v3649_v13, %v3650_v62  ;;  %v3654_v21 = vrot.slane %v3640_v57, 4 }
 0x322   :  { %3581 = vrot.lane.b32.xlu1 %v3573_v24, %s4020_s10  ;;  %3583 = vrot.lane.b32.xlu0 %v3576_v18, %s4020_s10  ;;  %v3681_v24 = vmul.f32 %v6353_v30, %v3676_v54  ;;  %v3690_v7 = vrot.slane %v3678_v56, 5  ;;  %v3682_v18 = vmul.f32 %v6356_v36, %v3676_v54  ;;  %v3732_v62 = vrot.slane %v3719_v28, 6 }
 0x323   :  { %v3656_v40 = vsel %vm276_vm6, %v3654_v21, %v3655_v50  ;;  %v3722_v57 = vmul.f32 %v6356_v36, %v3716_v48 }
 0x324   :  { %v3050_v46 = vpop.permute.xlu1 %3049  ;;  %v3052_v53 = vpop.permute.xlu0 %3051  ;;  %v3693_v61 = vsel %vm309_vm7, %v3690_v7, %v3692_v20 }
 0x325   :  { %v3060_v32 = vadd.f32 %v3050_v46, %v3020_v38  ;;  %v3061_v39 = vadd.f32 %v3052_v53, %v3021_v51  ;;  %v3657_v51 = vrot.slane %v3642_v25, 4  ;;  %v3691_v53 = vsel %vm309_vm7, %v3689_v11, %v3690_v7 }
 0x326   :  { %3585 = vrot.lane.b32.xlu1 %v3578_v29, %s4020_s10  ;;  %3619 = vrot.lane.b32.xlu0 %v3611_v41, %s4020_s10  ;;  %v3729_v29 = vrot.slane %v3717_v12, 6 }
 0x327   :  { %v3658_v46 = vsel %vm276_vm6, %v3655_v50, %v3657_v51 }
 0x328   :  { %v3054_v45 = vpop.permute.xlu1 %3053  ;;  %v3088_v27 = vpop.permute.xlu0 %3087 }
 0x329   :  { %v3062_v23 = vadd.f32 %v3054_v45, %v3022_v35  ;;  %v3099_v33 = vadd.f32 %v3088_v27, %v3059_v16  ;;  %v3694_v35 = vrot.slane %v3680_v2, 5  ;;  %v3695_v16 = vrot.slane %v3681_v24, 5 }
 0x32a   :  { %3621 = vrot.lane.b32.xlu1 %v3613_v49, %s4020_s10  ;;  %3623 = vrot.lane.b32.xlu0 %v3616_v14, %s4020_s10  ;;  %v3720_v49 = vmul.f32 %v6350_v42, %v3716_v48 }
 0x32b   :  { %v3696_v10 = vsel %vm309_vm7, %v3694_v35, %v3695_v16 }
 0x32c   :  { %v3090_v5 = vpop.permute.xlu1 %3089  ;;  %v3092_v3 = vpop.permute.xlu0 %3091 }
 0x32d   :  { %v3100_v55 = vadd.f32 %v3090_v5, %v3060_v32  ;;  %v3101_v37 = vadd.f32 %v3092_v3, %v3061_v39  ;;  %v3697_v32 = vrot.slane %v3682_v18, 5  ;;  %v3730_v39 = vrot.slane %v3718_v63, 6 }
 0x32e   :  { %3625 = vrot.lane.b32.xlu1 %v3618_v60, %s4020_s10  ;;  %3659 = vrot.lane.b32.xlu0 %v3651_v26, %s4020_s10  ;;  %v3737_v5 = vrot.slane %v3722_v57, 6 }
 0x32f   :  { %v3698_v27 = vsel %vm309_vm7, %v3695_v16, %v3697_v32  ;;  %v3731_v13 = vsel %vm342_vm8, %v3729_v29, %v3730_v39  ;;  %v3733_v14 = vsel %vm342_vm8, %v3730_v39, %v3732_v62 }
 0x330   :  { %v3094_v15 = vpop.permute.xlu1 %3093  ;;  %v3128_v38 = vpop.permute.xlu0 %3127 }
 0x331   :  { %v3102_v8 = vadd.f32 %v3094_v15, %v3062_v23  ;;  %v3139_v6 = vadd.f32 %v3128_v38, %v3099_v33  ;;  %v3734_v23 = vrot.slane %v3720_v49, 6  ;;  %v3735_v33 = vrot.slane %v3721_v19, 6 }
 0x332   :  { %3661 = vrot.lane.b32.xlu1 %v3653_v1, %s4020_s10  ;;  %3663 = vrot.lane.b32.xlu0 %v3656_v40, %s4020_s10 }
 0x333   :  { %v3736_v0 = vsel %vm342_vm8, %v3734_v23, %v3735_v33  ;;  %v3738_v25 = vsel %vm342_vm8, %v3735_v33, %v3737_v5 }
 0x334   :  { %v3130_v22 = vpop.permute.xlu1 %3129  ;;  %v3132_v9 = vpop.permute.xlu0 %3131 }
 0x335   :  { %v3140_v34 = vadd.f32 %v3130_v22, %v3100_v55  ;;  %v3141_v43 = vadd.f32 %v3132_v9, %v3101_v37 }
 0x336   :  { %3665 = vrot.lane.b32.xlu1 %v3658_v46, %s4020_s10  ;;  %3699 = vrot.lane.b32.xlu0 %v3691_v53, %s4020_s10 }
 0x338   :  { %v3134_v41 = vpop.permute.xlu1 %3133  ;;  %v3168_v47 = vpop.permute.xlu0 %3167 }
 0x339   :  { %v3142_v58 = vadd.f32 %v3134_v41, %v3102_v8  ;;  %v3179_v52 = vadd.f32 %v3168_v47, %v3139_v6 }
 0x33a   :  { %3701 = vrot.lane.b32.xlu1 %v3693_v61, %s4020_s10  ;;  %3703 = vrot.lane.b32.xlu0 %v3696_v10, %s4020_s10 }
 0x33c   :  { %v3170_v4 = vpop.permute.xlu1 %3169  ;;  %v3172_v45 = vpop.permute.xlu0 %3171 }
 0x33d   :  { %v3180_v59 = vadd.f32 %v3170_v4, %v3140_v34  ;;  %v3181_v54 = vadd.f32 %v3172_v45, %v3141_v43 }
 0x33e   :  { %3705 = vrot.lane.b32.xlu1 %v3698_v27, %s4020_s10  ;;  %3739 = vrot.lane.b32.xlu0 %v3731_v13, %s4020_s10 }
 0x340   :  { %v3174_v42 = vpop.permute.xlu1 %3173  ;;  %v3208_v30 = vpop.permute.xlu0 %3207 }
 0x341   :  { %v3182_v31 = vadd.f32 %v3174_v42, %v3142_v58  ;;  %v3219_v60 = vadd.f32 %v3208_v30, %v3179_v52 }
 0x342   :  { %3741 = vrot.lane.b32.xlu1 %v3733_v14, %s4020_s10  ;;  %3743 = vrot.lane.b32.xlu0 %v3736_v0, %s4020_s10 }
 0x344   :  { %v3210_v36 = vpop.permute.xlu1 %3209  ;;  %v3212_v3 = vpop.permute.xlu0 %3211 }
 0x345   :  { %v3220_v26 = vadd.f32 %v3210_v36, %v3180_v59  ;;  %v3221_v21 = vadd.f32 %v3212_v3, %v3181_v54 }
 0x346   :  { %3745 = vrot.lane.b32.xlu1 %v3738_v25, %s4020_s10  ;;  %s4021_s10 = smov [#allocation9]  }
 0x347   :  { %s3789_s23 = sshll.u32 %s4021_s10, 4  ;;  %s3790_s23 = int_to_ptr.vmem [resolvable:$true] %s3789_s23 }
 0x348   :  { %v3214_v44 = vpop.permute.xlu1 %3213  ;;  %v3234_v55 = vpop.permute.xlu0 %3233  ;;  %s3983_s24 = scalar_lea.vmem %s3790_s23, 512  ;;  %p3988_p11 = scmp.lt.s32.totalorder %s3790_s23, %s3790_s23 }
 0x349   :  { %v3222_v37 = vadd.f32 %v3214_v44, %v3182_v31  ;;  %v3245_v50 = vadd.f32 %v3234_v55, %v3219_v60  ;;  %p3984_p10 = scmp.ne.s32.totalorder %s3790_s23, %s3983_s24  ;;  %p3989_p12 = scmp.lt.s32.totalorder %s3983_s24, %s3983_s24 }
 0x34b   :  { %p3990_p13 = por %p3989_p12, %p3988_p11 }
 0x34c   :  { %v3236_v56 = vpop.permute.xlu1 %3235  ;;  %v3238_v1 = vpop.permute.xlu0 %3237 }
 0x34d   :  { %v3246_v17 = vadd.f32 %v3236_v56, %v3220_v26  ;;  %v3247_v48 = vadd.f32 %v3238_v1, %v3221_v21  ;;  %p3991_p0 = pnand %p3990_p13, %p3984_p10 }
 0x350   :  { %v3240_v15 = vpop.permute.xlu1 %3239  ;;  %v3274_v38 = vpop.permute.xlu0 %3273 }
 0x351   :  { %v3248_v51 = vadd.f32 %v3240_v15, %v3222_v37  ;;  %v3285_v11 = vadd.f32 %v3274_v38, %v3245_v50 }
 0x354   :  { %v3276_v2 = vpop.permute.xlu1 %3275  ;;  %v3278_v24 = vpop.permute.xlu0 %3277 }
 0x355   :  { %v3286_v8 = vadd.f32 %v3276_v2, %v3246_v17  ;;  %v3287_v6 = vadd.f32 %v3278_v24, %v3247_v48 }
 0x358   :  { %v3280_v40 = vpop.permute.xlu1 %3279  ;;  %v3314_v7 = vpop.permute.xlu0 %3313 }
 0x359   :  { %v3288_v20 = vadd.f32 %v3280_v40, %v3248_v51  ;;  %v3325_v12 = vadd.f32 %v3314_v7, %v3285_v11 }
 0x35c   :  { %v3316_v22 = vpop.permute.xlu1 %3315  ;;  %v3318_v9 = vpop.permute.xlu0 %3317 }
 0x35d   :  { %v3326_v35 = vadd.f32 %v3316_v22, %v3286_v8  ;;  %v3327_v16 = vadd.f32 %v3318_v9, %v3287_v6 }
 0x360   :  { %v3320_v18 = vpop.permute.xlu1 %3319  ;;  %v3354_v63 = vpop.permute.xlu0 %3353 }
 0x361   :  { %v3328_v34 = vadd.f32 %v3320_v18, %v3288_v20  ;;  %v3365_v0 = vadd.f32 %v3354_v63, %v3325_v12 }
 0x364   :  { %v3356_v43 = vpop.permute.xlu1 %3355  ;;  %v3358_v46 = vpop.permute.xlu0 %3357 }
 0x365   :  { %v3366_v26 = vadd.f32 %v3356_v43, %v3326_v35  ;;  %v3367_v21 = vadd.f32 %v3358_v46, %v3327_v16 }
 0x368   :  { %v3360_v53 = vpop.permute.xlu1 %3359  ;;  %v3394_v61 = vpop.permute.xlu0 %3393 }
 0x369   :  { %v3405_v5 = vadd.f32 %v3394_v61, %v3365_v0  ;;  %v3368_v1 = vadd.f32 %v3360_v53, %v3328_v34 }
 0x36c   :  { %v3396_v29 = vpop.permute.xlu1 %3395  ;;  %v3398_v41 = vpop.permute.xlu0 %3397 }
 0x36d   :  { %v3406_v44 = vadd.f32 %v3396_v29, %v3366_v26  ;;  %v3407_v55 = vadd.f32 %v3398_v41, %v3367_v21 }
 0x370   :  { %v3400_v47 = vpop.permute.xlu1 %3399  ;;  %v3434_v10 = vpop.permute.xlu0 %3433 }
 0x371   :  { %v3445_v25 = vadd.f32 %v3434_v10, %v3405_v5  ;;  %v3408_v38 = vadd.f32 %v3400_v47, %v3368_v1 }
 0x374   :  { %v3436_v32 = vpop.permute.xlu1 %3435  ;;  %v3438_v39 = vpop.permute.xlu0 %3437 }
 0x375   :  { %v3446_v17 = vadd.f32 %v3436_v32, %v3406_v44  ;;  %v3447_v48 = vadd.f32 %v3438_v39, %v3407_v55 }
 0x378   :  { %v3440_v28 = vpop.permute.xlu1 %3439  ;;  %v3474_v58 = vpop.permute.xlu0 %3473 }
 0x379   :  { %v3485_v37 = vadd.f32 %v3474_v58, %v3445_v25  ;;  %v3448_v6 = vadd.f32 %v3440_v28, %v3408_v38 }
 0x37c   :  { %v3476_v52 = vpop.permute.xlu1 %3475  ;;  %v3478_v49 = vpop.permute.xlu0 %3477 }
 0x37d   :  { %v3486_v51 = vadd.f32 %v3476_v52, %v3446_v17  ;;  %v3487_v11 = vadd.f32 %v3478_v49, %v3447_v48 }
 0x380   :  { %v3480_v19 = vpop.permute.xlu1 %3479  ;;  %v3500_v4 = vpop.permute.xlu0 %3499 }
 0x381   :  { %v3511_v15 = vadd.f32 %v3500_v4, %v3485_v37  ;;  %v3488_v12 = vadd.f32 %v3480_v19, %v3448_v6 }
 0x384   :  { %v3502_v45 = vpop.permute.xlu1 %3501  ;;  %v3504_v27 = vpop.permute.xlu0 %3503 }
 0x385   :  { %v3512_v40 = vadd.f32 %v3502_v45, %v3486_v51  ;;  %v3513_v7 = vadd.f32 %v3504_v27, %v3487_v11 }
 0x388   :  { %v3506_v13 = vpop.permute.xlu1 %3505  ;;  %v3540_v62 = vpop.permute.xlu0 %3539 }
 0x389   :  { %v3551_v2 = vadd.f32 %v3540_v62, %v3511_v15  ;;  %v3514_v63 = vadd.f32 %v3506_v13, %v3488_v12 }
 0x38c   :  { %v3542_v57 = vpop.permute.xlu1 %3541  ;;  %v3544_v59 = vpop.permute.xlu0 %3543 }
 0x38d   :  { %v3552_v22 = vadd.f32 %v3542_v57, %v3512_v40  ;;  %v3553_v9 = vadd.f32 %v3544_v59, %v3513_v7 }
 0x390   :  { %v3546_v54 = vpop.permute.xlu1 %3545  ;;  %v3580_v23 = vpop.permute.xlu0 %3579 }
 0x391   :  { %v3591_v20 = vadd.f32 %v3580_v23, %v3551_v2  ;;  %v3554_v53 = vadd.f32 %v3546_v54, %v3514_v63 }
 0x394   :  { %v3582_v33 = vpop.permute.xlu1 %3581  ;;  %v3584_v42 = vpop.permute.xlu0 %3583 }
 0x395   :  { %v3592_v34 = vadd.f32 %v3582_v33, %v3552_v22  ;;  %v3593_v43 = vadd.f32 %v3584_v42, %v3553_v9 }
 0x398   :  { %v3586_v30 = vpop.permute.xlu1 %3585  ;;  %v3620_v14 = vpop.permute.xlu0 %3619 }
 0x399   :  { %v3631_v35 = vadd.f32 %v3620_v14, %v3591_v20  ;;  %v3594_v32 = vadd.f32 %v3586_v30, %v3554_v53 }
 0x39c   :  { %v3622_v31 = vpop.permute.xlu1 %3621  ;;  %v3624_v60 = vpop.permute.xlu0 %3623 }
 0x39d   :  { %v3632_v61 = vadd.f32 %v3622_v31, %v3592_v34  ;;  %v3633_v29 = vadd.f32 %v3624_v60, %v3593_v43 }
 0x3a0   :  { %v3626_v36 = vpop.permute.xlu1 %3625  ;;  %v3660_v3 = vpop.permute.xlu0 %3659 }
 0x3a1   :  { %v3671_v46 = vadd.f32 %v3660_v3, %v3631_v35  ;;  %v3634_v52 = vadd.f32 %v3626_v36, %v3594_v32 }
 0x3a4   :  { %v3662_v50 = vpop.permute.xlu1 %3661  ;;  %v3664_v56 = vpop.permute.xlu0 %3663 }
 0x3a5   :  { %v3672_v39 = vadd.f32 %v3662_v50, %v3632_v61  ;;  %v3673_v28 = vadd.f32 %v3664_v56, %v3633_v29 }
 0x3a8   :  { %v3666_v24 = vpop.permute.xlu1 %3665  ;;  %v3700_v8 = vpop.permute.xlu0 %3699 }
 0x3a9   :  { %v3711_v41 = vadd.f32 %v3700_v8, %v3671_v46  ;;  %v3674_v13 = vadd.f32 %v3666_v24, %v3634_v52 }
 0x3ac   :  { %v3702_v16 = vpop.permute.xlu1 %3701  ;;  %v3704_v18 = vpop.permute.xlu0 %3703 }
 0x3ad   :  { %v3712_v49 = vadd.f32 %v3702_v16, %v3672_v39  ;;  %v3713_v19 = vadd.f32 %v3704_v18, %v3673_v28 }
 0x3b0   :  { %v3706_v47 = vpop.permute.xlu1 %3705  ;;  %v3740_v10 = vpop.permute.xlu0 %3739 }
 0x3b1   :  { %v3751_v58 = vadd.f32 %v3740_v10, %v3711_v41  ;;  %v3714_v54 = vadd.f32 %v3706_v47, %v3674_v13 }
 0x3b3   :  { %v3755_v4 = vsub.f32 0.0, %v3751_v58 }
 0x3b4   :  { %v3742_v45 = vpop.permute.xlu1 %3741  ;;  %v3744_v27 = vpop.permute.xlu0 %3743 }
 0x3b5   :  { %v3759_v62 = vmul.f32 1.442695, %v3755_v4  ;;  %v3752_v57 = vadd.f32 %v3742_v45, %v3712_v49  ;;  %v3753_v59 = vadd.f32 %v3744_v27, %v3713_v19 }
 0x3b7   :  { %3912 = vpow2.f32 %v3759_v62  ;;  %v3756_v23 = vsub.f32 0.0, %v3752_v57  ;;  %v3757_v33 = vsub.f32 0.0, %v3753_v59 }
 0x3b8   :  { %v3746_v42 = vpop.permute.xlu1 %3745 }
 0x3b9   :  { %v3761_v14 = vmul.f32 1.442695, %v3756_v23  ;;  %v3763_v30 = vmul.f32 1.442695, %v3757_v33  ;;  %v3754_v31 = vadd.f32 %v3746_v42, %v3714_v54 }
 0x3bb   :  { %3914 = vpow2.f32 %v3761_v14  ;;  %v3758_v60 = vsub.f32 0.0, %v3754_v31 }
 0x3bc   :  { %3916 = vpow2.f32 %v3763_v30 }
 0x3bd   :  { %v3765_v0 = vmul.f32 1.442695, %v3758_v60 }
 0x3bf   :  { %3918 = vpow2.f32 %v3765_v0 }
 0x3c4   :  { %v3913_v5 = vpop.eup %3912 }
 0x3c5   :  { %v3767_v36 = vadd.f32 1.0, %v3913_v5 }
 0x3c7   :  { %3920 = vrcp.f32 %v3767_v36 }
 0x3c8   :  { %v3915_v3 = vpop.eup %3914 }
 0x3c9   :  { %v3917_v26 = vpop.eup %3916  ;;  %v3768_v21 = vadd.f32 1.0, %v3915_v3 }
 0x3ca   :  { %v3769_v25 = vadd.f32 1.0, %v3917_v26 }
 0x3cb   :  { %3922 = vrcp.f32 %v3768_v21 }
 0x3cc   :  { %v3919_v44 = vpop.eup %3918  ;;  %3924 = vrcp.f32 %v3769_v25 }
 0x3cd   :  { %v3770_v55 = vadd.f32 1.0, %v3919_v44 }
 0x3cf   :  { %3926 = vrcp.f32 %v3770_v55 }
 0x3d4   :  { %v3921_v37 = vpop.eup %3920 }
 0x3d5   :  { %3780 = vst.msk [vmem:[#allocation9] sm:$0xff] %vm3779_vm9, %v3921_v37 }
 0x3d8   :  { %v3923_v50 = vpop.eup %3922 }
 0x3d9   :  { %v3925_v56 = vpop.eup %3924  ;;  %3781 = vst.msk [vmem:[#allocation9 + $0x8] sm:$0xff] %vm3779_vm9, %v3923_v50 }
 0x3da   :  { %3782 = vst.msk [vmem:[#allocation9 + $0x10] sm:$0xff] %vm3779_vm9, %v3925_v56 }
 0x3dc   :  { %v3927_v1 = vpop.eup %3926 }
 0x3dd   :  { %3783 = vst.msk [vmem:[#allocation9 + $0x18] sm:$0xff] %vm3779_vm9, %v3927_v1 }
 0x3de   :  { %3994 = shalt.err (!%p3991_p0)
}
 0x3df   :  { %3795 = dma.vmem_to_hbm [thread:$0]  %s3790_s23, 512, %s6676_s2, [#allocation6], %s4010_s15, %s4010_s15, %s4011_s16  }
 0x3e0   :  { %4007 = dma.done.wait [#allocation6], 512  }
 0x3e1   :  { %4008 = vsyncadd [#allocation6], 4294966784 }
 0x3e2   :  { %3799 = vsyncpa [#allocation5], 1 }
 0x3e3   :  { %3800 = vsyncpa [#allocation6], 1 }
 0x3e4   :  { %3801 = vsyncpa [#allocation7], 1 }

</bundles_post_ra>
